<compile_context>
chip_gen: v7x
topology: tpu7x:2x2x1
jax: 0.10.0
libtpu: 0.0.40
codegen_flags: <defaults>
</compile_context>

<pallas_src>
import functools

import jax
import jax.numpy as jnp
from jax.experimental import pallas as pl
from jax.experimental.pallas import tpu as pltpu


def _round_up(x, m):
    return (x + m - 1) // m * m


# ----------------------------------------------------------------------------------
# Pallas kernel: implicit-GEMM KxK conv + folded BN (+ fused residual) (+ ReLU)
# ----------------------------------------------------------------------------------
def _conv_bn_act_kernel(*refs, kh, kw, stride, M, Wq, relu, add_residual, single_ci):
    """One grid step handles (batch b, cout tile co, cin tile ci).

    x_ref   : (1, P, L, TCIN)       f32  flattened phase planes (+ zero tail row block)
    w_ref   : (kh, kw, TCIN, TCOUT) bf16 pre-packed weights
    s_ref   : (1, TCOUT)            f32  folded-BN scale
    c_ref   : (1, TCOUT)            f32  folded-BN bias
    res_ref : (1, M, TCOUT)         f32  (only when add_residual)
    o_ref   : (1, M, TCOUT)         f32  "wide" output rows (junk cols sliced off outside)
    acc_ref : (M, TCOUT)            f32  VMEM accumulator (only when not single_ci)
    """
    if add_residual:
        x_ref, w_ref, s_ref, c_ref, res_ref = refs[:5]
        out_refs = refs[5:]
    else:
        x_ref, w_ref, s_ref, c_ref = refs[:4]
        res_ref = None
        out_refs = refs[4:]
    o_ref = out_refs[0]
    acc_ref = None if single_ci else out_refs[1]

    # Implicit GEMM: kh*kw shifted windows of the VMEM-resident flattened plane,
    # chained sum of MXU matmuls (first tap initializes -- no zero broadcast).
    part = None
    for r in range(kh):                      # static, unrolled
        for s in range(kw):
            phase = (r % stride) * stride + (s % stride)
            start = (r // stride) * Wq + (s // stride)
            a = x_ref[0, phase, start:start + M, :].astype(jnp.bfloat16)
            y = jnp.dot(a, w_ref[r, s], preferred_element_type=jnp.float32)
            part = y if part is None else part + y

    def epilogue(acc):
        out = acc * s_ref[...] + c_ref[...]
        if add_residual:
            out = out + res_ref[0]
        if relu:
            out = jnp.maximum(out, 0.0)
        o_ref[0] = out.astype(o_ref.dtype)

    if single_ci:
        # Single Cin tile: no accumulator scratch, epilogue straight to the output tile.
        epilogue(part)
    else:
        ci = pl.program_id(2)

        @pl.when(ci == 0)
        def _():
            acc_ref[...] = part            # initialize with the first tile's partial sum

        @pl.when(ci > 0)
        def _():
            acc_ref[...] += part

        @pl.when(ci == pl.num_programs(2) - 1)
        def _():
            epilogue(acc_ref[...])


def conv2d_bn_act(x, w, scale, bias, *, stride=1, padding=0, relu=True, residual=None):
    """NHWC conv + folded BN (+ fused residual) (+ ReLU) via the implicit-GEMM kernel.

    x        : (B, H, W, Cin)      f32 activations (NHWC)
    w        : (kh, kw, Cin, Cout) bf16 pre-packed weights
    scale    : (Cout,) f32         folded BN scale
    bias     : (Cout,) f32         folded BN bias
    residual : (B, Ho, Wo, Cout) f32 or None  (added before the final ReLU)
    returns  : (B, Ho, Wo, Cout) f32
    """
    B, H, W, Cin = x.shape
    kh, kw, wcin, Cout = w.shape
    assert wcin == Cin
    Ho = (H + 2 * padding - kh) // stride + 1
    Wo = (W + 2 * padding - kw) // stride + 1

    x = x.astype(jnp.float32)
    if padding:
        x = jnp.pad(x, ((0, 0), (padding, padding), (padding, padding), (0, 0)))

    # a strided 1x1 conv is a 1x1 conv on the spatially subsampled input
    if kh == 1 and kw == 1 and stride > 1:
        x = x[:, ::stride, ::stride, :]
        stride = 1

    Hp, Wp = x.shape[1], x.shape[2]

    if stride == 1:
        P, Hq, Wq = 1, Hp, Wp
        xq = x[:, None]
    else:
        # space-to-depth: phase (pr, pc) holds x[pr::stride, pc::stride], so every shifted
        # kernel window becomes a plain contiguous slice inside the kernel (no strided loads).
        Hq, Wq = _round_up(Hp, stride) // stride, _round_up(Wp, stride) // stride
        P = stride * stride
        x = jnp.pad(x, ((0, 0), (0, Hq * stride - Hp), (0, Wq * stride - Wp), (0, 0)))
        xq = x.reshape(B, Hq, stride, Wq, stride, Cin)
        xq = xq.transpose(0, 2, 4, 1, 3, 5).reshape(B, P, Hq, Wq, Cin)

    # Flatten each phase plane and append one zero row-block so the largest shifted window
    # never reads OOB (sufficient for kh<=3, stride 1/2).  The conv is computed "wide" over
    # (Ho, Wq); the Wq-Wo junk columns are harmless and sliced off after the kernel.
    L = Hq * Wq + Wq
    M = Ho * Wq
    xf = jnp.pad(xq.reshape(B, P, Hq * Wq, Cin), ((0, 0), (0, 0), (0, Wq), (0, 0)))

    # ---- channel tiling ---------------------------------------------------------------
    # Cin: one full tile when <= 128 lanes; 256-wide tiles when possible (v6e/v7x MXU depth),
    # else 128-lane tiles (zero padded).
    if Cin <= 128:
        Cin_p = TCIN = Cin
    elif Cin % 256 == 0:
        Cin_p, TCIN = Cin, 256
    else:
        Cin_p, TCIN = _round_up(Cin, 128), 128
    # Cout: ALWAYS >= 128 lanes so output stores are unmasked/lane-dense and MXU N is full.
    if Cout <= 128:
        Cout_p, TCOUT = 128, 128
    elif Cout % 256 == 0:
        Cout_p, TCOUT = Cout, 256
    else:
        Cout_p, TCOUT = _round_up(Cout, 128), 128

    if Cin_p > Cin:
        xf = jnp.pad(xf, ((0, 0), (0, 0), (0, 0), (0, Cin_p - Cin)))
        w = jnp.pad(w, ((0, 0), (0, 0), (0, Cin_p - Cin), (0, 0)))
    if Cout_p > Cout:
        w = jnp.pad(w, ((0, 0), (0, 0), (0, 0), (0, Cout_p - Cout)))
        scale = jnp.pad(scale, (0, Cout_p - Cout))
        bias = jnp.pad(bias, (0, Cout_p - Cout))

    n_co = Cout_p // TCOUT
    n_ci = Cin_p // TCIN
    single_ci = (n_ci == 1)

    inputs = [xf,
              w.astype(jnp.bfloat16),
              scale.reshape(1, Cout_p).astype(jnp.float32),
              bias.reshape(1, Cout_p).astype(jnp.float32)]
    in_specs = [
        pl.BlockSpec((1, P, L, TCIN), lambda b, co, ci: (b, 0, 0, ci)),
        pl.BlockSpec((kh, kw, TCIN, TCOUT), lambda b, co, ci: (0, 0, ci, co)),
        pl.BlockSpec((1, TCOUT), lambda b, co, ci: (0, co)),
        pl.BlockSpec((1, TCOUT), lambda b, co, ci: (0, co)),
    ]
    if residual is not None:
        assert residual.shape == (B, Ho, Wo, Cout)
        res = residual.astype(jnp.float32)
        res = jnp.pad(res, ((0, 0), (0, 0), (0, Wq - Wo), (0, Cout_p - Cout)))
        inputs.append(res.reshape(B, M, Cout_p))
        in_specs.append(pl.BlockSpec((1, M, TCOUT), lambda b, co, ci: (b, 0, co)))

    scratch_shapes = [] if single_ci else [pltpu.VMEM((M, TCOUT), jnp.float32)]

    # Explicit scoped-VMEM budget from the actual double-buffered block bytes
    # (floor at 32 MiB, capped below v7x's 64 MiB physical VMEM).
    blk_bytes = (P * L * TCIN * 4                      # x block (f32)
                 + kh * kw * TCIN * TCOUT * 2          # weight block (bf16)
                 + 2 * TCOUT * 4                       # scale + bias
                 + M * TCOUT * 4                       # output block (f32)
                 + (M * TCOUT * 4 if residual is not None else 0))
    need = 2 * blk_bytes + (0 if single_ci else M * TCOUT * 4)
    vmem_limit = int(min(max(2 * need, 32 * 1024 * 1024), 56 * 1024 * 1024))

    flops = 2 * B * M * kh * kw * Cin_p * Cout_p
    bytes_accessed = (B * n_co * P * L * Cin_p * 4          # x plane re-fetched per cout tile
                      + B * kh * kw * Cin_p * Cout_p * 2    # weights
                      + B * M * Cout_p * 4                  # output
                      + (B * M * Cout_p * 4 if residual is not None else 0))

    kernel = functools.partial(
        _conv_bn_act_kernel, kh=kh, kw=kw, stride=stride, M=M, Wq=Wq,
        relu=relu, add_residual=residual is not None, single_ci=single_ci)

    out_wide = pl.pallas_call(
        kernel,
        out_shape=jax.ShapeDtypeStruct((B, M, Cout_p), jnp.float32),
        grid_spec=pltpu.PrefetchScalarGridSpec(
            num_scalar_prefetch=0,
            grid=(B, n_co, n_ci),
            in_specs=in_specs,
            out_specs=pl.BlockSpec((1, M, TCOUT), lambda b, co, ci: (b, 0, co)),
            scratch_shapes=scratch_shapes,
        ),
        compiler_params=pltpu.CompilerParams(
            dimension_semantics=("parallel", "parallel", "arbitrary"),
            vmem_limit_bytes=vmem_limit),
        cost_estimate=pl.CostEstimate(
            flops=int(flops), bytes_accessed=int(bytes_accessed), transcendentals=0),
    )(*inputs)

    return out_wide.reshape(B, Ho, Wq, Cout_p)[:, :, :Wo, :Cout]


# ----------------------------------------------------------------------------------
# ResBlock forward (matches the PyTorch module, eval-mode BN)
# ----------------------------------------------------------------------------------
def resblock_forward(params, x_nchw, *, stride, has_shortcut):
    # NCHW -> NHWC once at the boundary (channels-last is the lane-friendly layout)
    x = jnp.transpose(x_nchw, (0, 2, 3, 1)).astype(jnp.float32)

    out = conv2d_bn_act(x, params["w1"], params["s1"], params["b1"],
                        stride=stride, padding=1, relu=True)
    if has_shortcut:
        residual = conv2d_bn_act(x, params["wsc"], params["ssc"], params["bsc"],
                                 stride=stride, padding=0, relu=False)
    else:
        residual = x
    # second conv: BN + residual add + final ReLU fused into the kernel epilogue
    out = conv2d_bn_act(out, params["w2"], params["s2"], params["b2"],
                        stride=1, padding=1, relu=True, residual=residual)
    return jnp.transpose(out, (0, 3, 1, 2))


# ----------------------------------------------------------------------------------
# Pure-JAX reference (same bf16 operand quantization) for numerical validation
# ----------------------------------------------------------------------------------
def _conv_ref(x, w, scale, bias, *, stride, padding, relu, residual=None):
    o = jax.lax.conv_general_dilated(
        x.astype(jnp.bfloat16), w.astype(jnp.bfloat16),
        window_strides=(stride, stride),
        padding=[(padding, padding), (padding, padding)],
        dimension_numbers=("NHWC", "HWIO", "NHWC"),
        preferred_element_type=jnp.float32)
    o = o * scale + bias
    if residual is not None:
        o = o + residual
    if relu:
        o = jnp.maximum(o, 0.0)
    return o


def resblock_ref(params, x_nchw, *, stride, has_shortcut):
    x = jnp.transpose(x_nchw, (0, 2, 3, 1)).astype(jnp.float32)
    out = _conv_ref(x, params["w1"], params["s1"], params["b1"],
                    stride=stride, padding=1, relu=True)
    if has_shortcut:
        residual = _conv_ref(x, params["wsc"], params["ssc"], params["bsc"],
                             stride=stride, padding=0, relu=False)
    else:
        residual = x
    out = _conv_ref(out, params["w2"], params["s2"], params["b2"],
                    stride=1, padding=1, relu=True, residual=residual)
    return jnp.transpose(out, (0, 3, 1, 2))


# ----------------------------------------------------------------------------------
# Deterministic synthetic parameters: PyTorch-layout weights + BN stats, folded & packed ONCE
# ----------------------------------------------------------------------------------
def make_resblock_params(key, in_c, out_c, with_shortcut):
    ks = jax.random.split(key, 6)

    def conv_w(k, cout, cin, kh, kw):
        fan_in = cin * kh * kw
        return jax.random.normal(k, (cout, cin, kh, kw), jnp.float32) * jnp.sqrt(2.0 / fan_in)

    def folded_bn(k, c, eps=1e-5):
        k1, k2, k3, k4 = jax.random.split(k, 4)
        gamma = 1.0 + 0.1 * jax.random.normal(k1, (c,), jnp.float32)
        beta = 0.1 * jax.random.normal(k2, (c,), jnp.float32)
        mean = 0.1 * jax.random.normal(k3, (c,), jnp.float32)
        var = jnp.abs(1.0 + 0.1 * jax.random.normal(k4, (c,), jnp.float32))
        scale = gamma * jax.lax.rsqrt(var + eps)     # eval-mode BN folded
        return scale, beta - mean * scale

    def pack(w_oihw):  # (Cout,Cin,kh,kw) -> (kh,kw,Cin,Cout) bf16, baked once at init
        return jnp.transpose(w_oihw, (2, 3, 1, 0)).astype(jnp.bfloat16)

    p = {"w1": pack(conv_w(ks[0], out_c, in_c, 3, 3)),
         "w2": pack(conv_w(ks[2], out_c, out_c, 3, 3))}
    p["s1"], p["b1"] = folded_bn(ks[1], out_c)
    p["s2"], p["b2"] = folded_bn(ks[3], out_c)
    if with_shortcut:     # standard projection shortcut: 1x1 conv (stride) + BN
        p["wsc"] = pack(conv_w(ks[4], out_c, in_c, 1, 1))
        p["ssc"], p["bsc"] = folded_bn(ks[5], out_c)
    return p


if __name__ == "__main__":
    root = jax.random.PRNGKey(0)
    kp1, kp2, kx = jax.random.split(root, 3)

    B, C_IN, H, W = 2, 32, 16, 16
    C_OUT = 64
    x = jax.random.normal(kx, (B, C_IN, H, W), jnp.float32)

    # Block A: identity shortcut (in==out, stride 1); Block B: projection shortcut, stride 2.
    params_a = make_resblock_params(kp1, C_IN, C_IN, with_shortcut=False)
    params_b = make_resblock_params(kp2, C_IN, C_OUT, with_shortcut=True)

    fwd_a = jax.jit(functools.partial(resblock_forward, stride=1, has_shortcut=False))
    fwd_b = jax.jit(functools.partial(resblock_forward, stride=2, has_shortcut=True))

    y_a = fwd_a(params_a, x)          # (2, 32, 16, 16)
    y_b = fwd_b(params_b, y_a)        # (2, 64, 8, 8)
    jax.block_until_ready((y_a, y_b))

    assert y_a.shape == (B, C_IN, H, W)
    assert y_b.shape == (B, C_OUT, H // 2, W // 2)
    assert bool(jnp.all(jnp.isfinite(y_a))) and bool(jnp.all(jnp.isfinite(y_b)))

    # numerical validation against a pure-JAX reference with the same bf16 quantization
    r_a = resblock_ref(params_a, x, stride=1, has_shortcut=False)
    r_b = resblock_ref(params_b, y_a, stride=2, has_shortcut=True)
    assert bool(jnp.allclose(y_a, r_a, atol=2e-2, rtol=2e-2))
    assert bool(jnp.allclose(y_b, r_b, atol=2e-2, rtol=2e-2))

    print("KERNEL_OK")
</pallas_src>

<mosaic_0001>
module attributes {stable_mosaic.version = 11 : i64} {
  func.func @_conv_bn_act_kernel(%arg0: i32, %arg1: i32, %arg2: i32, %arg3: memref<1x1x342x32xf32, #tpu.memory_space<vmem>>, %arg4: memref<3x3x32x128xbf16, #tpu.memory_space<vmem>>, %arg5: memref<1x128xf32, #tpu.memory_space<vmem>>, %arg6: memref<1x128xf32, #tpu.memory_space<vmem>>, %arg7: memref<1x288x128xf32, #tpu.memory_space<vmem>>) attributes {dimension_semantics = [#tpu.dimension_semantics<parallel>, #tpu.dimension_semantics<parallel>, #tpu.dimension_semantics<arbitrary>], iteration_bounds = array<i64: 2, 1, 1>, scalar_prefetch = 0 : i64, scratch_operands = 0 : i64, tpu.core_type = #tpu.core_type<tc>, window_params = [{transform_indices = @transform_0, window_bounds = array<i64: 1, 1, 342, 32>}, {transform_indices = @transform_1, window_bounds = array<i64: 3, 3, 32, 128>}, {transform_indices = @transform_2, window_bounds = array<i64: 1, 128>}, {transform_indices = @transform_3, window_bounds = array<i64: 1, 128>}, {transform_indices = @transform_4, window_bounds = array<i64: 1, 288, 128>}]} {
    %c0 = arith.constant 0 : index
    %c0_0 = arith.constant 0 : index
    %c0_1 = arith.constant 0 : index
    %c0_2 = arith.constant 0 : index
    %0 = vector.load %arg3[%c0, %c0_0, %c0_1, %c0_2] : memref<1x1x342x32xf32, #tpu.memory_space<vmem>>, vector<1x1x288x32xf32>
    %1 = vector.shape_cast %0 : vector<1x1x288x32xf32> to vector<288x32xf32>
    %2 = arith.truncf %1 : vector<288x32xf32> to vector<288x32xbf16>
    %c0_3 = arith.constant 0 : index
    %c0_4 = arith.constant 0 : index
    %c0_5 = arith.constant 0 : index
    %c0_6 = arith.constant 0 : index
    %3 = vector.load %arg4[%c0_3, %c0_4, %c0_5, %c0_6] : memref<3x3x32x128xbf16, #tpu.memory_space<vmem>>, vector<1x1x32x128xbf16>
    %4 = vector.shape_cast %3 : vector<1x1x32x128xbf16> to vector<32x128xbf16>
    %cst = arith.constant dense<0.000000e+00> : vector<288x128xf32>
    %5 = tpu.matmul %2, %4, %cst {dimension_numbers = #tpu.dot_dimension_numbers<[1], [0], [0], [1], [0, 0, 1, 1], [], []>} : vector<288x32xbf16>, vector<32x128xbf16>, vector<288x128xf32> -> vector<288x128xf32>
    %c0_7 = arith.constant 0 : index
    %c0_8 = arith.constant 0 : index
    %c1 = arith.constant 1 : index
    %c0_9 = arith.constant 0 : index
    %6 = vector.load %arg3[%c0_7, %c0_8, %c1, %c0_9] : memref<1x1x342x32xf32, #tpu.memory_space<vmem>>, vector<1x1x288x32xf32>
    %7 = vector.shape_cast %6 : vector<1x1x288x32xf32> to vector<288x32xf32>
    %8 = arith.truncf %7 : vector<288x32xf32> to vector<288x32xbf16>
    %c0_10 = arith.constant 0 : index
    %c1_11 = arith.constant 1 : index
    %c0_12 = arith.constant 0 : index
    %c0_13 = arith.constant 0 : index
    %9 = vector.load %arg4[%c0_10, %c1_11, %c0_12, %c0_13] : memref<3x3x32x128xbf16, #tpu.memory_space<vmem>>, vector<1x1x32x128xbf16>
    %10 = vector.shape_cast %9 : vector<1x1x32x128xbf16> to vector<32x128xbf16>
    %cst_14 = arith.constant dense<0.000000e+00> : vector<288x128xf32>
    %11 = tpu.matmul %8, %10, %cst_14 {dimension_numbers = #tpu.dot_dimension_numbers<[1], [0], [0], [1], [0, 0, 1, 1], [], []>} : vector<288x32xbf16>, vector<32x128xbf16>, vector<288x128xf32> -> vector<288x128xf32>
    %12 = arith.addf %5, %11 : vector<288x128xf32>
    %c0_15 = arith.constant 0 : index
    %c0_16 = arith.constant 0 : index
    %c2 = arith.constant 2 : index
    %c0_17 = arith.constant 0 : index
    %13 = vector.load %arg3[%c0_15, %c0_16, %c2, %c0_17] : memref<1x1x342x32xf32, #tpu.memory_space<vmem>>, vector<1x1x288x32xf32>
    %14 = vector.shape_cast %13 : vector<1x1x288x32xf32> to vector<288x32xf32>
    %15 = arith.truncf %14 : vector<288x32xf32> to vector<288x32xbf16>
    %c0_18 = arith.constant 0 : index
    %c2_19 = arith.constant 2 : index
    %c0_20 = arith.constant 0 : index
    %c0_21 = arith.constant 0 : index
    %16 = vector.load %arg4[%c0_18, %c2_19, %c0_20, %c0_21] : memref<3x3x32x128xbf16, #tpu.memory_space<vmem>>, vector<1x1x32x128xbf16>
    %17 = vector.shape_cast %16 : vector<1x1x32x128xbf16> to vector<32x128xbf16>
    %cst_22 = arith.constant dense<0.000000e+00> : vector<288x128xf32>
    %18 = tpu.matmul %15, %17, %cst_22 {dimension_numbers = #tpu.dot_dimension_numbers<[1], [0], [0], [1], [0, 0, 1, 1], [], []>} : vector<288x32xbf16>, vector<32x128xbf16>, vector<288x128xf32> -> vector<288x128xf32>
    %19 = arith.addf %12, %18 : vector<288x128xf32>
    %c0_23 = arith.constant 0 : index
    %c0_24 = arith.constant 0 : index
    %c18 = arith.constant 18 : index
    %c0_25 = arith.constant 0 : index
    %20 = vector.load %arg3[%c0_23, %c0_24, %c18, %c0_25] : memref<1x1x342x32xf32, #tpu.memory_space<vmem>>, vector<1x1x288x32xf32>
    %21 = vector.shape_cast %20 : vector<1x1x288x32xf32> to vector<288x32xf32>
    %22 = arith.truncf %21 : vector<288x32xf32> to vector<288x32xbf16>
    %c1_26 = arith.constant 1 : index
    %c0_27 = arith.constant 0 : index
    %c0_28 = arith.constant 0 : index
    %c0_29 = arith.constant 0 : index
    %23 = vector.load %arg4[%c1_26, %c0_27, %c0_28, %c0_29] : memref<3x3x32x128xbf16, #tpu.memory_space<vmem>>, vector<1x1x32x128xbf16>
    %24 = vector.shape_cast %23 : vector<1x1x32x128xbf16> to vector<32x128xbf16>
    %cst_30 = arith.constant dense<0.000000e+00> : vector<288x128xf32>
    %25 = tpu.matmul %22, %24, %cst_30 {dimension_numbers = #tpu.dot_dimension_numbers<[1], [0], [0], [1], [0, 0, 1, 1], [], []>} : vector<288x32xbf16>, vector<32x128xbf16>, vector<288x128xf32> -> vector<288x128xf32>
    %26 = arith.addf %19, %25 : vector<288x128xf32>
    %c0_31 = arith.constant 0 : index
    %c0_32 = arith.constant 0 : index
    %c19 = arith.constant 19 : index
    %c0_33 = arith.constant 0 : index
    %27 = vector.load %arg3[%c0_31, %c0_32, %c19, %c0_33] : memref<1x1x342x32xf32, #tpu.memory_space<vmem>>, vector<1x1x288x32xf32>
    %28 = vector.shape_cast %27 : vector<1x1x288x32xf32> to vector<288x32xf32>
    %29 = arith.truncf %28 : vector<288x32xf32> to vector<288x32xbf16>
    %c1_34 = arith.constant 1 : index
    %c1_35 = arith.constant 1 : index
    %c0_36 = arith.constant 0 : index
    %c0_37 = arith.constant 0 : index
    %30 = vector.load %arg4[%c1_34, %c1_35, %c0_36, %c0_37] : memref<3x3x32x128xbf16, #tpu.memory_space<vmem>>, vector<1x1x32x128xbf16>
    %31 = vector.shape_cast %30 : vector<1x1x32x128xbf16> to vector<32x128xbf16>
    %cst_38 = arith.constant dense<0.000000e+00> : vector<288x128xf32>
    %32 = tpu.matmul %29, %31, %cst_38 {dimension_numbers = #tpu.dot_dimension_numbers<[1], [0], [0], [1], [0, 0, 1, 1], [], []>} : vector<288x32xbf16>, vector<32x128xbf16>, vector<288x128xf32> -> vector<288x128xf32>
    %33 = arith.addf %26, %32 : vector<288x128xf32>
    %c0_39 = arith.constant 0 : index
    %c0_40 = arith.constant 0 : index
    %c20 = arith.constant 20 : index
    %c0_41 = arith.constant 0 : index
    %34 = vector.load %arg3[%c0_39, %c0_40, %c20, %c0_41] : memref<1x1x342x32xf32, #tpu.memory_space<vmem>>, vector<1x1x288x32xf32>
    %35 = vector.shape_cast %34 : vector<1x1x288x32xf32> to vector<288x32xf32>
    %36 = arith.truncf %35 : vector<288x32xf32> to vector<288x32xbf16>
    %c1_42 = arith.constant 1 : index
    %c2_43 = arith.constant 2 : index
    %c0_44 = arith.constant 0 : index
    %c0_45 = arith.constant 0 : index
    %37 = vector.load %arg4[%c1_42, %c2_43, %c0_44, %c0_45] : memref<3x3x32x128xbf16, #tpu.memory_space<vmem>>, vector<1x1x32x128xbf16>
    %38 = vector.shape_cast %37 : vector<1x1x32x128xbf16> to vector<32x128xbf16>
    %cst_46 = arith.constant dense<0.000000e+00> : vector<288x128xf32>
    %39 = tpu.matmul %36, %38, %cst_46 {dimension_numbers = #tpu.dot_dimension_numbers<[1], [0], [0], [1], [0, 0, 1, 1], [], []>} : vector<288x32xbf16>, vector<32x128xbf16>, vector<288x128xf32> -> vector<288x128xf32>
    %40 = arith.addf %33, %39 : vector<288x128xf32>
    %c0_47 = arith.constant 0 : index
    %c0_48 = arith.constant 0 : index
    %c36 = arith.constant 36 : index
    %c0_49 = arith.constant 0 : index
    %41 = vector.load %arg3[%c0_47, %c0_48, %c36, %c0_49] : memref<1x1x342x32xf32, #tpu.memory_space<vmem>>, vector<1x1x288x32xf32>
    %42 = vector.shape_cast %41 : vector<1x1x288x32xf32> to vector<288x32xf32>
    %43 = arith.truncf %42 : vector<288x32xf32> to vector<288x32xbf16>
    %c2_50 = arith.constant 2 : index
    %c0_51 = arith.constant 0 : index
    %c0_52 = arith.constant 0 : index
    %c0_53 = arith.constant 0 : index
    %44 = vector.load %arg4[%c2_50, %c0_51, %c0_52, %c0_53] : memref<3x3x32x128xbf16, #tpu.memory_space<vmem>>, vector<1x1x32x128xbf16>
    %45 = vector.shape_cast %44 : vector<1x1x32x128xbf16> to vector<32x128xbf16>
    %cst_54 = arith.constant dense<0.000000e+00> : vector<288x128xf32>
    %46 = tpu.matmul %43, %45, %cst_54 {dimension_numbers = #tpu.dot_dimension_numbers<[1], [0], [0], [1], [0, 0, 1, 1], [], []>} : vector<288x32xbf16>, vector<32x128xbf16>, vector<288x128xf32> -> vector<288x128xf32>
    %47 = arith.addf %40, %46 : vector<288x128xf32>
    %c0_55 = arith.constant 0 : index
    %c0_56 = arith.constant 0 : index
    %c37 = arith.constant 37 : index
    %c0_57 = arith.constant 0 : index
    %48 = vector.load %arg3[%c0_55, %c0_56, %c37, %c0_57] : memref<1x1x342x32xf32, #tpu.memory_space<vmem>>, vector<1x1x288x32xf32>
    %49 = vector.shape_cast %48 : vector<1x1x288x32xf32> to vector<288x32xf32>
    %50 = arith.truncf %49 : vector<288x32xf32> to vector<288x32xbf16>
    %c2_58 = arith.constant 2 : index
    %c1_59 = arith.constant 1 : index
    %c0_60 = arith.constant 0 : index
    %c0_61 = arith.constant 0 : index
    %51 = vector.load %arg4[%c2_58, %c1_59, %c0_60, %c0_61] : memref<3x3x32x128xbf16, #tpu.memory_space<vmem>>, vector<1x1x32x128xbf16>
    %52 = vector.shape_cast %51 : vector<1x1x32x128xbf16> to vector<32x128xbf16>
    %cst_62 = arith.constant dense<0.000000e+00> : vector<288x128xf32>
    %53 = tpu.matmul %50, %52, %cst_62 {dimension_numbers = #tpu.dot_dimension_numbers<[1], [0], [0], [1], [0, 0, 1, 1], [], []>} : vector<288x32xbf16>, vector<32x128xbf16>, vector<288x128xf32> -> vector<288x128xf32>
    %54 = arith.addf %47, %53 : vector<288x128xf32>
    %c0_63 = arith.constant 0 : index
    %c0_64 = arith.constant 0 : index
    %c38 = arith.constant 38 : index
    %c0_65 = arith.constant 0 : index
    %55 = vector.load %arg3[%c0_63, %c0_64, %c38, %c0_65] : memref<1x1x342x32xf32, #tpu.memory_space<vmem>>, vector<1x1x288x32xf32>
    %56 = vector.shape_cast %55 : vector<1x1x288x32xf32> to vector<288x32xf32>
    %57 = arith.truncf %56 : vector<288x32xf32> to vector<288x32xbf16>
    %c2_66 = arith.constant 2 : index
    %c2_67 = arith.constant 2 : index
    %c0_68 = arith.constant 0 : index
    %c0_69 = arith.constant 0 : index
    %58 = vector.load %arg4[%c2_66, %c2_67, %c0_68, %c0_69] : memref<3x3x32x128xbf16, #tpu.memory_space<vmem>>, vector<1x1x32x128xbf16>
    %59 = vector.shape_cast %58 : vector<1x1x32x128xbf16> to vector<32x128xbf16>
    %cst_70 = arith.constant dense<0.000000e+00> : vector<288x128xf32>
    %60 = tpu.matmul %57, %59, %cst_70 {dimension_numbers = #tpu.dot_dimension_numbers<[1], [0], [0], [1], [0, 0, 1, 1], [], []>} : vector<288x32xbf16>, vector<32x128xbf16>, vector<288x128xf32> -> vector<288x128xf32>
    %61 = arith.addf %54, %60 : vector<288x128xf32>
    %c0_71 = arith.constant 0 : index
    %c0_72 = arith.constant 0 : index
    %62 = vector.load %arg5[%c0_71, %c0_72] : memref<1x128xf32, #tpu.memory_space<vmem>>, vector<1x128xf32>
    %63 = vector.broadcast %62 : vector<1x128xf32> to vector<288x128xf32>
    %64 = arith.mulf %61, %63 : vector<288x128xf32>
    %c0_73 = arith.constant 0 : index
    %c0_74 = arith.constant 0 : index
    %65 = vector.load %arg6[%c0_73, %c0_74] : memref<1x128xf32, #tpu.memory_space<vmem>>, vector<1x128xf32>
    %66 = vector.broadcast %65 : vector<1x128xf32> to vector<288x128xf32>
    %67 = arith.addf %64, %66 : vector<288x128xf32>
    %cst_75 = arith.constant 0.000000e+00 : f32
    %68 = vector.broadcast %cst_75 : f32 to vector<288x128xf32>
    %69 = arith.maximumf %67, %68 : vector<288x128xf32>
    %c0_76 = arith.constant 0 : index
    %c0_77 = arith.constant 0 : index
    %c0_78 = arith.constant 0 : index
    %70 = vector.load %arg7[%c0_76, %c0_77, %c0_78] : memref<1x288x128xf32, #tpu.memory_space<vmem>>, vector<1x288x128xf32>
    %71 = vector.shape_cast %70 : vector<1x288x128xf32> to vector<288x128xf32>
    %72 = vector.shape_cast %69 : vector<288x128xf32> to vector<1x288x128xf32>
    tpu.vector_store %arg7[%c0_76, %c0_77, %c0_78], %72 {strides = array<i32>} : memref<1x288x128xf32, #tpu.memory_space<vmem>>, vector<1x288x128xf32>,
    return
  }
  func.func @transform_0(%arg0: i32, %arg1: i32, %arg2: i32) -> (i32, i32, i32, i32) {
    %c0_i32 = arith.constant 0 : i32
    %c0_i32_0 = arith.constant 0 : i32
    %c0_i32_1 = arith.constant 0 : i32
    return %arg0, %c0_i32, %c0_i32_0, %arg2 : i32, i32, i32, i32
  }
  func.func @transform_1(%arg0: i32, %arg1: i32, %arg2: i32) -> (i32, i32, i32, i32) {
    %c0_i32 = arith.constant 0 : i32
    %c0_i32_0 = arith.constant 0 : i32
    %c0_i32_1 = arith.constant 0 : i32
    return %c0_i32, %c0_i32_0, %arg2, %arg1 : i32, i32, i32, i32
  }
  func.func @transform_2(%arg0: i32, %arg1: i32, %arg2: i32) -> (i32, i32) {
    %c0_i32 = arith.constant 0 : i32
    %c0_i32_0 = arith.constant 0 : i32
    return %c0_i32, %arg1 : i32, i32
  }
  func.func @transform_3(%arg0: i32, %arg1: i32, %arg2: i32) -> (i32, i32) {
    %c0_i32 = arith.constant 0 : i32
    %c0_i32_0 = arith.constant 0 : i32
    return %c0_i32, %arg1 : i32, i32
  }
  func.func @transform_4(%arg0: i32, %arg1: i32, %arg2: i32) -> (i32, i32, i32) {
    %c0_i32 = arith.constant 0 : i32
    %c0_i32_0 = arith.constant 0 : i32
    return %arg0, %c0_i32, %arg1 : i32, i32, i32
  }
}

module attributes {stable_mosaic.version = 11 : i64} {
  func.func @_conv_bn_act_kernel(%arg0: i32, %arg1: i32, %arg2: i32, %arg3: memref<1x1x342x32xf32, #tpu.memory_space<vmem>>, %arg4: memref<3x3x32x128xbf16, #tpu.memory_space<vmem>>, %arg5: memref<1x128xf32, #tpu.memory_space<vmem>>, %arg6: memref<1x128xf32, #tpu.memory_space<vmem>>, %arg7: memref<1x288x128xf32, #tpu.memory_space<vmem>>, %arg8: memref<1x288x128xf32, #tpu.memory_space<vmem>>) attributes {dimension_semantics = [#tpu.dimension_semantics<parallel>, #tpu.dimension_semantics<parallel>, #tpu.dimension_semantics<arbitrary>], iteration_bounds = array<i64: 2, 1, 1>, scalar_prefetch = 0 : i64, scratch_operands = 0 : i64, tpu.core_type = #tpu.core_type<tc>, window_params = [{transform_indices = @transform_0, window_bounds = array<i64: 1, 1, 342, 32>}, {transform_indices = @transform_1, window_bounds = array<i64: 3, 3, 32, 128>}, {transform_indices = @transform_2, window_bounds = array<i64: 1, 128>}, {transform_indices = @transform_3, window_bounds = array<i64: 1, 128>}, {transform_indices = @transform_4, window_bounds = array<i64: 1, 288, 128>}, {transform_indices = @transform_5, window_bounds = array<i64: 1, 288, 128>}]} {
    %c0 = arith.constant 0 : index
    %c0_0 = arith.constant 0 : index
    %c0_1 = arith.constant 0 : index
    %c0_2 = arith.constant 0 : index
    %0 = vector.load %arg3[%c0, %c0_0, %c0_1, %c0_2] : memref<1x1x342x32xf32, #tpu.memory_space<vmem>>, vector<1x1x288x32xf32>
    %1 = vector.shape_cast %0 : vector<1x1x288x32xf32> to vector<288x32xf32>
    %2 = arith.truncf %1 : vector<288x32xf32> to vector<288x32xbf16>
    %c0_3 = arith.constant 0 : index
    %c0_4 = arith.constant 0 : index
    %c0_5 = arith.constant 0 : index
    %c0_6 = arith.constant 0 : index
    %3 = vector.load %arg4[%c0_3, %c0_4, %c0_5, %c0_6] : memref<3x3x32x128xbf16, #tpu.memory_space<vmem>>, vector<1x1x32x128xbf16>
    %4 = vector.shape_cast %3 : vector<1x1x32x128xbf16> to vector<32x128xbf16>
    %cst = arith.constant dense<0.000000e+00> : vector<288x128xf32>
    %5 = tpu.matmul %2, %4, %cst {dimension_numbers = #tpu.dot_dimension_numbers<[1], [0], [0], [1], [0, 0, 1, 1], [], []>} : vector<288x32xbf16>, vector<32x128xbf16>, vector<288x128xf32> -> vector<288x128xf32>
    %c0_7 = arith.constant 0 : index
    %c0_8 = arith.constant 0 : index
    %c1 = arith.constant 1 : index
    %c0_9 = arith.constant 0 : index
    %6 = vector.load %arg3[%c0_7, %c0_8, %c1, %c0_9] : memref<1x1x342x32xf32, #tpu.memory_space<vmem>>, vector<1x1x288x32xf32>
    %7 = vector.shape_cast %6 : vector<1x1x288x32xf32> to vector<288x32xf32>
    %8 = arith.truncf %7 : vector<288x32xf32> to vector<288x32xbf16>
    %c0_10 = arith.constant 0 : index
    %c1_11 = arith.constant 1 : index
    %c0_12 = arith.constant 0 : index
    %c0_13 = arith.constant 0 : index
    %9 = vector.load %arg4[%c0_10, %c1_11, %c0_12, %c0_13] : memref<3x3x32x128xbf16, #tpu.memory_space<vmem>>, vector<1x1x32x128xbf16>
    %10 = vector.shape_cast %9 : vector<1x1x32x128xbf16> to vector<32x128xbf16>
    %cst_14 = arith.constant dense<0.000000e+00> : vector<288x128xf32>
    %11 = tpu.matmul %8, %10, %cst_14 {dimension_numbers = #tpu.dot_dimension_numbers<[1], [0], [0], [1], [0, 0, 1, 1], [], []>} : vector<288x32xbf16>, vector<32x128xbf16>, vector<288x128xf32> -> vector<288x128xf32>
    %12 = arith.addf %5, %11 : vector<288x128xf32>
    %c0_15 = arith.constant 0 : index
    %c0_16 = arith.constant 0 : index
    %c2 = arith.constant 2 : index
    %c0_17 = arith.constant 0 : index
    %13 = vector.load %arg3[%c0_15, %c0_16, %c2, %c0_17] : memref<1x1x342x32xf32, #tpu.memory_space<vmem>>, vector<1x1x288x32xf32>
    %14 = vector.shape_cast %13 : vector<1x1x288x32xf32> to vector<288x32xf32>
    %15 = arith.truncf %14 : vector<288x32xf32> to vector<288x32xbf16>
    %c0_18 = arith.constant 0 : index
    %c2_19 = arith.constant 2 : index
    %c0_20 = arith.constant 0 : index
    %c0_21 = arith.constant 0 : index
    %16 = vector.load %arg4[%c0_18, %c2_19, %c0_20, %c0_21] : memref<3x3x32x128xbf16, #tpu.memory_space<vmem>>, vector<1x1x32x128xbf16>
    %17 = vector.shape_cast %16 : vector<1x1x32x128xbf16> to vector<32x128xbf16>
    %cst_22 = arith.constant dense<0.000000e+00> : vector<288x128xf32>
    %18 = tpu.matmul %15, %17, %cst_22 {dimension_numbers = #tpu.dot_dimension_numbers<[1], [0], [0], [1], [0, 0, 1, 1], [], []>} : vector<288x32xbf16>, vector<32x128xbf16>, vector<288x128xf32> -> vector<288x128xf32>
    %19 = arith.addf %12, %18 : vector<288x128xf32>
    %c0_23 = arith.constant 0 : index
    %c0_24 = arith.constant 0 : index
    %c18 = arith.constant 18 : index
    %c0_25 = arith.constant 0 : index
    %20 = vector.load %arg3[%c0_23, %c0_24, %c18, %c0_25] : memref<1x1x342x32xf32, #tpu.memory_space<vmem>>, vector<1x1x288x32xf32>
    %21 = vector.shape_cast %20 : vector<1x1x288x32xf32> to vector<288x32xf32>
    %22 = arith.truncf %21 : vector<288x32xf32> to vector<288x32xbf16>
    %c1_26 = arith.constant 1 : index
    %c0_27 = arith.constant 0 : index
    %c0_28 = arith.constant 0 : index
    %c0_29 = arith.constant 0 : index
    %23 = vector.load %arg4[%c1_26, %c0_27, %c0_28, %c0_29] : memref<3x3x32x128xbf16, #tpu.memory_space<vmem>>, vector<1x1x32x128xbf16>
    %24 = vector.shape_cast %23 : vector<1x1x32x128xbf16> to vector<32x128xbf16>
    %cst_30 = arith.constant dense<0.000000e+00> : vector<288x128xf32>
    %25 = tpu.matmul %22, %24, %cst_30 {dimension_numbers = #tpu.dot_dimension_numbers<[1], [0], [0], [1], [0, 0, 1, 1], [], []>} : vector<288x32xbf16>, vector<32x128xbf16>, vector<288x128xf32> -> vector<288x128xf32>
    %26 = arith.addf %19, %25 : vector<288x128xf32>
    %c0_31 = arith.constant 0 : index
    %c0_32 = arith.constant 0 : index
    %c19 = arith.constant 19 : index
    %c0_33 = arith.constant 0 : index
    %27 = vector.load %arg3[%c0_31, %c0_32, %c19, %c0_33] : memref<1x1x342x32xf32, #tpu.memory_space<vmem>>, vector<1x1x288x32xf32>
    %28 = vector.shape_cast %27 : vector<1x1x288x32xf32> to vector<288x32xf32>
    %29 = arith.truncf %28 : vector<288x32xf32> to vector<288x32xbf16>
    %c1_34 = arith.constant 1 : index
    %c1_35 = arith.constant 1 : index
    %c0_36 = arith.constant 0 : index
    %c0_37 = arith.constant 0 : index
    %30 = vector.load %arg4[%c1_34, %c1_35, %c0_36, %c0_37] : memref<3x3x32x128xbf16, #tpu.memory_space<vmem>>, vector<1x1x32x128xbf16>
    %31 = vector.shape_cast %30 : vector<1x1x32x128xbf16> to vector<32x128xbf16>
    %cst_38 = arith.constant dense<0.000000e+00> : vector<288x128xf32>
    %32 = tpu.matmul %29, %31, %cst_38 {dimension_numbers = #tpu.dot_dimension_numbers<[1], [0], [0], [1], [0, 0, 1, 1], [], []>} : vector<288x32xbf16>, vector<32x128xbf16>, vector<288x128xf32> -> vector<288x128xf32>
    %33 = arith.addf %26, %32 : vector<288x128xf32>
    %c0_39 = arith.constant 0 : index
    %c0_40 = arith.constant 0 : index
    %c20 = arith.constant 20 : index
    %c0_41 = arith.constant 0 : index
    %34 = vector.load %arg3[%c0_39, %c0_40, %c20, %c0_41] : memref<1x1x342x32xf32, #tpu.memory_space<vmem>>, vector<1x1x288x32xf32>
    %35 = vector.shape_cast %34 : vector<1x1x288x32xf32> to vector<288x32xf32>
    %36 = arith.truncf %35 : vector<288x32xf32> to vector<288x32xbf16>
    %c1_42 = arith.constant 1 : index
    %c2_43 = arith.constant 2 : index
    %c0_44 = arith.constant 0 : index
    %c0_45 = arith.constant 0 : index
    %37 = vector.load %arg4[%c1_42, %c2_43, %c0_44, %c0_45] : memref<3x3x32x128xbf16, #tpu.memory_space<vmem>>, vector<1x1x32x128xbf16>
    %38 = vector.shape_cast %37 : vector<1x1x32x128xbf16> to vector<32x128xbf16>
    %cst_46 = arith.constant dense<0.000000e+00> : vector<288x128xf32>
    %39 = tpu.matmul %36, %38, %cst_46 {dimension_numbers = #tpu.dot_dimension_numbers<[1], [0], [0], [1], [0, 0, 1, 1], [], []>} : vector<288x32xbf16>, vector<32x128xbf16>, vector<288x128xf32> -> vector<288x128xf32>
    %40 = arith.addf %33, %39 : vector<288x128xf32>
    %c0_47 = arith.constant 0 : index
    %c0_48 = arith.constant 0 : index
    %c36 = arith.constant 36 : index
    %c0_49 = arith.constant 0 : index
    %41 = vector.load %arg3[%c0_47, %c0_48, %c36, %c0_49] : memref<1x1x342x32xf32, #tpu.memory_space<vmem>>, vector<1x1x288x32xf32>
    %42 = vector.shape_cast %41 : vector<1x1x288x32xf32> to vector<288x32xf32>
    %43 = arith.truncf %42 : vector<288x32xf32> to vector<288x32xbf16>
    %c2_50 = arith.constant 2 : index
    %c0_51 = arith.constant 0 : index
    %c0_52 = arith.constant 0 : index
    %c0_53 = arith.constant 0 : index
    %44 = vector.load %arg4[%c2_50, %c0_51, %c0_52, %c0_53] : memref<3x3x32x128xbf16, #tpu.memory_space<vmem>>, vector<1x1x32x128xbf16>
    %45 = vector.shape_cast %44 : vector<1x1x32x128xbf16> to vector<32x128xbf16>
    %cst_54 = arith.constant dense<0.000000e+00> : vector<288x128xf32>
    %46 = tpu.matmul %43, %45, %cst_54 {dimension_numbers = #tpu.dot_dimension_numbers<[1], [0], [0], [1], [0, 0, 1, 1], [], []>} : vector<288x32xbf16>, vector<32x128xbf16>, vector<288x128xf32> -> vector<288x128xf32>
    %47 = arith.addf %40, %46 : vector<288x128xf32>
    %c0_55 = arith.constant 0 : index
    %c0_56 = arith.constant 0 : index
    %c37 = arith.constant 37 : index
    %c0_57 = arith.constant 0 : index
    %48 = vector.load %arg3[%c0_55, %c0_56, %c37, %c0_57] : memref<1x1x342x32xf32, #tpu.memory_space<vmem>>, vector<1x1x288x32xf32>
    %49 = vector.shape_cast %48 : vector<1x1x288x32xf32> to vector<288x32xf32>
    %50 = arith.truncf %49 : vector<288x32xf32> to vector<288x32xbf16>
    %c2_58 = arith.constant 2 : index
    %c1_59 = arith.constant 1 : index
    %c0_60 = arith.constant 0 : index
    %c0_61 = arith.constant 0 : index
    %51 = vector.load %arg4[%c2_58, %c1_59, %c0_60, %c0_61] : memref<3x3x32x128xbf16, #tpu.memory_space<vmem>>, vector<1x1x32x128xbf16>
    %52 = vector.shape_cast %51 : vector<1x1x32x128xbf16> to vector<32x128xbf16>
    %cst_62 = arith.constant dense<0.000000e+00> : vector<288x128xf32>
    %53 = tpu.matmul %50, %52, %cst_62 {dimension_numbers = #tpu.dot_dimension_numbers<[1], [0], [0], [1], [0, 0, 1, 1], [], []>} : vector<288x32xbf16>, vector<32x128xbf16>, vector<288x128xf32> -> vector<288x128xf32>
    %54 = arith.addf %47, %53 : vector<288x128xf32>
    %c0_63 = arith.constant 0 : index
    %c0_64 = arith.constant 0 : index
    %c38 = arith.constant 38 : index
    %c0_65 = arith.constant 0 : index
    %55 = vector.load %arg3[%c0_63, %c0_64, %c38, %c0_65] : memref<1x1x342x32xf32, #tpu.memory_space<vmem>>, vector<1x1x288x32xf32>
    %56 = vector.shape_cast %55 : vector<1x1x288x32xf32> to vector<288x32xf32>
    %57 = arith.truncf %56 : vector<288x32xf32> to vector<288x32xbf16>
    %c2_66 = arith.constant 2 : index
    %c2_67 = arith.constant 2 : index
    %c0_68 = arith.constant 0 : index
    %c0_69 = arith.constant 0 : index
    %58 = vector.load %arg4[%c2_66, %c2_67, %c0_68, %c0_69] : memref<3x3x32x128xbf16, #tpu.memory_space<vmem>>, vector<1x1x32x128xbf16>
    %59 = vector.shape_cast %58 : vector<1x1x32x128xbf16> to vector<32x128xbf16>
    %cst_70 = arith.constant dense<0.000000e+00> : vector<288x128xf32>
    %60 = tpu.matmul %57, %59, %cst_70 {dimension_numbers = #tpu.dot_dimension_numbers<[1], [0], [0], [1], [0, 0, 1, 1], [], []>} : vector<288x32xbf16>, vector<32x128xbf16>, vector<288x128xf32> -> vector<288x128xf32>
    %61 = arith.addf %54, %60 : vector<288x128xf32>
    %c0_71 = arith.constant 0 : index
    %c0_72 = arith.constant 0 : index
    %62 = vector.load %arg5[%c0_71, %c0_72] : memref<1x128xf32, #tpu.memory_space<vmem>>, vector<1x128xf32>
    %63 = vector.broadcast %62 : vector<1x128xf32> to vector<288x128xf32>
    %64 = arith.mulf %61, %63 : vector<288x128xf32>
    %c0_73 = arith.constant 0 : index
    %c0_74 = arith.constant 0 : index
    %65 = vector.load %arg6[%c0_73, %c0_74] : memref<1x128xf32, #tpu.memory_space<vmem>>, vector<1x128xf32>
    %66 = vector.broadcast %65 : vector<1x128xf32> to vector<288x128xf32>
    %67 = arith.addf %64, %66 : vector<288x128xf32>
    %c0_75 = arith.constant 0 : index
    %c0_76 = arith.constant 0 : index
    %c0_77 = arith.constant 0 : index
    %68 = vector.load %arg7[%c0_75, %c0_76, %c0_77] : memref<1x288x128xf32, #tpu.memory_space<vmem>>, vector<1x288x128xf32>
    %69 = vector.shape_cast %68 : vector<1x288x128xf32> to vector<288x128xf32>
    %70 = arith.addf %67, %69 : vector<288x128xf32>
    %cst_78 = arith.constant 0.000000e+00 : f32
    %71 = vector.broadcast %cst_78 : f32 to vector<288x128xf32>
    %72 = arith.maximumf %70, %71 : vector<288x128xf32>
    %c0_79 = arith.constant 0 : index
    %c0_80 = arith.constant 0 : index
    %c0_81 = arith.constant 0 : index
    %73 = vector.load %arg8[%c0_79, %c0_80, %c0_81] : memref<1x288x128xf32, #tpu.memory_space<vmem>>, vector<1x288x128xf32>
    %74 = vector.shape_cast %73 : vector<1x288x128xf32> to vector<288x128xf32>
    %75 = vector.shape_cast %72 : vector<288x128xf32> to vector<1x288x128xf32>
    tpu.vector_store %arg8[%c0_79, %c0_80, %c0_81], %75 {strides = array<i32>} : memref<1x288x128xf32, #tpu.memory_space<vmem>>, vector<1x288x128xf32>,
    return
  }
  func.func @transform_0(%arg0: i32, %arg1: i32, %arg2: i32) -> (i32, i32, i32, i32) {
    %c0_i32 = arith.constant 0 : i32
    %c0_i32_0 = arith.constant 0 : i32
    %c0_i32_1 = arith.constant 0 : i32
    return %arg0, %c0_i32, %c0_i32_0, %arg2 : i32, i32, i32, i32
  }
  func.func @transform_1(%arg0: i32, %arg1: i32, %arg2: i32) -> (i32, i32, i32, i32) {
    %c0_i32 = arith.constant 0 : i32
    %c0_i32_0 = arith.constant 0 : i32
    %c0_i32_1 = arith.constant 0 : i32
    return %c0_i32, %c0_i32_0, %arg2, %arg1 : i32, i32, i32, i32
  }
  func.func @transform_2(%arg0: i32, %arg1: i32, %arg2: i32) -> (i32, i32) {
    %c0_i32 = arith.constant 0 : i32
    %c0_i32_0 = arith.constant 0 : i32
    return %c0_i32, %arg1 : i32, i32
  }
  func.func @transform_3(%arg0: i32, %arg1: i32, %arg2: i32) -> (i32, i32) {
    %c0_i32 = arith.constant 0 : i32
    %c0_i32_0 = arith.constant 0 : i32
    return %c0_i32, %arg1 : i32, i32
  }
  func.func @transform_4(%arg0: i32, %arg1: i32, %arg2: i32) -> (i32, i32, i32) {
    %c0_i32 = arith.constant 0 : i32
    %c0_i32_0 = arith.constant 0 : i32
    return %arg0, %c0_i32, %arg1 : i32, i32, i32
  }
  func.func @transform_5(%arg0: i32, %arg1: i32, %arg2: i32) -> (i32, i32, i32) {
    %c0_i32 = arith.constant 0 : i32
    %c0_i32_0 = arith.constant 0 : i32
    return %arg0, %c0_i32, %arg1 : i32, i32, i32
  }
}

</mosaic_0001>

<bundles_post_ra>
// kernel: resblock_forward.2
= control target key start
LH: loop header
LB: loop body
LE: loop exit
PB: predicated region body
PF: predicated region fallthrough
CT: control target
= control target key end

     0   :  { %s4706_s15 = smov 0   ;;  %s4708_s16 = smov 0   ;;  %s5538_s0 = inlined_call_operand.vmem [shape: f32[2,1,342,32], index: 0, kind: input, shape index: {}]   ;;  %s5539_s1 = inlined_call_operand.vmem [shape: bf16[3,3,32,128], index: 1, kind: input, shape index: {}]   ;;  %s5540_s2 = inlined_call_operand.vmem [shape: f32[1,128], index: 2, kind: input, shape index: {}]   ;;  %s5541_s3 = inlined_call_operand.vmem [shape: f32[1,128], index: 3, kind: input, shape index: {}]   ;;  %s5542_s4 = inlined_call_operand.vmem [shape: f32[2,288,128], index: 4, kind: output, shape index: {}]  }
   0x1   :  { %s4710_s17 = smov 0  }
   0x2 LB: > { %s33_s18 = sadd.s32 1, %s4675_s16  ;;  %p3562_p0 = scmp.ge.s32.totalorder %s4679_s17, 1  ;;  %s4679_s17 = sphi %s4710_s17, %s14_s17   ;;  %s4675_s16 = sphi %s4708_s16, %s5544_s16   ;;  %s4671_s15 = sphi %s4706_s15, %s5543_s15  }
   0x3   : > { %p35_p1 = scmp.ge.s32.totalorder %s33_s18, 2  ;;  %p220_p2 = scmp.lt.s32.totalorder %s4679_s17, 3 }
   0x5   : > { %s5546_s18 = smov (%p35_p1, %s33_s18), 0  ;;  %p221_p3 = pnand %p3562_p0, %p220_p2 }
   0x6   : > { %v4639_v0 = vld [vmem:[%s5539_s1 + $0x10] sm:$0xff] (!%p221_p3)   ;;  %p266_p4 = scmp.lt.s32.totalorder (!%p221_p3), %s4671_s15, 1  ;;  %v4730_v1 = vld [vmem:[%s5539_s1 + $0x40] sm:$0xff] (!%p221_p3)   ;;  %v4641_v2 = vld [vmem:[%s5539_s1 + $0x18] sm:$0xff] (!%p221_p3)   ;;  %vm427_vm0 = vcmask (!%p221_p3), 261120  }
   0x7   : > { %224 = sbr.rel (%p221_p3) target bundleno = 567 (0x237), region = 36  ;;  %3961 = vmatprep.subr.bf16.mxu1 (!%p221_p3), %v4639_v0  ;;  %4121 = vmatprep.subr.bf16.mxu0 (!%p221_p3), %v4730_v1  ;;  %v4741_v3 = vld [vmem:[%s5539_s1 + $0x48] sm:$0xff] (!%p221_p3)   ;;  %v4643_v4 = vld [vmem:[%s5539_s1 + $0x50] sm:$0xff] (!%p221_p3)   ;;  %v4644_v5 = vld [vmem:[%s5539_s1] sm:$0xff] (!%p221_p3)  }
   0x8   : > { %3962 = vmatpush3.bf16.msra.mxu1 (!%p221_p3), %v4639_v0  ;;  %4122 = vmatpush3.bf16.msra.mxu0 (!%p221_p3), %v4730_v1  ;;  %v4645_v13 = vld [vmem:[%s5539_s1 + $0x58] sm:$0xff] (!%p221_p3)   ;;  %v4802_v46 = vld [vmem:[%s5539_s1 + $0x60] sm:$0xff] (!%p221_p3)   ;;  %v4647_v49 = vld [vmem:[%s5539_s1 + $0x8] sm:$0xff] (!%p221_p3)  }
   0x9   : > { %3963 = vmatprep.subr.bf16.mxu1 (!%p221_p3), %v4641_v2  ;;  %4123 = vmatprep.subr.bf16.mxu0 (!%p221_p3), %v4741_v3 }
   0xc   : > { %3964 = vmatpush3.bf16.msra.mxu1 (!%p221_p3), %v4641_v2  ;;  %4124 = vmatpush3.bf16.msra.mxu0 (!%p221_p3), %v4741_v3 }
   0xd   : > { %4001 = vmatprep.subr.bf16.mxu1 (!%p221_p3), %v4644_v5  ;;  %4161 = vmatprep.subr.bf16.mxu0 (!%p221_p3), %v4643_v4 }
   0xe   : > { %s5548_s15 = smov (!%p266_p4, %s4671_s15), 1 }
   0xf   : > { %s4613_s27 = smul.u32 344, %s5548_s15 }
  0x10   : > { %s4614_s13 = smul.u32 288, %s5548_s15 }
  0x11   : > { %s4755_s8 = scalar_lea.vmem %s5538_s0, %s4613_s27 }
  0x12   : > { %v356_v6 = vld [vmem:[%s4755_s8 + $0x1] sm:$0xff]  ;;  %v357_v7 = vld [vmem:[%s4755_s8 + $0x9] sm:$0xff]  ;;  %v1578_v8 = vld [vmem:[%s4755_s8 + $0x13] sm:$0xff]  ;;  %s5412_s21 = scalar_lea.vmem %s5542_s4, %s4614_s13 }
  0x13   : > { %v392_v9 = vpack.c.bf16 %v357_v7, %v356_v6  ;;  %v1579_v10 = vld [vmem:[%s4755_s8 + $0x1b] sm:$0xff]  ;;  %v358_v11 = vld [vmem:[%s4755_s8 + $0x11] sm:$0xff]  ;;  %v1580_v16 = vld [vmem:[%s4755_s8 + $0x23] sm:$0xff] }
  0x14   : > { %v359_v12 = vld [vmem:[%s4755_s8 + $0x19] sm:$0xff]  ;;  %v1614_v14 = vpack.c.bf16 %v1579_v10, %v1578_v8  ;;  %v1581_v17 = vld [vmem:[%s4755_s8 + $0x2b] sm:$0xff]  ;;  %v360_v18 = vld [vmem:[%s4755_s8 + $0x21] sm:$0xff] }
  0x15   : > { %v393_v15 = vpack.c.bf16 %v359_v12, %v358_v11  ;;  %3965 = vmatprep.mubr.msk.bf16.mxu1 %vm427_vm0, %v392_v9  ;;  %v1615_v19 = vpack.c.bf16 %v1581_v17, %v1580_v16  ;;  %v361_v20 = vld [vmem:[%s4755_s8 + $0x29] sm:$0xff]  ;;  %v1582_v21 = vld [vmem:[%s4755_s8 + $0x33] sm:$0xff]  ;;  %v1583_v22 = vld [vmem:[%s4755_s8 + $0x3b] sm:$0xff] }
  0x16   : > { %4125 = vmatprep.mubr.msk.bf16.mxu0 %vm427_vm0, %v1614_v14  ;;  %v394_v23 = vpack.c.bf16 %v361_v20, %v360_v18  ;;  %v1616_v24 = vpack.c.bf16 %v1583_v22, %v1582_v21  ;;  %v362_v25 = vld [vmem:[%s4755_s8 + $0x31] sm:$0xff]  ;;  %v363_v26 = vld [vmem:[%s4755_s8 + $0x39] sm:$0xff]  ;;  %v1584_v27 = vld [vmem:[%s4755_s8 + $0x43] sm:$0xff] }
  0x17   : > { %3966 = vmatmul.mubr.msk.bf16.vlgmr.msra.gmra.mrb[0].mxu1 %vm427_vm0, %v393_v15  ;;  %4126 = vmatmul.mubr.msk.bf16.vlgmr.msra.gmra.mrb[0].mxu0 %vm427_vm0, %v1615_v19  ;;  %v1585_v28 = vld [vmem:[%s4755_s8 + $0x4b] sm:$0xff]  ;;  %v364_v29 = vld [vmem:[%s4755_s8 + $0x41] sm:$0xff]  ;;  %v1586_v31 = vld [vmem:[%s4755_s8 + $0x53] sm:$0xff]  ;;  %v395_v33 = vpack.c.bf16 %v363_v26, %v362_v25 }
  0x18   : > { %4002 = vmatpush3.bf16.msra.mxu1 %v4644_v5  ;;  %4162 = vmatpush3.bf16.msra.mxu0 %v4643_v4  ;;  %v365_v30 = vld [vmem:[%s4755_s8 + $0x49] sm:$0xff]  ;;  %v1587_v32 = vld [vmem:[%s4755_s8 + $0x5b] sm:$0xff]  ;;  %v1617_v34 = vpack.c.bf16 %v1585_v28, %v1584_v27  ;;  %v366_v37 = vld [vmem:[%s4755_s8 + $0x51] sm:$0xff] }
  0x19   : > { %3969 = vmatprep.mubr.msk.bf16.mxu1 %vm427_vm0, %v394_v23  ;;  %4129 = vmatprep.mubr.msk.bf16.mxu0 %vm427_vm0, %v1616_v24  ;;  %v396_v35 = vpack.c.bf16 %v365_v30, %v364_v29  ;;  %v1618_v36 = vpack.c.bf16 %v1587_v32, %v1586_v31  ;;  %v367_v38 = vld [vmem:[%s4755_s8 + $0x59] sm:$0xff]  ;;  %v1588_v39 = vld [vmem:[%s4755_s8 + $0x63] sm:$0xff]  ;;  %v1589_v40 = vld [vmem:[%s4755_s8 + $0x6b] sm:$0xff] }
  0x1a   : > { %4163 = vmatprep.subr.bf16.mxu0 %v4645_v13  ;;  %v368_v41 = vld [vmem:[%s4755_s8 + $0x61] sm:$0xff]  ;;  %v369_v42 = vld [vmem:[%s4755_s8 + $0x69] sm:$0xff]  ;;  %v1590_v43 = vld [vmem:[%s4755_s8 + $0x73] sm:$0xff]  ;;  %v397_v45 = vpack.c.bf16 %v367_v38, %v366_v37  ;;  %v1619_v47 = vpack.c.bf16 %v1589_v40, %v1588_v39  ;;  %4003 = vmatprep.subr.bf16.mxu1 %v4647_v49 }
  0x1b   : > { %v1591_v44 = vld [vmem:[%s4755_s8 + $0x7b] sm:$0xff]  ;;  %v398_v48 = vpack.c.bf16 %v369_v42, %v368_v41  ;;  %v370_v51 = vld [vmem:[%s4755_s8 + $0x71] sm:$0xff]  ;;  %v1592_v53 = vld [vmem:[%s4755_s8 + $0x83] sm:$0xff] }
  0x1c   : > { %4164 = vmatpush3.bf16.msra.mxu0 %v4645_v13  ;;  %v1620_v50 = vpack.c.bf16 %v1591_v44, %v1590_v43  ;;  %v371_v52 = vld [vmem:[%s4755_s8 + $0x79] sm:$0xff]  ;;  %v1593_v54 = vld [vmem:[%s4755_s8 + $0x8b] sm:$0xff]  ;;  %v372_v55 = vld [vmem:[%s4755_s8 + $0x81] sm:$0xff]  ;;  %4004 = vmatpush3.bf16.msra.mxu1 %v4647_v49 }
  0x1d   : > { %4201 = vmatprep.subr.bf16.mxu0 %v4802_v46  ;;  %v373_v56 = vld [vmem:[%s4755_s8 + $0x89] sm:$0xff]  ;;  %v1594_v57 = vld [vmem:[%s4755_s8 + $0x93] sm:$0xff]  ;;  %v1595_v58 = vld [vmem:[%s4755_s8 + $0x9b] sm:$0xff]  ;;  %v399_v59 = vpack.c.bf16 %v371_v52, %v370_v51  ;;  %v1621_v60 = vpack.c.bf16 %v1593_v54, %v1592_v53 }
  0x1e   : > { %v400_v61 = vpack.c.bf16 %v373_v56, %v372_v55  ;;  %v1622_v62 = vpack.c.bf16 %v1595_v58, %v1594_v57  ;;  %v374_v63 = vld [vmem:[%s4755_s8 + $0x91] sm:$0xff]  ;;  %v375_v0 = vld [vmem:[%s4755_s8 + $0x99] sm:$0xff]  ;;  %v1596_v2 = vld [vmem:[%s4755_s8 + $0xa3] sm:$0xff] }
  0x1f   : > { %3970 = vmatmul.mubr.msk.bf16.gmra.mrb[4].mxu1 %vm427_vm0, %v395_v33  ;;  %4130 = vmatmul.mubr.msk.bf16.gmra.mrb[4].mxu0 %vm427_vm0, %v1617_v34  ;;  %v1597_v4 = vld [vmem:[%s4755_s8 + $0xab] sm:$0xff]  ;;  %v376_v5 = vld [vmem:[%s4755_s8 + $0xa1] sm:$0xff]  ;;  %v1916_v7 = vld [vmem:[%s4755_s8 + $0x14] sm:$0xff]  ;;  %v401_v9 = vpack.c.bf16 %v375_v0, %v374_v63 }
  0x20   : > { %3973 = vmatprep.mubr.msk.bf16.mxu1 %vm427_vm0, %v396_v35  ;;  %4133 = vmatprep.mubr.msk.bf16.mxu0 %vm427_vm0, %v1618_v36  ;;  %v377_v6 = vld [vmem:[%s4755_s8 + $0xa9] sm:$0xff]  ;;  %v1917_v8 = vld [vmem:[%s4755_s8 + $0x1c] sm:$0xff]  ;;  %v1623_v11 = vpack.c.bf16 %v1597_v4, %v1596_v2  ;;  %v378_v14 = vld [vmem:[%s4755_s8 + $0xb1] sm:$0xff] }
  0x21   : > { %v4835_v10 = vld [vmem:[%s5539_s1 + $0x20] sm:$0xff]   ;;  %v402_v12 = vpack.c.bf16 %v377_v6, %v376_v5  ;;  %v1952_v13 = vpack.c.bf16 %v1917_v8, %v1916_v7  ;;  %v1919_v17 = vld [vmem:[%s4755_s8 + $0x2c] sm:$0xff]  ;;  %v1920_v20 = vld [vmem:[%s4755_s8 + $0x34] sm:$0xff] }
  0x22   : > { %4041 = vmatprep.subr.bf16.mxu1 %v4835_v10  ;;  %v379_v15 = vld [vmem:[%s4755_s8 + $0xb9] sm:$0xff]  ;;  %v1918_v16 = vld [vmem:[%s4755_s8 + $0x24] sm:$0xff]  ;;  %v382_v27 = vld [vmem:[%s4755_s8 + $0xd1] sm:$0xff] }
  0x23   : > { %v380_v18 = vld [vmem:[%s4755_s8 + $0xc1] sm:$0xff]  ;;  %v381_v19 = vld [vmem:[%s4755_s8 + $0xc9] sm:$0xff]  ;;  %v403_v22 = vpack.c.bf16 %v379_v15, %v378_v14  ;;  %v4850_v23 = vpack.c.bf16 %v1919_v17, %v1918_v16  ;;  %v383_v28 = vld [vmem:[%s4755_s8 + $0xd9] sm:$0xff] }
  0x24   : > { %v1921_v21 = vld [vmem:[%s4755_s8 + $0x3c] sm:$0xff]  ;;  %v404_v24 = vpack.c.bf16 %v381_v19, %v380_v18  ;;  %v4648_v26 = vld [vmem:[%s5539_s1 + $0x68] sm:$0xff]   ;;  %v1924_v33 = vld [vmem:[%s4755_s8 + $0x54] sm:$0xff]  ;;  %v405_v36 = vpack.c.bf16 %v383_v28, %v382_v27 }
  0x25   : > { %v4852_v25 = vpack.c.bf16 %v1921_v21, %v1920_v20  ;;  %v1922_v29 = vld [vmem:[%s4755_s8 + $0x44] sm:$0xff]  ;;  %v1923_v30 = vld [vmem:[%s4755_s8 + $0x4c] sm:$0xff]  ;;  %v1925_v34 = vld [vmem:[%s4755_s8 + $0x5c] sm:$0xff] }
  0x26   : > { %v384_v31 = vld [vmem:[%s4755_s8 + $0xe1] sm:$0xff]  ;;  %v385_v32 = vld [vmem:[%s4755_s8 + $0xe9] sm:$0xff]  ;;  %v4877_v37 = vpack.c.bf16 %v1923_v30, %v1922_v29  ;;  %v4879_v39 = vpack.c.bf16 %v1925_v34, %v1924_v33  ;;  %v386_v40 = vld [vmem:[%s4755_s8 + $0xf1] sm:$0xff] }
  0x27   : > { %3974 = vmatmul.mubr.msk.bf16.gmra.mrb[8].mxu1 %vm427_vm0, %v397_v45  ;;  %4134 = vmatmul.mubr.msk.bf16.gmra.mrb[8].mxu0 %vm427_vm0, %v1619_v47  ;;  %v4875_v35 = vld [vmem:[%s5539_s1 + $0x70] sm:$0xff]   ;;  %v406_v38 = vpack.c.bf16 %v385_v32, %v384_v31  ;;  %v387_v41 = vld [vmem:[%s4755_s8 + $0xf9] sm:$0xff]  ;;  %v1926_v42 = vld [vmem:[%s4755_s8 + $0x64] sm:$0xff] }
  0x28   : > { %3977 = vmatprep.mubr.msk.bf16.mxu1 %vm427_vm0, %v398_v48  ;;  %4137 = vmatprep.mubr.msk.bf16.mxu0 %vm427_vm0, %v1620_v50  ;;  %v1927_v43 = vld [vmem:[%s4755_s8 + $0x6c] sm:$0xff]  ;;  %v388_v44 = vld [vmem:[%s4755_s8 + $0x101] sm:$0xff]  ;;  %v407_v48 = vpack.c.bf16 %v387_v41, %v386_v40  ;;  %v391_v53 = vld [vmem:[%s4755_s8 + $0x119] sm:$0xff] }
  0x29   : > { %v389_v45 = vld [vmem:[%s4755_s8 + $0x109] sm:$0xff]  ;;  %v1929_v47 = vld [vmem:[%s4755_s8 + $0x7c] sm:$0xff]  ;;  %v4896_v49 = vpack.c.bf16 %v1927_v43, %v1926_v42  ;;  %v390_v52 = vld [vmem:[%s4755_s8 + $0x111] sm:$0xff] }
  0x2a   : > { %v408_v50 = vpack.c.bf16 %v389_v45, %v388_v44  ;;  %v1930_v54 = vld [vmem:[%s4755_s8 + $0x84] sm:$0xff]  ;;  %v1931_v55 = vld [vmem:[%s4755_s8 + $0x8c] sm:$0xff]  ;;  %v1932_v58 = vld [vmem:[%s4755_s8 + $0x94] sm:$0xff] }
  0x2b   : > { %v298_v56 = vld [vmem:[%s4755_s8] sm:$0xff]  ;;  %v299_v57 = vld [vmem:[%s4755_s8 + $0x8] sm:$0xff]  ;;  %v300_v0 = vld [vmem:[%s4755_s8 + $0x10] sm:$0xff] }
  0x2c   : > { %v301_v2 = vld [vmem:[%s4755_s8 + $0x18] sm:$0xff]  ;;  %v1934_v4 = vld [vmem:[%s4755_s8 + $0xa4] sm:$0xff]  ;;  %v1935_v5 = vld [vmem:[%s4755_s8 + $0xac] sm:$0xff] }
  0x2d   : > { %v302_v6 = vld [vmem:[%s4755_s8 + $0x20] sm:$0xff]  ;;  %v303_v7 = vld [vmem:[%s4755_s8 + $0x28] sm:$0xff]  ;;  %v1936_v8 = vld [vmem:[%s4755_s8 + $0xb4] sm:$0xff] }
  0x2e   : > { %v4651_v15 = vld [vmem:[%s5539_s1 + $0x28] sm:$0xff]   ;;  %v304_v16 = vld [vmem:[%s4755_s8 + $0x30] sm:$0xff]  ;;  %v305_v17 = vld [vmem:[%s4755_s8 + $0x38] sm:$0xff] }
  0x2f   : > { %3978 = vmatmul.mubr.msk.bf16.gmra.mrb[12].mxu1 %vm427_vm0, %v399_v59  ;;  %4138 = vmatmul.mubr.msk.bf16.gmra.mrb[12].mxu0 %vm427_vm0, %v1621_v60  ;;  %v1933_v59 = vld [vmem:[%s4755_s8 + $0x9c] sm:$0xff]  ;;  %v409_v60 = vpack.c.bf16 %v391_v53, %v390_v52  ;;  %v1938_v18 = vld [vmem:[%s4755_s8 + $0xc4] sm:$0xff]  ;;  %v1939_v19 = vld [vmem:[%s4755_s8 + $0xcc] sm:$0xff]  ;;  %v337_v27 = vpack.c.bf16 %v305_v17, %v304_v16 }
  0x30   : > { %3981 = vmatprep.mubr.msk.bf16.mxu1 %vm427_vm0, %v400_v61  ;;  %4141 = vmatprep.mubr.msk.bf16.mxu0 %vm427_vm0, %v1622_v62  ;;  %v4914_v61 = vpack.c.bf16 %v1931_v55, %v1930_v54  ;;  %v334_v62 = vpack.c.bf16 %v299_v57, %v298_v56  ;;  %v4916_v63 = vpack.c.bf16 %v1933_v59, %v1932_v58  ;;  %v306_v20 = vld [vmem:[%s4755_s8 + $0x40] sm:$0xff]  ;;  %v307_v21 = vld [vmem:[%s4755_s8 + $0x48] sm:$0xff]  ;;  %v308_v30 = vld [vmem:[%s4755_s8 + $0x50] sm:$0xff] }
  0x31   : > { %v4959_v28 = vpack.c.bf16 %v1939_v19, %v1938_v18  ;;  %v309_v31 = vld [vmem:[%s4755_s8 + $0x58] sm:$0xff]  ;;  %v1942_v32 = vld [vmem:[%s4755_s8 + $0xe4] sm:$0xff]  ;;  %v1943_v33 = vld [vmem:[%s4755_s8 + $0xec] sm:$0xff] }
  0x32   : > { %v310_v34 = vld [vmem:[%s4755_s8 + $0x60] sm:$0xff]  ;;  %v339_v41 = vpack.c.bf16 %v309_v31, %v308_v30  ;;  %v4978_v42 = vpack.c.bf16 %v1943_v33, %v1942_v32  ;;  %v312_v45 = vld [vmem:[%s4755_s8 + $0x70] sm:$0xff]  ;;  %v315_v52 = vld [vmem:[%s4755_s8 + $0x88] sm:$0xff] }
  0x33   : > { %v1945_v40 = vld [vmem:[%s4755_s8 + $0xfc] sm:$0xff]  ;;  %v1948_v53 = vld [vmem:[%s4755_s8 + $0x114] sm:$0xff]  ;;  %v903_v32 = vld [vmem:[%s4755_s8 + $0xa] sm:$0xff] }
  0x34   : > { %v1949_v54 = vld [vmem:[%s4755_s8 + $0x11c] sm:$0xff]  ;;  %v316_v59 = vld [vmem:[%s4755_s8 + $0x90] sm:$0xff] }
  0x35   : > { %v4998_v58 = vpack.c.bf16 %v1949_v54, %v1948_v53  ;;  %v4652_v17 = vld [vmem:[%s5539_s1 + $0x78] sm:$0xff]   ;;  %v324_v18 = vld [vmem:[%s4755_s8 + $0xd0] sm:$0xff]  ;;  %v918_v54 = vld [vmem:[%s4755_s8 + $0x82] sm:$0xff] }
  0x36   : > { %v325_v19 = vld [vmem:[%s4755_s8 + $0xd8] sm:$0xff] }
  0x37   : > { %3982 = vmatmul.mubr.msk.bf16.gmra.mrb[16].mxu1 %vm427_vm0, %v401_v9  ;;  %4142 = vmatmul.mubr.msk.bf16.gmra.mrb[16].mxu0 %vm427_vm0, %v1623_v11  ;;  %v1937_v9 = vld [vmem:[%s4755_s8 + $0xbc] sm:$0xff]  ;;  %v335_v11 = vpack.c.bf16 %v301_v2, %v300_v0  ;;  %v1951_v0 = vld [vmem:[%s4755_s8 + $0x12c] sm:$0xff] }
  0x38   : > { %3985 = vmatprep.mubr.msk.bf16.mxu1 %vm427_vm0, %v402_v12  ;;  %4165 = vmatprep.mubr.msk.bf16.mxu0 %vm427_vm0, %v1952_v13  ;;  %v4932_v12 = vpack.c.bf16 %v1935_v5, %v1934_v4  ;;  %v336_v13 = vpack.c.bf16 %v303_v7, %v302_v6  ;;  %v4934_v14 = vpack.c.bf16 %v1937_v9, %v1936_v8  ;;  %v318_v2 = vld [vmem:[%s4755_s8 + $0xa0] sm:$0xff]  ;;  %v319_v4 = vld [vmem:[%s4755_s8 + $0xa8] sm:$0xff]  ;;  %v320_v8 = vld [vmem:[%s4755_s8 + $0xb0] sm:$0xff] }
  0x39   : > { %v344_v7 = vpack.c.bf16 %v319_v4, %v318_v2  ;;  %v321_v9 = vld [vmem:[%s4755_s8 + $0xb8] sm:$0xff]  ;;  %v923_v2 = vld [vmem:[%s4755_s8 + $0xaa] sm:$0xff] }
  0x3a   : > { %v333_v31 = vld [vmem:[%s4755_s8 + $0x118] sm:$0xff]  ;;  %v2592_v4 = vld [vmem:[%s4755_s8 + $0x25] sm:$0xff] }
  0x3f   : > { %3986 = vmatmul.mubr.msk.bf16.gmra.mrb[20].mxu1 %vm427_vm0, %v403_v22  ;;  %4166 = vmatmul.mubr.msk.bf16.vlgmr.msra.gmra.mrb[0].mxu0 %vm427_vm0, %v4850_v23  ;;  %v1940_v22 = vld [vmem:[%s4755_s8 + $0xd4] sm:$0xff] }
  0x40   : > { %3989 = vmatprep.mubr.msk.bf16.mxu1 %vm427_vm0, %v404_v24  ;;  %4202 = vmatpush3.bf16.msra.mxu0 %v4802_v46  ;;  %v1928_v46 = vld [vmem:[%s4755_s8 + $0x74] sm:$0xff]  ;;  %v1941_v24 = vld [vmem:[%s4755_s8 + $0xdc] sm:$0xff] }
  0x41   : > { %4169 = vmatprep.mubr.msk.bf16.mxu0 %vm427_vm0, %v4852_v25  ;;  %4203 = vmatprep.subr.bf16.mxu0 %v4648_v26  ;;  %v4898_v51 = vpack.c.bf16 %v1929_v47, %v1928_v46  ;;  %v4961_v29 = vpack.c.bf16 %v1941_v24, %v1940_v22  ;;  %v313_v46 = vld [vmem:[%s4755_s8 + $0x78] sm:$0xff]  ;;  %v1946_v47 = vld [vmem:[%s4755_s8 + $0x104] sm:$0xff] }
  0x42   : > { %v341_v55 = vpack.c.bf16 %v313_v46, %v312_v45  ;;  %v330_v24 = vld [vmem:[%s4755_s8 + $0x100] sm:$0xff]  ;;  %v911_v46 = vld [vmem:[%s4755_s8 + $0x4a] sm:$0xff] }
  0x43   : > { %v910_v45 = vld [vmem:[%s4755_s8 + $0x42] sm:$0xff] }
  0x44   : > { %4204 = vmatpush3.bf16.msra.mxu0 %v4648_v26  ;;  %v4957_v26 = vld [vmem:[%s5539_s1 + $0x30] sm:$0xff]  }
  0x45   : > { %4241 = vmatprep.subr.bf16.mxu0 %v4875_v35 }
  0x47   : > { %3990 = vmatmul.mubr.msk.bf16.gmra.mrb[24].mxu1 %vm427_vm0, %v405_v36  ;;  %4170 = vmatmul.mubr.msk.bf16.gmra.mrb[4].mxu0 %vm427_vm0, %v4877_v37  ;;  %v311_v36 = vld [vmem:[%s4755_s8 + $0x68] sm:$0xff] }
  0x48   : > { %3993 = vmatprep.mubr.msk.bf16.mxu1 %vm427_vm0, %v406_v38  ;;  %4173 = vmatprep.mubr.msk.bf16.mxu0 %vm427_vm0, %v4879_v39  ;;  %v1944_v38 = vld [vmem:[%s4755_s8 + $0xf4] sm:$0xff]  ;;  %v340_v43 = vpack.c.bf16 %v311_v36, %v310_v34 }
  0x49   : > { %v4980_v44 = vpack.c.bf16 %v1945_v40, %v1944_v38  ;;  %v905_v36 = vld [vmem:[%s4755_s8 + $0x1a] sm:$0xff]  ;;  %v907_v38 = vld [vmem:[%s4755_s8 + $0x2a] sm:$0xff] }
  0x4f   : > { %3994 = vmatmul.mubr.msk.bf16.gmra.mrb[28].mxu1 %vm427_vm0, %v407_v48  ;;  %4174 = vmatmul.mubr.msk.bf16.gmra.mrb[8].mxu0 %vm427_vm0, %v4896_v49  ;;  %v1947_v48 = vld [vmem:[%s4755_s8 + $0x10c] sm:$0xff] }
  0x50   : > { %3997 = vmatprep.mubr.msk.bf16.mxu1 %vm427_vm0, %v408_v50  ;;  %4177 = vmatprep.mubr.msk.bf16.mxu0 %vm427_vm0, %v4898_v51  ;;  %v314_v50 = vld [vmem:[%s4755_s8 + $0x80] sm:$0xff]  ;;  %v4996_v56 = vpack.c.bf16 %v1947_v48, %v1946_v47 }
  0x51   : > { %v342_v57 = vpack.c.bf16 %v315_v52, %v314_v50  ;;  %v914_v48 = vld [vmem:[%s4755_s8 + $0x62] sm:$0xff]  ;;  %v915_v50 = vld [vmem:[%s4755_s8 + $0x6a] sm:$0xff] }
  0x52   : > { %v5113_v53 = vpack.c.bf16 %v915_v50, %v914_v48  ;;  %v936_v50 = vld [vmem:[%s4755_s8 + $0x112] sm:$0xff] }
  0x57   : > { %3998 = vmatmul.mubr.msk.bf16.gmra.mrb[32].mxu1 %vm427_vm0, %v409_v60  ;;  %4178 = vmatmul.mubr.msk.bf16.gmra.mrb[12].mxu0 %vm427_vm0, %v4914_v61  ;;  %v317_v60 = vld [vmem:[%s4755_s8 + $0x98] sm:$0xff] }
  0x58   : > { %4005 = vmatprep.mubr.msk.bf16.mxu1 %vm427_vm0, %v334_v62  ;;  %4181 = vmatprep.mubr.msk.bf16.mxu0 %vm427_vm0, %v4916_v63  ;;  %v1950_v62 = vld [vmem:[%s4755_s8 + $0x124] sm:$0xff]  ;;  %v343_v5 = vpack.c.bf16 %v317_v60, %v316_v59  ;;  %v921_v60 = vld [vmem:[%s4755_s8 + $0x9a] sm:$0xff] }
  0x59   : > { %v5012_v6 = vpack.c.bf16 %v1951_v0, %v1950_v62  ;;  %v2289_v62 = vld [vmem:[%s4755_s8 + $0x13c] sm:$0xff] }
  0x5a   : > { %v922_v0 = vld [vmem:[%s4755_s8 + $0xa2] sm:$0xff] }
  0x5f   : > { %4006 = vmatmul.mubr.msk.bf16.vlgmr.msra.gmra.mrb[0].mxu1 %vm427_vm0, %v335_v11  ;;  %4182 = vmatmul.mubr.msk.bf16.gmra.mrb[16].mxu0 %vm427_vm0, %v4932_v12  ;;  %v322_v11 = vld [vmem:[%s4755_s8 + $0xc0] sm:$0xff] }
  0x60   : > { %4009 = vmatprep.mubr.msk.bf16.mxu1 %vm427_vm0, %v336_v13  ;;  %4185 = vmatprep.mubr.msk.bf16.mxu0 %vm427_vm0, %v4934_v14  ;;  %v323_v13 = vld [vmem:[%s4755_s8 + $0xc8] sm:$0xff] }
  0x61   : > { %4042 = vmatpush3.bf16.msra.mxu1 %v4835_v10  ;;  %v338_v10 = vpack.c.bf16 %v307_v21, %v306_v20  ;;  %v346_v16 = vpack.c.bf16 %v323_v13, %v322_v11  ;;  %v327_v20 = vld [vmem:[%s4755_s8 + $0xe8] sm:$0xff]  ;;  %v347_v21 = vpack.c.bf16 %v325_v19, %v324_v18  ;;  %v925_v11 = vld [vmem:[%s4755_s8 + $0xba] sm:$0xff] }
  0x62   : > { %4043 = vmatprep.subr.bf16.mxu1 %v4651_v15  ;;  %v2594_v13 = vld [vmem:[%s4755_s8 + $0x35] sm:$0xff]  ;;  %v2596_v18 = vld [vmem:[%s4755_s8 + $0x45] sm:$0xff]  ;;  %v2597_v19 = vld [vmem:[%s4755_s8 + $0x4d] sm:$0xff] }
  0x65   : > { %4044 = vmatpush3.bf16.msra.mxu1 %v4651_v15  ;;  %v345_v15 = vpack.c.bf16 %v321_v9, %v320_v8  ;;  %v5149_v8 = vpack.c.bf16 %v923_v2, %v922_v0  ;;  %v2610_v0 = vld [vmem:[%s4755_s8 + $0xb5] sm:$0xff]  ;;  %v2611_v2 = vld [vmem:[%s4755_s8 + $0xbd] sm:$0xff] }
  0x66   : > { %4081 = vmatprep.subr.bf16.mxu1 %v4957_v26 }
  0x67   : > { %4010 = vmatmul.mubr.msk.bf16.gmra.mrb[4].mxu1 %vm427_vm0, %v337_v27  ;;  %4186 = vmatmul.mubr.msk.bf16.gmra.mrb[20].mxu0 %vm427_vm0, %v4959_v28  ;;  %v331_v27 = vld [vmem:[%s4755_s8 + $0x108] sm:$0xff] }
  0x68   : > { %4013 = vmatprep.mubr.msk.bf16.mxu1 %vm427_vm0, %v338_v10  ;;  %4189 = vmatprep.mubr.msk.bf16.mxu0 %vm427_vm0, %v4961_v29  ;;  %v350_v30 = vpack.c.bf16 %v331_v27, %v330_v24  ;;  %v929_v24 = vld [vmem:[%s4755_s8 + $0xda] sm:$0xff] }
  0x69   : > { %v2598_v27 = vld [vmem:[%s4755_s8 + $0x55] sm:$0xff] }
  0x6f   : > { %4014 = vmatmul.mubr.msk.bf16.gmra.mrb[8].mxu1 %vm427_vm0, %v339_v41  ;;  %4190 = vmatmul.mubr.msk.bf16.gmra.mrb[24].mxu0 %vm427_vm0, %v4978_v42 }
  0x70   : > { %4017 = vmatprep.mubr.msk.bf16.mxu1 %vm427_vm0, %v340_v43  ;;  %4193 = vmatprep.mubr.msk.bf16.mxu0 %vm427_vm0, %v4980_v44  ;;  %v4655_v43 = vld [vmem:[%s5539_s1 + $0x38] sm:$0xff]  }
  0x77   : > { %4018 = vmatmul.mubr.msk.bf16.gmra.mrb[12].mxu1 %vm427_vm0, %v341_v55  ;;  %4194 = vmatmul.mubr.msk.bf16.gmra.mrb[28].mxu0 %vm427_vm0, %v4996_v56  ;;  %v919_v55 = vld [vmem:[%s4755_s8 + $0x8a] sm:$0xff] }
  0x78   : > { %4021 = vmatprep.mubr.msk.bf16.mxu1 %vm427_vm0, %v342_v57  ;;  %4197 = vmatprep.mubr.msk.bf16.mxu0 %vm427_vm0, %v4998_v58  ;;  %v5129_v59 = vpack.c.bf16 %v919_v55, %v918_v54  ;;  %v2607_v54 = vld [vmem:[%s4755_s8 + $0x9d] sm:$0xff]  ;;  %v2608_v55 = vld [vmem:[%s4755_s8 + $0xa5] sm:$0xff] }
  0x7f   : > { %4022 = vmatmul.mubr.msk.bf16.gmra.mrb[16].mxu1 %vm427_vm0, %v343_v5  ;;  %4198 = vmatmul.mubr.msk.bf16.gmra.mrb[32].mxu0 %vm427_vm0, %v5012_v6 }
  0x80   : > { %4025 = vmatprep.mubr.msk.bf16.mxu1 %vm427_vm0, %v344_v7  ;;  %4205 = vmatprep.mubr.msk.bf16.mxu0 %vm427_vm0, %v4850_v23  ;;  %v326_v23 = vld [vmem:[%s4755_s8 + $0xe0] sm:$0xff] }
  0x81   : > { %v348_v22 = vpack.c.bf16 %v327_v20, %v326_v23 }
  0x87   : > { %4026 = vmatmul.mubr.msk.bf16.gmra.mrb[20].mxu1 %vm427_vm0, %v345_v15  ;;  %4206 = vmatmul.mubr.msk.bf16.vlgmr.msra.gmra.mrb[0].mxu0 %vm427_vm0, %v4852_v25  ;;  %v5041_v25 = vld [vmem:[%s5539_s1 + $0x80] sm:$0xff]  }
  0x88   : > { %4029 = vmatprep.mubr.msk.bf16.mxu1 %vm427_vm0, %v346_v16  ;;  %4242 = vmatpush3.bf16.msra.mxu0 %v4875_v35  ;;  %v328_v35 = vld [vmem:[%s4755_s8 + $0xf0] sm:$0xff]  ;;  %v2595_v15 = vld [vmem:[%s4755_s8 + $0x3d] sm:$0xff] }
  0x89   : > { %4209 = vmatprep.mubr.msk.bf16.mxu0 %vm427_vm0, %v4877_v37  ;;  %4243 = vmatprep.subr.bf16.mxu0 %v4652_v17  ;;  %v329_v37 = vld [vmem:[%s4755_s8 + $0xf8] sm:$0xff]  ;;  %v926_v16 = vld [vmem:[%s4755_s8 + $0xc2] sm:$0xff]  ;;  %v2629_v20 = vpack.c.bf16 %v2595_v15, %v2594_v13  ;;  %v2617_v13 = vld [vmem:[%s4755_s8 + $0xed] sm:$0xff] }
  0x8a   : > { %v349_v10 = vpack.c.bf16 %v329_v37, %v328_v35  ;;  %v4656_v35 = vld [vmem:[%s5539_s1 + $0x88] sm:$0xff]   ;;  %v928_v37 = vld [vmem:[%s4755_s8 + $0xd2] sm:$0xff] }
  0x8c   : > { %4244 = vmatpush3.bf16.msra.mxu0 %v4652_v17  ;;  %v927_v17 = vld [vmem:[%s4755_s8 + $0xca] sm:$0xff] }
  0x8d   : > { %4281 = vmatprep.subr.bf16.mxu0 %v5041_v25 }
  0x8f   : > { %4030 = vmatmul.mubr.msk.bf16.gmra.mrb[24].mxu1 %vm427_vm0, %v347_v21  ;;  %4210 = vmatmul.mubr.msk.bf16.gmra.mrb[4].mxu0 %vm427_vm0, %v4879_v39  ;;  %v332_v39 = vld [vmem:[%s4755_s8 + $0x110] sm:$0xff]  ;;  %v5167_v21 = vpack.c.bf16 %v927_v17, %v926_v16  ;;  %v2620_v16 = vld [vmem:[%s4755_s8 + $0x105] sm:$0xff] }
  0x90   : > { %4033 = vmatprep.mubr.msk.bf16.mxu1 %vm427_vm0, %v348_v22  ;;  %4213 = vmatprep.mubr.msk.bf16.mxu0 %vm427_vm0, %v4896_v49  ;;  %v902_v49 = vld [vmem:[%s4755_s8 + $0x2] sm:$0xff]  ;;  %v351_v33 = vpack.c.bf16 %v333_v31, %v332_v39  ;;  %v2630_v22 = vpack.c.bf16 %v2597_v19, %v2596_v18  ;;  %v931_v39 = vld [vmem:[%s4755_s8 + $0xea] sm:$0xff] }
  0x91   : > { %v938_v34 = vpack.c.bf16 %v903_v32, %v902_v49  ;;  %v2600_v31 = vld [vmem:[%s4755_s8 + $0x65] sm:$0xff]  ;;  %v2601_v49 = vld [vmem:[%s4755_s8 + $0x6d] sm:$0xff]  ;;  %v5187_v32 = vpack.c.bf16 %v929_v24, %v928_v37 }
  0x92   : > { %v2621_v17 = vld [vmem:[%s4755_s8 + $0x10d] sm:$0xff]  ;;  %v2624_v19 = vld [vmem:[%s4755_s8 + $0x125] sm:$0xff] }
  0x93   : > { %v2930_v37 = vld [vmem:[%s4755_s8 + $0x26] sm:$0xff]  ;;  %v2931_v24 = vld [vmem:[%s4755_s8 + $0x2e] sm:$0xff] }
  0x97   : > { %4034 = vmatmul.mubr.msk.bf16.gmra.mrb[28].mxu1 %vm427_vm0, %v349_v10  ;;  %4214 = vmatmul.mubr.msk.bf16.gmra.mrb[8].mxu0 %vm427_vm0, %v4898_v51  ;;  %v904_v51 = vld [vmem:[%s4755_s8 + $0x12] sm:$0xff]  ;;  %v2599_v10 = vld [vmem:[%s4755_s8 + $0x5d] sm:$0xff] }
  0x98   : > { %4037 = vmatprep.mubr.msk.bf16.mxu1 %vm427_vm0, %v350_v30  ;;  %4217 = vmatprep.mubr.msk.bf16.mxu0 %vm427_vm0, %v4914_v61  ;;  %v906_v61 = vld [vmem:[%s4755_s8 + $0x22] sm:$0xff]  ;;  %v5074_v40 = vpack.c.bf16 %v905_v36, %v904_v51  ;;  %v932_v51 = vld [vmem:[%s4755_s8 + $0xf2] sm:$0xff]  ;;  %v933_v36 = vld [vmem:[%s4755_s8 + $0xfa] sm:$0xff] }
  0x99   : > { %v5076_v41 = vpack.c.bf16 %v907_v38, %v906_v61  ;;  %v930_v30 = vld [vmem:[%s4755_s8 + $0xe2] sm:$0xff]  ;;  %v2602_v61 = vld [vmem:[%s4755_s8 + $0x75] sm:$0xff] }
  0x9a   : > { %v2603_v38 = vld [vmem:[%s4755_s8 + $0x7d] sm:$0xff] }
  0x9f   : > { %4038 = vmatmul.mubr.msk.bf16.gmra.mrb[32].mxu1 %vm427_vm0, %v351_v33  ;;  %4218 = vmatmul.mubr.msk.bf16.gmra.mrb[12].mxu0 %vm427_vm0, %v4916_v63  ;;  %v908_v63 = vld [vmem:[%s4755_s8 + $0x32] sm:$0xff]  ;;  %v2631_v33 = vpack.c.bf16 %v2599_v10, %v2598_v27  ;;  %v2966_v10 = vpack.c.bf16 %v2931_v24, %v2930_v37  ;;  %v2958_v37 = vld [vmem:[%s4755_s8 + $0x106] sm:$0xff] }
  0xa0   : > { %4045 = vmatprep.mubr.msk.bf16.mxu1 %vm427_vm0, %v938_v34  ;;  %4221 = vmatprep.mubr.msk.bf16.mxu0 %vm427_vm0, %v4932_v12  ;;  %v909_v12 = vld [vmem:[%s4755_s8 + $0x3a] sm:$0xff]  ;;  %v2632_v34 = vpack.c.bf16 %v2601_v49, %v2600_v31  ;;  %v2959_v24 = vld [vmem:[%s4755_s8 + $0x10e] sm:$0xff] }
  0xa1   : > { %v5094_v47 = vpack.c.bf16 %v909_v12, %v908_v63  ;;  %v935_v63 = vld [vmem:[%s4755_s8 + $0x10a] sm:$0xff] }
  0xa2   : > { %v2604_v12 = vld [vmem:[%s4755_s8 + $0x85] sm:$0xff] }
  0xa7   : > { %4046 = vmatmul.mubr.msk.bf16.vlgmr.msra.gmra.mrb[0].mxu1 %vm427_vm0, %v5074_v40  ;;  %4222 = vmatmul.mubr.msk.bf16.gmra.mrb[16].mxu0 %vm427_vm0, %v4934_v14  ;;  %v5096_v14 = vpack.c.bf16 %v911_v46, %v910_v45  ;;  %v2605_v45 = vld [vmem:[%s4755_s8 + $0x8d] sm:$0xff]  ;;  %v5205_v46 = vpack.c.bf16 %v933_v36, %v932_v51 }
  0xa8   : > { %4049 = vmatprep.mubr.msk.bf16.mxu1 %vm427_vm0, %v5076_v41  ;;  %4225 = vmatprep.mubr.msk.bf16.mxu0 %vm427_vm0, %v4959_v28  ;;  %v913_v28 = vld [vmem:[%s4755_s8 + $0x5a] sm:$0xff]  ;;  %v2634_v48 = vpack.c.bf16 %v2605_v45, %v2604_v12  ;;  %v1275_v12 = vld [vmem:[%s4755_s8 + $0x12a] sm:$0xff] }
  0xa9   : > { %4082 = vmatpush3.bf16.msra.mxu1 %v4957_v26  ;;  %v912_v26 = vld [vmem:[%s4755_s8 + $0x52] sm:$0xff] }
  0xaa   : > { %4083 = vmatprep.subr.bf16.mxu1 %v4655_v43  ;;  %v5111_v52 = vpack.c.bf16 %v913_v28, %v912_v26  ;;  %v2633_v26 = vpack.c.bf16 %v2603_v38, %v2602_v61  ;;  %v2942_v61 = vld [vmem:[%s4755_s8 + $0x86] sm:$0xff]  ;;  %v2943_v38 = vld [vmem:[%s4755_s8 + $0x8e] sm:$0xff]  ;;  %v2944_v45 = vld [vmem:[%s4755_s8 + $0x96] sm:$0xff] }
  0xad   : > { %4084 = vmatpush3.bf16.msra.mxu1 %v4655_v43  ;;  %v934_v43 = vld [vmem:[%s4755_s8 + $0x102] sm:$0xff] }
  0xae   : > { %4321 = vmatprep.subr.bf16.mxu1 %v4730_v1  ;;  %v5207_v28 = vpack.c.bf16 %v935_v63, %v934_v43  ;;  %v2972_v63 = vpack.c.bf16 %v2943_v38, %v2942_v61 }
  0xaf   : > { %4050 = vmatmul.mubr.msk.bf16.gmra.mrb[4].mxu1 %vm427_vm0, %v5094_v47  ;;  %4226 = vmatmul.mubr.msk.bf16.gmra.mrb[20].mxu0 %vm427_vm0, %v4961_v29  ;;  %v916_v29 = vld [vmem:[%s4755_s8 + $0x72] sm:$0xff] }
  0xb0   : > { %4053 = vmatprep.mubr.msk.bf16.mxu1 %vm427_vm0, %v5096_v14  ;;  %4229 = vmatprep.mubr.msk.bf16.mxu0 %vm427_vm0, %v4978_v42  ;;  %v917_v42 = vld [vmem:[%s4755_s8 + $0x7a] sm:$0xff] }
  0xb1   : > { %v5127_v57 = vpack.c.bf16 %v917_v42, %v916_v29  ;;  %v937_v29 = vld [vmem:[%s4755_s8 + $0x11a] sm:$0xff] }
  0xb2   : > { %v2606_v42 = vld [vmem:[%s4755_s8 + $0x95] sm:$0xff] }
  0xb7   : > { %4054 = vmatmul.mubr.msk.bf16.gmra.mrb[8].mxu1 %vm427_vm0, %v5111_v52  ;;  %4230 = vmatmul.mubr.msk.bf16.gmra.mrb[24].mxu0 %vm427_vm0, %v4980_v44  ;;  %v920_v44 = vld [vmem:[%s4755_s8 + $0x92] sm:$0xff] }
  0xb8   : > { %4057 = vmatprep.mubr.msk.bf16.mxu1 %vm427_vm0, %v5113_v53  ;;  %4233 = vmatprep.mubr.msk.bf16.mxu0 %vm427_vm0, %v4996_v56  ;;  %v2288_v56 = vld [vmem:[%s4755_s8 + $0x134] sm:$0xff]  ;;  %v5147_v5 = vpack.c.bf16 %v921_v60, %v920_v44  ;;  %v5221_v60 = vpack.c.bf16 %v937_v29, %v936_v50 }
  0xb9   : > { %v2307_v7 = vpack.c.bf16 %v2289_v62, %v2288_v56  ;;  %v2609_v44 = vld [vmem:[%s4755_s8 + $0xad] sm:$0xff]  ;;  %v2635_v56 = vpack.c.bf16 %v2607_v54, %v2606_v42 }
  0xba   : > { %v2636_v62 = vpack.c.bf16 %v2609_v44, %v2608_v55  ;;  %v2947_v50 = vld [vmem:[%s4755_s8 + $0xae] sm:$0xff]  ;;  %v1600_v44 = vld [vmem:[%s4755_s8 + $0xc3] sm:$0xff] }
  0xbf   : > { %4058 = vmatmul.mubr.msk.bf16.gmra.mrb[12].mxu1 %vm427_vm0, %v5127_v57  ;;  %4234 = vmatmul.mubr.msk.bf16.gmra.mrb[28].mxu0 %vm427_vm0, %v4998_v58  ;;  %v2593_v58 = vld [vmem:[%s4755_s8 + $0x2d] sm:$0xff] }
  0xc0   : > { %4061 = vmatprep.mubr.msk.bf16.mxu1 %vm427_vm0, %v5129_v59  ;;  %4237 = vmatprep.mubr.msk.bf16.mxu0 %vm427_vm0, %v5012_v6  ;;  %v2628_v9 = vpack.c.bf16 %v2593_v58, %v2592_v4  ;;  %v924_v6 = vld [vmem:[%s4755_s8 + $0xb2] sm:$0xff]  ;;  %v2612_v4 = vld [vmem:[%s4755_s8 + $0xc5] sm:$0xff] }
  0xc1   : > { %v5165_v23 = vpack.c.bf16 %v925_v11, %v924_v6  ;;  %v2613_v58 = vld [vmem:[%s4755_s8 + $0xcd] sm:$0xff]  ;;  %v2615_v6 = vld [vmem:[%s4755_s8 + $0xdd] sm:$0xff]  ;;  %v2616_v11 = vld [vmem:[%s4755_s8 + $0xe5] sm:$0xff] }
  0xc2   : > { %v2640_v15 = vpack.c.bf16 %v2617_v13, %v2616_v11  ;;  %v1604_v11 = vld [vmem:[%s4755_s8 + $0xe3] sm:$0xff]  ;;  %v1605_v13 = vld [vmem:[%s4755_s8 + $0xeb] sm:$0xff] }
  0xc7   : > { %4062 = vmatmul.mubr.msk.bf16.gmra.mrb[16].mxu1 %vm427_vm0, %v5147_v5  ;;  %4238 = vmatmul.mubr.msk.bf16.gmra.mrb[32].mxu0 %vm427_vm0, %v2307_v7  ;;  %v2637_v7 = vpack.c.bf16 %v2611_v2, %v2610_v0  ;;  %v1602_v0 = vld [vmem:[%s4755_s8 + $0xd3] sm:$0xff]  ;;  %v1603_v2 = vld [vmem:[%s4755_s8 + $0xdb] sm:$0xff] }
  0xc8   : > { %4065 = vmatprep.mubr.msk.bf16.mxu1 %vm427_vm0, %v5149_v8  ;;  %4245 = vmatprep.mubr.msk.bf16.mxu0 %vm427_vm0, %v2628_v9  ;;  %v2638_v9 = vpack.c.bf16 %v2613_v58, %v2612_v4  ;;  %v2950_v4 = vld [vmem:[%s4755_s8 + $0xc6] sm:$0xff]  ;;  %v2951_v58 = vld [vmem:[%s4755_s8 + $0xce] sm:$0xff] }
  0xcf   : > { %4066 = vmatmul.mubr.msk.bf16.gmra.mrb[20].mxu1 %vm427_vm0, %v5165_v23  ;;  %4246 = vmatmul.mubr.msk.bf16.vlgmr.msra.gmra.mrb[0].mxu0 %vm427_vm0, %v2629_v20  ;;  %v2625_v20 = vld [vmem:[%s4755_s8 + $0x12d] sm:$0xff] }
  0xd0   : > { %4069 = vmatprep.mubr.msk.bf16.mxu1 %vm427_vm0, %v5167_v21  ;;  %4282 = vmatpush3.bf16.msra.mxu0 %v5041_v25  ;;  %v5189_v25 = vpack.c.bf16 %v931_v39, %v930_v30  ;;  %v2934_v30 = vld [vmem:[%s4755_s8 + $0x46] sm:$0xff]  ;;  %v2935_v39 = vld [vmem:[%s4755_s8 + $0x4e] sm:$0xff] }
  0xd1   : > { %4249 = vmatprep.mubr.msk.bf16.mxu0 %vm427_vm0, %v2630_v22  ;;  %4283 = vmatprep.subr.bf16.mxu0 %v4656_v35  ;;  %v2968_v49 = vpack.c.bf16 %v2935_v39, %v2934_v30  ;;  %v1612_v30 = vld [vmem:[%s4755_s8 + $0x123] sm:$0xff]  ;;  %v1613_v39 = vld [vmem:[%s4755_s8 + $0x12b] sm:$0xff] }
  0xd4   : > { %4284 = vmatpush3.bf16.msra.mxu0 %v4656_v35  ;;  %v2644_v35 = vpack.c.bf16 %v2625_v20, %v2624_v19  ;;  %v1608_v19 = vld [vmem:[%s4755_s8 + $0x103] sm:$0xff]  ;;  %v1609_v20 = vld [vmem:[%s4755_s8 + $0x10b] sm:$0xff] }
  0xd7   : > { %4070 = vmatmul.mubr.msk.bf16.gmra.mrb[24].mxu1 %vm427_vm0, %v5187_v32  ;;  %4250 = vmatmul.mubr.msk.bf16.gmra.mrb[4].mxu0 %vm427_vm0, %v2631_v33  ;;  %v2938_v33 = vld [vmem:[%s4755_s8 + $0x66] sm:$0xff] }
  0xd8   : > { %4073 = vmatprep.mubr.msk.bf16.mxu1 %vm427_vm0, %v5189_v25  ;;  %4253 = vmatprep.mubr.msk.bf16.mxu0 %vm427_vm0, %v2632_v34  ;;  %v2939_v34 = vld [vmem:[%s4755_s8 + $0x6e] sm:$0xff] }
  0xd9   : > { %v2970_v36 = vpack.c.bf16 %v2939_v34, %v2938_v33  ;;  %v1631_v33 = vpack.c.bf16 %v1613_v39, %v1612_v30 }
  0xdf   : > { %4074 = vmatmul.mubr.msk.bf16.gmra.mrb[28].mxu1 %vm427_vm0, %v5205_v46  ;;  %4254 = vmatmul.mubr.msk.bf16.gmra.mrb[8].mxu0 %vm427_vm0, %v2633_v26  ;;  %v1598_v26 = vld [vmem:[%s4755_s8 + $0xb3] sm:$0xff] }
  0xe0   : > { %4077 = vmatprep.mubr.msk.bf16.mxu1 %vm427_vm0, %v5207_v28  ;;  %4257 = vmatprep.mubr.msk.bf16.mxu0 %vm427_vm0, %v2634_v48  ;;  %v1599_v48 = vld [vmem:[%s4755_s8 + $0xbb] sm:$0xff] }
  0xe1   : > { %v1624_v54 = vpack.c.bf16 %v1599_v48, %v1598_v26 }
  0xe7   : > { %4078 = vmatmul.mubr.msk.bf16.gmra.mrb[32].mxu1 %vm427_vm0, %v5221_v60  ;;  %4258 = vmatmul.mubr.msk.bf16.gmra.mrb[12].mxu0 %vm427_vm0, %v2635_v56  ;;  %v2948_v56 = vld [vmem:[%s4755_s8 + $0xb6] sm:$0xff] }
  0xe8   : > { %4085 = vmatprep.mubr.msk.bf16.mxu1 %vm427_vm0, %v5074_v40  ;;  %4261 = vmatprep.mubr.msk.bf16.mxu0 %vm427_vm0, %v2636_v62  ;;  %v2614_v40 = vld [vmem:[%s4755_s8 + $0xd5] sm:$0xff]  ;;  %v2949_v62 = vld [vmem:[%s4755_s8 + $0xbe] sm:$0xff] }
  0xef   : > { %4086 = vmatmul.mubr.msk.bf16.vlgmr.msra.gmra.mrb[0].mxu1 %vm427_vm0, %v5076_v41  ;;  %4262 = vmatmul.mubr.msk.bf16.gmra.mrb[16].mxu0 %vm427_vm0, %v2637_v7  ;;  %v2639_v41 = vpack.c.bf16 %v2615_v6, %v2614_v40  ;;  %v1626_v40 = vpack.c.bf16 %v1603_v2, %v1602_v0  ;;  %v2976_v6 = vpack.c.bf16 %v2951_v58, %v2950_v4  ;;  %v5397_v2 = vld [vmem:[%s5540_s2] ss:$0 sm:$0xff] }
  0xf0   : > { %4089 = vmatprep.mubr.msk.bf16.mxu1 %vm427_vm0, %v5094_v47  ;;  %4265 = vmatprep.mubr.msk.bf16.mxu0 %vm427_vm0, %v2638_v9  ;;  %v2619_v47 = vld [vmem:[%s4755_s8 + $0xfd] sm:$0xff]  ;;  %v2975_v9 = vpack.c.bf16 %v2949_v62, %v2948_v56 }
  0xf1   : > { %4323 = vmatpush3.bf16.msra.mxu1 %v4730_v1  ;;  %v2618_v1 = vld [vmem:[%s4755_s8 + $0xf5] sm:$0xff] }
  0xf2   : > { %4322 = vmatprep.subr.bf16.mxu1 %v4741_v3  ;;  %v2641_v18 = vpack.c.bf16 %v2619_v47, %v2618_v1  ;;  %v1606_v1 = vld [vmem:[%s4755_s8 + $0xf3] sm:$0xff]  ;;  %v1607_v47 = vld [vmem:[%s4755_s8 + $0xfb] sm:$0xff] }
  0xf5   : > { %4324 = vmatpush3.bf16.msra.mxu1 %v4741_v3  ;;  %v2642_v3 = vpack.c.bf16 %v2621_v17, %v2620_v16  ;;  %v2954_v16 = vld [vmem:[%s4755_s8 + $0xe6] sm:$0xff]  ;;  %v2955_v17 = vld [vmem:[%s4755_s8 + $0xee] sm:$0xff] }
  0xf7   : > { %4090 = vmatmul.mubr.msk.bf16.gmra.mrb[4].mxu1 %vm427_vm0, %v5096_v14  ;;  %4266 = vmatmul.mubr.msk.bf16.gmra.mrb[20].mxu0 %vm427_vm0, %v2639_v41  ;;  %v2622_v14 = vld [vmem:[%s4755_s8 + $0x115] sm:$0xff] }
  0xf8   : > { %4093 = vmatprep.mubr.msk.bf16.mxu1 %vm427_vm0, %v5111_v52  ;;  %4269 = vmatprep.mubr.msk.bf16.mxu0 %vm427_vm0, %v2640_v15  ;;  %v2623_v52 = vld [vmem:[%s4755_s8 + $0x11d] sm:$0xff] }
  0xf9   : > { %v2643_v22 = vpack.c.bf16 %v2623_v52, %v2622_v14  ;;  %v2952_v41 = vld [vmem:[%s4755_s8 + $0xd6] sm:$0xff]  ;;  %v2953_v15 = vld [vmem:[%s4755_s8 + $0xde] sm:$0xff]  ;;  %v1628_v14 = vpack.c.bf16 %v1607_v47, %v1606_v1  ;;  %v2978_v52 = vpack.c.bf16 %v2955_v17, %v2954_v16 }
  0xff   : > { %4094 = vmatmul.mubr.msk.bf16.gmra.mrb[8].mxu1 %vm427_vm0, %v5113_v53  ;;  %4270 = vmatmul.mubr.msk.bf16.gmra.mrb[24].mxu0 %vm427_vm0, %v2641_v18  ;;  %v2626_v53 = vld [vmem:[%s4755_s8 + $0x135] sm:$0xff]  ;;  %v1627_v18 = vpack.c.bf16 %v1605_v13, %v1604_v11 }
 0x100   : > { %4097 = vmatprep.mubr.msk.bf16.mxu1 %vm427_vm0, %v5127_v57  ;;  %4273 = vmatprep.mubr.msk.bf16.mxu0 %vm427_vm0, %v2642_v3  ;;  %v2627_v57 = vld [vmem:[%s4755_s8 + $0x13d] sm:$0xff]  ;;  %v2977_v3 = vpack.c.bf16 %v2953_v15, %v2952_v41 }
 0x101   : > { %v2645_v27 = vpack.c.bf16 %v2627_v57, %v2626_v53  ;;  %v1610_v53 = vld [vmem:[%s4755_s8 + $0x113] sm:$0xff]  ;;  %v1611_v57 = vld [vmem:[%s4755_s8 + $0x11b] sm:$0xff] }
 0x107   : > { %4098 = vmatmul.mubr.msk.bf16.gmra.mrb[12].mxu1 %vm427_vm0, %v5129_v59  ;;  %4274 = vmatmul.mubr.msk.bf16.gmra.mrb[28].mxu0 %vm427_vm0, %v2643_v22  ;;  %v2932_v59 = vld [vmem:[%s4755_s8 + $0x36] sm:$0xff] }
 0x108   : > { %4101 = vmatprep.mubr.msk.bf16.mxu1 %vm427_vm0, %v5147_v5  ;;  %4277 = vmatprep.mubr.msk.bf16.mxu0 %vm427_vm0, %v2644_v35  ;;  %v2933_v5 = vld [vmem:[%s4755_s8 + $0x3e] sm:$0xff]  ;;  %v2956_v22 = vld [vmem:[%s4755_s8 + $0xf6] sm:$0xff] }
 0x109   : > { %v2967_v31 = vpack.c.bf16 %v2933_v5, %v2932_v59  ;;  %v2957_v35 = vld [vmem:[%s4755_s8 + $0xfe] sm:$0xff]  ;;  %v1630_v59 = vpack.c.bf16 %v1611_v57, %v1610_v53  ;;  %v2980_v5 = vpack.c.bf16 %v2959_v24, %v2958_v37 }
 0x10f   : > { %4102 = vmatmul.mubr.msk.bf16.gmra.mrb[16].mxu1 %vm427_vm0, %v5149_v8  ;;  %4278 = vmatmul.mubr.msk.bf16.gmra.mrb[32].mxu0 %vm427_vm0, %v2645_v27  ;;  %v2936_v8 = vld [vmem:[%s4755_s8 + $0x56] sm:$0xff]  ;;  %v1629_v27 = vpack.c.bf16 %v1609_v20, %v1608_v19 }
 0x110   : > { %4105 = vmatprep.mubr.msk.bf16.mxu1 %vm427_vm0, %v5165_v23  ;;  %4285 = vmatprep.mubr.msk.bf16.mxu0 %vm427_vm0, %v2966_v10  ;;  %v2937_v23 = vld [vmem:[%s4755_s8 + $0x5e] sm:$0xff]  ;;  %v2979_v10 = vpack.c.bf16 %v2957_v35, %v2956_v22 }
 0x111   : > { %v2969_v51 = vpack.c.bf16 %v2937_v23, %v2936_v8  ;;  %v2962_v8 = vld [vmem:[%s4755_s8 + $0x126] sm:$0xff]  ;;  %v2963_v23 = vld [vmem:[%s4755_s8 + $0x12e] sm:$0xff] }
 0x117   : > { %4106 = vmatmul.mubr.msk.bf16.gmra.mrb[20].mxu1 %vm427_vm0, %v5167_v21  ;;  %4286 = vmatmul.mubr.msk.bf16.vlgmr.msra.gmra.mrb[0].mxu0 %vm427_vm0, %v2967_v31  ;;  %v2940_v21 = vld [vmem:[%s4755_s8 + $0x76] sm:$0xff] }
 0x118   : > { %4109 = vmatprep.mubr.msk.bf16.mxu1 %vm427_vm0, %v5187_v32  ;;  %4289 = vmatprep.mubr.msk.bf16.mxu0 %vm427_vm0, %v2968_v49  ;;  %v2941_v32 = vld [vmem:[%s4755_s8 + $0x7e] sm:$0xff]  ;;  %v2960_v31 = vld [vmem:[%s4755_s8 + $0x116] sm:$0xff] }
 0x119   : > { %v2971_v43 = vpack.c.bf16 %v2941_v32, %v2940_v21  ;;  %v2961_v49 = vld [vmem:[%s4755_s8 + $0x11e] sm:$0xff] }
 0x11a   : > { %v2981_v34 = vpack.c.bf16 %v2961_v49, %v2960_v31  ;;  %v2965_v21 = vld [vmem:[%s4755_s8 + $0x13e] sm:$0xff] }
 0x11f   : > { %4110 = vmatmul.mubr.msk.bf16.gmra.mrb[24].mxu1 %vm427_vm0, %v5189_v25  ;;  %4290 = vmatmul.mubr.msk.bf16.gmra.mrb[4].mxu0 %vm427_vm0, %v2969_v51  ;;  %v1274_v25 = vld [vmem:[%s4755_s8 + $0x122] sm:$0xff]  ;;  %v2982_v51 = vpack.c.bf16 %v2963_v23, %v2962_v8 }
 0x120   : > { %4113 = vmatprep.mubr.msk.bf16.mxu1 %vm427_vm0, %v5205_v46  ;;  %4293 = vmatprep.mubr.msk.bf16.mxu0 %vm427_vm0, %v2970_v36  ;;  %v2945_v46 = vld [vmem:[%s4755_s8 + $0x9e] sm:$0xff]  ;;  %v1293_v29 = vpack.c.bf16 %v1275_v12, %v1274_v25  ;;  %v2964_v36 = vld [vmem:[%s4755_s8 + $0x136] sm:$0xff] }
 0x121   : > { %v2973_v42 = vpack.c.bf16 %v2945_v46, %v2944_v45  ;;  %v2983_v32 = vpack.c.bf16 %v2965_v21, %v2964_v36 }
 0x127   : > { %4114 = vmatmul.mubr.msk.bf16.gmra.mrb[28].mxu1 %vm427_vm0, %v5207_v28  ;;  %4294 = vmatmul.mubr.msk.bf16.gmra.mrb[8].mxu0 %vm427_vm0, %v2971_v43  ;;  %v2946_v28 = vld [vmem:[%s4755_s8 + $0xa6] sm:$0xff] }
 0x128   : > { %4117 = vmatprep.mubr.msk.bf16.mxu1 %vm427_vm0, %v5221_v60  ;;  %4297 = vmatprep.mubr.msk.bf16.mxu0 %vm427_vm0, %v2972_v63  ;;  %v2974_v55 = vpack.c.bf16 %v2947_v50, %v2946_v28  ;;  %v1601_v60 = vld [vmem:[%s4755_s8 + $0xcb] sm:$0xff] }
 0x129   : > { %v1625_v7 = vpack.c.bf16 %v1601_v60, %v1600_v44 }
 0x12f   : > { %4118 = vmatmul.mubr.msk.bf16.gmra.mrb[32].mxu1 %vm427_vm0, %v1293_v29  ;;  %4298 = vmatmul.mubr.msk.bf16.gmra.mrb[12].mxu0 %vm427_vm0, %v2973_v42 }
 0x130   : > { %4145 = vmatprep.mubr.msk.bf16.mxu1 %vm427_vm0, %v1624_v54  ;;  %4301 = vmatprep.mubr.msk.bf16.mxu0 %vm427_vm0, %v2974_v55 }
 0x137   : > { %4146 = vmatmul.mubr.msk.bf16.vlgmr.msra.gmra.mrb[20].mxu1 %vm427_vm0, %v1625_v7  ;;  %4302 = vmatmul.mubr.msk.bf16.gmra.mrb[16].mxu0 %vm427_vm0, %v2975_v9  ;;  %v5403_v7 = vld [vmem:[%s5541_s3] ss:$0 sm:$0xff] }
 0x138   : > { %4149 = vmatprep.mubr.msk.bf16.mxu1 %vm427_vm0, %v1626_v40  ;;  %4305 = vmatprep.mubr.msk.bf16.mxu0 %vm427_vm0, %v2976_v6 }
 0x13f   : > { %4150 = vmatmul.mubr.msk.bf16.gmra.mrb[24].mxu1 %vm427_vm0, %v1627_v18  ;;  %4306 = vmatmul.mubr.msk.bf16.gmra.mrb[20].mxu0 %vm427_vm0, %v2977_v3 }
 0x140   : > { %4153 = vmatprep.mubr.msk.bf16.mxu1 %vm427_vm0, %v1628_v14  ;;  %4309 = vmatprep.mubr.msk.bf16.mxu0 %vm427_vm0, %v2978_v52 }
 0x147   : > { %4154 = vmatmul.mubr.msk.bf16.gmra.mrb[28].mxu1 %vm427_vm0, %v1629_v27  ;;  %4310 = vmatmul.mubr.msk.bf16.gmra.mrb[24].mxu0 %vm427_vm0, %v2979_v10 }
 0x148   : > { %4157 = vmatprep.mubr.msk.bf16.mxu1 %vm427_vm0, %v1630_v59  ;;  %4313 = vmatprep.mubr.msk.bf16.mxu0 %vm427_vm0, %v2980_v5 }
 0x14f   : > { %4158 = vmatmul.mubr.msk.bf16.gmra.mrb[32].mxu1 %vm427_vm0, %v1631_v33  ;;  %4314 = vmatmul.mubr.msk.bf16.gmra.mrb[28].mxu0 %vm427_vm0, %v2981_v34 }
 0x150   : > { %4317 = vmatprep.mubr.msk.bf16.mxu0 %vm427_vm0, %v2982_v51 }
 0x157   : > { %4318 = vmatmul.mubr.msk.bf16.gmra.mrb[32].mxu0 %vm427_vm0, %v2983_v32 }
 0x1c2   : > { %v4087_v61 = vpop.f32.mrb[0].mxu1 }
 0x1c3   : > { %v1399_v38 = vpop.f32.mrb[1].mxu1 }
 0x1c4   : > { %v4088_v43 = vpop.f32.mrb[2].mxu1 }
 0x1c5   : > { %v1402_v63 = vpop.f32.mrb[3].mxu1 }
 0x1ca   : > { %v4091_v25 = vpop.f32.mrb[4].mxu1 }
 0x1cb   : > { %v1415_v12 = vpop.f32.mrb[5].mxu1 }
 0x1cc   : > { %v4092_v45 = vpop.f32.mrb[6].mxu1 }
 0x1cd   : > { %v1418_v46 = vpop.f32.mrb[7].mxu1 }
 0x1d2   : > { %v4095_v26 = vpop.f32.mrb[8].mxu1 }
 0x1d3   : > { %v5372_v48 = vpop.f32.mrb[9].mxu1 }
 0x1d4   : > { %v5374_v28 = vpop.f32.mrb[10].mxu1 }
 0x1d5   : > { %v5376_v50 = vpop.f32.mrb[11].mxu1 }
 0x1da   : > { %v5378_v29 = vpop.f32.mrb[12].mxu1 }
 0x1db   : > { %v5380_v42 = vpop.f32.mrb[13].mxu1 }
 0x1dc   : > { %v5382_v54 = vpop.f32.mrb[14].mxu1 }
 0x1dd   : > { %v5384_v55 = vpop.f32.mrb[15].mxu1 }
 0x1e2   : > { %v5386_v44 = vpop.f32.mrb[16].mxu1 }
 0x1e3   : > { %v5388_v60 = vpop.f32.mrb[17].mxu1 }
 0x1e4   : > { %v5390_v56 = vpop.f32.mrb[18].mxu1 }
 0x1e5   : > { %v5392_v62 = vpop.f32.mrb[19].mxu1 }
 0x1ea   : > { %v4287_v0 = vpop.f32.mrb[0].mxu0 }
 0x1eb   : > { %v4325_v4 = vadd.f32 %v4287_v0, %v4087_v61  ;;  %v3089_v58 = vpop.f32.mrb[1].mxu0 }
 0x1ec   : > { %v4326_v9 = vadd.f32 %v3089_v58, %v1399_v38  ;;  %v4288_v40 = vpop.f32.mrb[2].mxu0 }
 0x1ed   : > { %v3277_v6 = vmul.f32 %v4325_v4, %v5397_v2  ;;  %v4327_v11 = vadd.f32 %v4288_v40, %v4088_v43  ;;  %v3092_v13 = vpop.f32.mrb[3].mxu0 }
 0x1ee   : > { %v3275_v41 = vmul.f32 %v4326_v9, %v5397_v2  ;;  %v4328_v15 = vadd.f32 %v3092_v13, %v1402_v63 }
 0x1ef   : > { %v3320_v1 = vadd.f32 %v5403_v7, %v3277_v6  ;;  %v3278_v47 = vmul.f32 %v4327_v11, %v5397_v2 }
 0x1f0   : > { %v3318_v16 = vadd.f32 %v5403_v7, %v3275_v41  ;;  %v3276_v17 = vmul.f32 %v4328_v15, %v5397_v2 }
 0x1f1   : > { %v3356_v18 = vmax.f32 %v3320_v1, 0.0  ;;  %v3321_v3 = vadd.f32 %v5403_v7, %v3278_v47 }
 0x1f2   : > { %v3354_v14 = vmax.f32 %v3318_v16, 0.0  ;;  %v3319_v52 = vadd.f32 %v5403_v7, %v3276_v17  ;;  %v4291_v19 = vpop.f32.mrb[4].mxu0 }
 0x1f3   : > { %3392 = vst [vmem:[%s5412_s21 + $0x10] sm:$0xff] %v3356_v18  ;;  %v3357_v20 = vmax.f32 %v3321_v3, 0.0  ;;  %v4329_v22 = vadd.f32 %v4291_v19, %v4091_v25  ;;  %v3105_v35 = vpop.f32.mrb[5].mxu0 }
 0x1f4   : > { %3390 = vst [vmem:[%s5412_s21] sm:$0xff] %v3354_v14  ;;  %v3355_v53 = vmax.f32 %v3319_v52, 0.0  ;;  %v4330_v57 = vadd.f32 %v3105_v35, %v1415_v12  ;;  %v4292_v37 = vpop.f32.mrb[6].mxu0 }
 0x1f5   : > { %3393 = vst [vmem:[%s5412_s21 + $0x18] sm:$0xff] %v3357_v20  ;;  %v3281_v24 = vmul.f32 %v4329_v22, %v5397_v2  ;;  %v4331_v27 = vadd.f32 %v4292_v37, %v4092_v45  ;;  %v3108_v10 = vpop.f32.mrb[7].mxu0 }
 0x1f6   : > { %3391 = vst [vmem:[%s5412_s21 + $0x8] sm:$0xff] %v3355_v53  ;;  %v3279_v59 = vmul.f32 %v4330_v57, %v5397_v2  ;;  %v4332_v5 = vadd.f32 %v3108_v10, %v1418_v46 }
 0x1f7   : > { %v3324_v30 = vadd.f32 %v5403_v7, %v3281_v24  ;;  %v3282_v39 = vmul.f32 %v4331_v27, %v5397_v2 }
 0x1f8   : > { %v3322_v31 = vadd.f32 %v5403_v7, %v3279_v59  ;;  %v3280_v49 = vmul.f32 %v4332_v5, %v5397_v2 }
 0x1f9   : > { %v3360_v8 = vmax.f32 %v3324_v30, 0.0  ;;  %v3325_v23 = vadd.f32 %v5403_v7, %v3282_v39 }
 0x1fa   : > { %v3358_v33 = vmax.f32 %v3322_v31, 0.0  ;;  %v3323_v34 = vadd.f32 %v5403_v7, %v3280_v49  ;;  %v4295_v51 = vpop.f32.mrb[8].mxu0 }
 0x1fb   : > { %3396 = vst [vmem:[%s5412_s21 + $0x30] sm:$0xff] %v3360_v8  ;;  %v3361_v36 = vmax.f32 %v3325_v23, 0.0  ;;  %v4333_v21 = vadd.f32 %v4295_v51, %v4095_v26  ;;  %v3121_v32 = vpop.f32.mrb[9].mxu0 }
 0x1fc   : > { %3394 = vst [vmem:[%s5412_s21 + $0x20] sm:$0xff] %v3358_v33  ;;  %v3359_v61 = vmax.f32 %v3323_v34, 0.0  ;;  %v4334_v38 = vadd.f32 %v3121_v32, %v5372_v48  ;;  %v4296_v43 = vpop.f32.mrb[10].mxu0 }
 0x1fd   : > { %3397 = vst [vmem:[%s5412_s21 + $0x38] sm:$0xff] %v3361_v36  ;;  %v3285_v63 = vmul.f32 %v4333_v21, %v5397_v2  ;;  %v4335_v25 = vadd.f32 %v4296_v43, %v5374_v28  ;;  %v3124_v12 = vpop.f32.mrb[11].mxu0 }
 0x1fe   : > { %3395 = vst [vmem:[%s5412_s21 + $0x28] sm:$0xff] %v3359_v61  ;;  %v3283_v45 = vmul.f32 %v4334_v38, %v5397_v2  ;;  %v4336_v46 = vadd.f32 %v3124_v12, %v5376_v50 }
 0x1ff   : > { %v3328_v26 = vadd.f32 %v5403_v7, %v3285_v63  ;;  %v3286_v0 = vmul.f32 %v4335_v25, %v5397_v2 }
 0x200   : > { %v3326_v48 = vadd.f32 %v5403_v7, %v3283_v45  ;;  %v3284_v4 = vmul.f32 %v4336_v46, %v5397_v2 }
 0x201   : > { %v3364_v58 = vmax.f32 %v3328_v26, 0.0  ;;  %v3329_v9 = vadd.f32 %v5403_v7, %v3286_v0 }
 0x202   : > { %v3362_v28 = vmax.f32 %v3326_v48, 0.0  ;;  %v3327_v40 = vadd.f32 %v5403_v7, %v3284_v4  ;;  %v4299_v6 = vpop.f32.mrb[12].mxu0 }
 0x203   : > { %3400 = vst [vmem:[%s5412_s21 + $0x50] sm:$0xff] %v3364_v58  ;;  %v3365_v11 = vmax.f32 %v3329_v9, 0.0  ;;  %v4337_v50 = vadd.f32 %v4299_v6, %v5378_v29  ;;  %v3137_v13 = vpop.f32.mrb[13].mxu0 }
 0x204   : > { %3398 = vst [vmem:[%s5412_s21 + $0x40] sm:$0xff] %v3362_v28  ;;  %v3363_v41 = vmax.f32 %v3327_v40, 0.0  ;;  %v4338_v15 = vadd.f32 %v3137_v13, %v5380_v42  ;;  %v4300_v1 = vpop.f32.mrb[14].mxu0 }
 0x205   : > { %3401 = vst [vmem:[%s5412_s21 + $0x58] sm:$0xff] %v3365_v11  ;;  %v3289_v47 = vmul.f32 %v4337_v50, %v5397_v2  ;;  %v4339_v16 = vadd.f32 %v4300_v1, %v5382_v54  ;;  %v3140_v17 = vpop.f32.mrb[15].mxu0 }
 0x206   : > { %3399 = vst [vmem:[%s5412_s21 + $0x48] sm:$0xff] %v3363_v41  ;;  %v3287_v18 = vmul.f32 %v4338_v15, %v5397_v2  ;;  %v4340_v3 = vadd.f32 %v3140_v17, %v5384_v55 }
 0x207   : > { %v3332_v29 = vadd.f32 %v5403_v7, %v3289_v47  ;;  %v3290_v14 = vmul.f32 %v4339_v16, %v5397_v2 }
 0x208   : > { %v3330_v42 = vadd.f32 %v5403_v7, %v3287_v18  ;;  %v3288_v52 = vmul.f32 %v4340_v3, %v5397_v2 }
 0x209   : > { %v3368_v19 = vmax.f32 %v3332_v29, 0.0  ;;  %v3333_v20 = vadd.f32 %v5403_v7, %v3290_v14 }
 0x20a   : > { %v4147_v54 = vpop.f32.mrb[20].mxu1  ;;  %v3366_v22 = vmax.f32 %v3330_v42, 0.0  ;;  %v3331_v35 = vadd.f32 %v5403_v7, %v3288_v52  ;;  %v4303_v53 = vpop.f32.mrb[16].mxu0 }
 0x20b   : > { %v1817_v55 = vpop.f32.mrb[21].mxu1  ;;  %3404 = vst [vmem:[%s5412_s21 + $0x70] sm:$0xff] %v3368_v19  ;;  %v3369_v57 = vmax.f32 %v3333_v20, 0.0  ;;  %v4341_v37 = vadd.f32 %v4303_v53, %v5386_v44  ;;  %v3153_v24 = vpop.f32.mrb[17].mxu0 }
 0x20c   : > { %v4148_v27 = vpop.f32.mrb[22].mxu1  ;;  %3402 = vst [vmem:[%s5412_s21 + $0x60] sm:$0xff] %v3366_v22  ;;  %v3367_v10 = vmax.f32 %v3331_v35, 0.0  ;;  %v4342_v59 = vadd.f32 %v3153_v24, %v5388_v60  ;;  %v4304_v5 = vpop.f32.mrb[18].mxu0 }
 0x20d   : > { %v1820_v30 = vpop.f32.mrb[23].mxu1  ;;  %3405 = vst [vmem:[%s5412_s21 + $0x78] sm:$0xff] %v3369_v57  ;;  %v3293_v39 = vmul.f32 %v4341_v37, %v5397_v2  ;;  %v4343_v31 = vadd.f32 %v4304_v5, %v5390_v56  ;;  %v3156_v49 = vpop.f32.mrb[19].mxu0 }
 0x20e   : > { %3403 = vst [vmem:[%s5412_s21 + $0x68] sm:$0xff] %v3367_v10  ;;  %v3291_v8 = vmul.f32 %v4342_v59, %v5397_v2  ;;  %v4344_v44 = vadd.f32 %v3156_v49, %v5392_v62 }
 0x20f   : > { %v3336_v23 = vadd.f32 %v5403_v7, %v3293_v39  ;;  %v3294_v33 = vmul.f32 %v4343_v31, %v5397_v2 }
 0x210   : > { %v3334_v60 = vadd.f32 %v5403_v7, %v3291_v8  ;;  %v3292_v34 = vmul.f32 %v4344_v44, %v5397_v2 }
 0x211   : > { %v3372_v51 = vmax.f32 %v3336_v23, 0.0  ;;  %v3337_v36 = vadd.f32 %v5403_v7, %v3294_v33 }
 0x212   : > { %v4151_v56 = vpop.f32.mrb[24].mxu1  ;;  %v3370_v21 = vmax.f32 %v3334_v60, 0.0  ;;  %v3335_v32 = vadd.f32 %v5403_v7, %v3292_v34  ;;  %v4307_v61 = vpop.f32.mrb[20].mxu0 }
 0x213   : > { %v1833_v62 = vpop.f32.mrb[25].mxu1  ;;  %3408 = vst [vmem:[%s5412_s21 + $0x90] sm:$0xff] %v3372_v51  ;;  %v3373_v38 = vmax.f32 %v3337_v36, 0.0  ;;  %v4345_v43 = vadd.f32 %v4307_v61, %v4147_v54  ;;  %v3169_v63 = vpop.f32.mrb[21].mxu0 }
 0x214   : > { %v4152_v25 = vpop.f32.mrb[26].mxu1  ;;  %3406 = vst [vmem:[%s5412_s21 + $0x80] sm:$0xff] %v3370_v21  ;;  %v3371_v12 = vmax.f32 %v3335_v32, 0.0  ;;  %v4346_v45 = vadd.f32 %v3169_v63, %v1817_v55  ;;  %v4308_v46 = vpop.f32.mrb[22].mxu0 }
 0x215   : > { %v1836_v26 = vpop.f32.mrb[27].mxu1  ;;  %3409 = vst [vmem:[%s5412_s21 + $0x98] sm:$0xff] %v3373_v38  ;;  %v3297_v0 = vmul.f32 %v4345_v43, %v5397_v2  ;;  %v4347_v48 = vadd.f32 %v4308_v46, %v4148_v27  ;;  %v3172_v4 = vpop.f32.mrb[23].mxu0 }
 0x216   : > { %3407 = vst [vmem:[%s5412_s21 + $0x88] sm:$0xff] %v3371_v12  ;;  %v3295_v58 = vmul.f32 %v4346_v45, %v5397_v2  ;;  %v4348_v9 = vadd.f32 %v3172_v4, %v1820_v30 }
 0x217   : > { %v3340_v28 = vadd.f32 %v5403_v7, %v3297_v0  ;;  %v3298_v40 = vmul.f32 %v4347_v48, %v5397_v2 }
 0x218   : > { %v3338_v6 = vadd.f32 %v5403_v7, %v3295_v58  ;;  %v3296_v11 = vmul.f32 %v4348_v9, %v5397_v2 }
 0x219   : > { %v3376_v50 = vmax.f32 %v3340_v28, 0.0  ;;  %v3341_v13 = vadd.f32 %v5403_v7, %v3298_v40 }
 0x21a   : > { %v4155_v41 = vpop.f32.mrb[28].mxu1  ;;  %v3374_v15 = vmax.f32 %v3338_v6, 0.0  ;;  %v3339_v1 = vadd.f32 %v5403_v7, %v3296_v11  ;;  %v4311_v47 = vpop.f32.mrb[24].mxu0 }
 0x21b   : > { %v1849_v16 = vpop.f32.mrb[29].mxu1  ;;  %3412 = vst [vmem:[%s5412_s21 + $0xb0] sm:$0xff] %v3376_v50  ;;  %v3377_v17 = vmax.f32 %v3341_v13, 0.0  ;;  %v4349_v18 = vadd.f32 %v4311_v47, %v4151_v56  ;;  %v3185_v3 = vpop.f32.mrb[25].mxu0 }
 0x21c   : > { %v4156_v29 = vpop.f32.mrb[30].mxu1  ;;  %3410 = vst [vmem:[%s5412_s21 + $0xa0] sm:$0xff] %v3374_v15  ;;  %v3375_v14 = vmax.f32 %v3339_v1, 0.0  ;;  %v4350_v42 = vadd.f32 %v3185_v3, %v1833_v62  ;;  %v4312_v52 = vpop.f32.mrb[26].mxu0 }
 0x21d   : > { %v1852_v19 = vpop.f32.mrb[31].mxu1  ;;  %3413 = vst [vmem:[%s5412_s21 + $0xb8] sm:$0xff] %v3377_v17  ;;  %v3301_v20 = vmul.f32 %v4349_v18, %v5397_v2  ;;  %v4351_v54 = vadd.f32 %v4312_v52, %v4152_v25  ;;  %v3188_v22 = vpop.f32.mrb[27].mxu0 }
 0x21e   : > { %3411 = vst [vmem:[%s5412_s21 + $0xa8] sm:$0xff] %v3375_v14  ;;  %v3299_v35 = vmul.f32 %v4350_v42, %v5397_v2  ;;  %v4352_v53 = vadd.f32 %v3188_v22, %v1836_v26 }
 0x21f   : > { %v3344_v55 = vadd.f32 %v5403_v7, %v3301_v20  ;;  %v3302_v57 = vmul.f32 %v4351_v54, %v5397_v2 }
 0x220   : > { %v3342_v37 = vadd.f32 %v5403_v7, %v3299_v35  ;;  %v3300_v24 = vmul.f32 %v4352_v53, %v5397_v2 }
 0x221   : > { %v3380_v27 = vmax.f32 %v3344_v55, 0.0  ;;  %v3345_v10 = vadd.f32 %v5403_v7, %v3302_v57 }
 0x222   : > { %v4159_v59 = vpop.f32.mrb[32].mxu1  ;;  %v3378_v5 = vmax.f32 %v3342_v37, 0.0  ;;  %v3343_v30 = vadd.f32 %v5403_v7, %v3300_v24  ;;  %v4315_v39 = vpop.f32.mrb[28].mxu0 }
 0x223   : > { %v1865_v31 = vpop.f32.mrb[33].mxu1  ;;  %3416 = vst [vmem:[%s5412_s21 + $0xd0] sm:$0xff] %v3380_v27  ;;  %v3381_v49 = vmax.f32 %v3345_v10, 0.0  ;;  %v4353_v8 = vadd.f32 %v4315_v39, %v4155_v41  ;;  %v3201_v44 = vpop.f32.mrb[29].mxu0 }
 0x224   : > { %v4160_v23 = vpop.f32.mrb[34].mxu1  ;;  %3414 = vst [vmem:[%s5412_s21 + $0xc0] sm:$0xff] %v3378_v5  ;;  %v3379_v33 = vmax.f32 %v3343_v30, 0.0  ;;  %v4354_v60 = vadd.f32 %v3201_v44, %v1849_v16  ;;  %v4316_v34 = vpop.f32.mrb[30].mxu0 }
 0x225   : > { %v1868_v51 = vpop.f32.mrb[35].mxu1  ;;  %3417 = vst [vmem:[%s5412_s21 + $0xd8] sm:$0xff] %v3381_v49  ;;  %v3305_v36 = vmul.f32 %v4353_v8, %v5397_v2  ;;  %v4355_v56 = vadd.f32 %v4316_v34, %v4156_v29  ;;  %v3204_v21 = vpop.f32.mrb[31].mxu0 }
 0x226   : > { %3415 = vst [vmem:[%s5412_s21 + $0xc8] sm:$0xff] %v3379_v33  ;;  %v3303_v32 = vmul.f32 %v4354_v60, %v5397_v2  ;;  %v4356_v61 = vadd.f32 %v3204_v21, %v1852_v19 }
 0x227   : > { %v3348_v62 = vadd.f32 %v5403_v7, %v3305_v36  ;;  %v3306_v38 = vmul.f32 %v4355_v56, %v5397_v2 }
 0x228   : > { %v3346_v43 = vadd.f32 %v5403_v7, %v3303_v32  ;;  %v3304_v63 = vmul.f32 %v4356_v61, %v5397_v2 }
 0x229   : > { %v3384_v25 = vmax.f32 %v3348_v62, 0.0  ;;  %v3349_v12 = vadd.f32 %v5403_v7, %v3306_v38 }
 0x22a   : > { %v3382_v45 = vmax.f32 %v3346_v43, 0.0  ;;  %v3347_v46 = vadd.f32 %v5403_v7, %v3304_v63  ;;  %v4319_v26 = vpop.f32.mrb[32].mxu0 }
 0x22b   : > { %3420 = vst [vmem:[%s5412_s21 + $0xf0] sm:$0xff] %v3384_v25  ;;  %v3385_v0 = vmax.f32 %v3349_v12, 0.0  ;;  %v4357_v48 = vadd.f32 %v4319_v26, %v4159_v59  ;;  %v3217_v4 = vpop.f32.mrb[33].mxu0 }
 0x22c   : > { %3418 = vst [vmem:[%s5412_s21 + $0xe0] sm:$0xff] %v3382_v45  ;;  %v3383_v58 = vmax.f32 %v3347_v46, 0.0  ;;  %v4358_v9 = vadd.f32 %v3217_v4, %v1865_v31  ;;  %v4320_v28 = vpop.f32.mrb[34].mxu0 }
 0x22d   : > { %3421 = vst [vmem:[%s5412_s21 + $0xf8] sm:$0xff] %v3385_v0  ;;  %v3309_v40 = vmul.f32 %v4357_v48, %v5397_v2  ;;  %v4359_v6 = vadd.f32 %v4320_v28, %v4160_v23  ;;  %v3220_v11 = vpop.f32.mrb[35].mxu0 }
 0x22e   : > { %3419 = vst [vmem:[%s5412_s21 + $0xe8] sm:$0xff] %v3383_v58  ;;  %v3307_v50 = vmul.f32 %v4358_v9, %v5397_v2  ;;  %v4360_v13 = vadd.f32 %v3220_v11, %v1868_v51 }
 0x22f   : > { %v3352_v41 = vadd.f32 %v5403_v7, %v3309_v40  ;;  %v3310_v15 = vmul.f32 %v4359_v6, %v5397_v2 }
 0x230   : > { %v3350_v1 = vadd.f32 %v5403_v7, %v3307_v50  ;;  %v3308_v47 = vmul.f32 %v4360_v13, %v5397_v2 }
 0x231   : > { %v3388_v16 = vmax.f32 %v3352_v41, 0.0  ;;  %v3353_v17 = vadd.f32 %v5403_v7, %v3310_v15 }
 0x232   : > { %v3386_v18 = vmax.f32 %v3350_v1, 0.0  ;;  %v3351_v3 = vadd.f32 %v5403_v7, %v3308_v47 }
 0x233   : > { %3424 = vst [vmem:[%s5412_s21 + $0x110] sm:$0xff] %v3388_v16  ;;  %v3389_v29 = vmax.f32 %v3353_v17, 0.0 }
 0x234   : > { %3422 = vst [vmem:[%s5412_s21 + $0x100] sm:$0xff] %v3386_v18  ;;  %v3387_v14 = vmax.f32 %v3351_v3, 0.0 }
 0x235   : > { %3425 = vst [vmem:[%s5412_s21 + $0x118] sm:$0xff] %v3389_v29 }
 0x236   : > { %3423 = vst [vmem:[%s5412_s21 + $0x108] sm:$0xff] %v3387_v14 }
 0x237 PF: > { %s14_s17 = sadd.s32 1, %s4679_s17   ;;  %s5543_s15 = smov %s4675_s16 }
 0x238   : > { %p11_p5 = scmp.ge.s32.totalorder %s14_s17, 4   ;;  %s5544_s16 = smov %s5546_s18 }
 0x23a   :  { %13 = sbr.rel (!%p11_p5) target bundleno = 2 (0x2), region = 83 }

// kernel: resblock_forward.3
= control target key start
LH: loop header
LB: loop body
LE: loop exit
PB: predicated region body
PF: predicated region fallthrough
CT: control target
= control target key end

     0   :  { %s4860_s18 = smov 0   ;;  %s4862_s19 = smov 0   ;;  %s5736_s0 = inlined_call_operand.vmem [shape: f32[2,1,342,32], index: 0, kind: input, shape index: {}]   ;;  %s5737_s1 = inlined_call_operand.vmem [shape: bf16[3,3,32,128], index: 1, kind: input, shape index: {}]   ;;  %s5738_s2 = inlined_call_operand.vmem [shape: f32[1,128], index: 2, kind: input, shape index: {}]   ;;  %s5739_s3 = inlined_call_operand.vmem [shape: f32[1,128], index: 3, kind: input, shape index: {}]   ;;  %s5740_s4 = inlined_call_operand.vmem [shape: f32[2,288,128], index: 4, kind: input, shape index: {}]   ;;  %s5741_s5 = inlined_call_operand.vmem [shape: f32[2,288,128], index: 5, kind: output, shape index: {}]  }
   0x1   :  { %s4864_s20 = smov 0  }
   0x2 LB: > { %s34_s21 = sadd.s32 1, %s4824_s19  ;;  %p3710_p0 = scmp.ge.s32.totalorder %s4828_s20, 1  ;;  %s4828_s20 = sphi %s4864_s20, %s15_s20   ;;  %s4824_s19 = sphi %s4862_s19, %s5743_s19   ;;  %s4820_s18 = sphi %s4860_s18, %s5742_s18  }
   0x3   : > { %p36_p1 = scmp.ge.s32.totalorder %s34_s21, 2  ;;  %p260_p2 = scmp.lt.s32.totalorder %s4828_s20, 3 }
   0x5   : > { %s5745_s21 = smov (%p36_p1, %s34_s21), 0  ;;  %p261_p3 = pnand %p3710_p0, %p260_p2 }
   0x6   : > { %v4788_v0 = vld [vmem:[%s5737_s1 + $0x10] sm:$0xff] (!%p261_p3)   ;;  %p316_p4 = scmp.lt.s32.totalorder (!%p261_p3), %s4820_s18, 1  ;;  %v4884_v1 = vld [vmem:[%s5737_s1 + $0x40] sm:$0xff] (!%p261_p3)   ;;  %v4790_v2 = vld [vmem:[%s5737_s1 + $0x18] sm:$0xff] (!%p261_p3)   ;;  %vm485_vm0 = vcmask (!%p261_p3), 261120  }
   0x7   : > { %264 = sbr.rel (%p261_p3) target bundleno = 569 (0x239), region = 40  ;;  %4110 = vmatprep.subr.bf16.mxu1 (!%p261_p3), %v4788_v0  ;;  %4270 = vmatprep.subr.bf16.mxu0 (!%p261_p3), %v4884_v1  ;;  %v4895_v3 = vld [vmem:[%s5737_s1 + $0x48] sm:$0xff] (!%p261_p3)   ;;  %v4792_v4 = vld [vmem:[%s5737_s1 + $0x50] sm:$0xff] (!%p261_p3)   ;;  %v4793_v5 = vld [vmem:[%s5737_s1] sm:$0xff] (!%p261_p3)  }
   0x8   : > { %4111 = vmatpush3.bf16.msra.mxu1 (!%p261_p3), %v4788_v0  ;;  %4271 = vmatpush3.bf16.msra.mxu0 (!%p261_p3), %v4884_v1  ;;  %v4794_v13 = vld [vmem:[%s5737_s1 + $0x58] sm:$0xff] (!%p261_p3)   ;;  %v4956_v46 = vld [vmem:[%s5737_s1 + $0x60] sm:$0xff] (!%p261_p3)   ;;  %v4796_v49 = vld [vmem:[%s5737_s1 + $0x8] sm:$0xff] (!%p261_p3)  }
   0x9   : > { %4112 = vmatprep.subr.bf16.mxu1 (!%p261_p3), %v4790_v2  ;;  %4272 = vmatprep.subr.bf16.mxu0 (!%p261_p3), %v4895_v3 }
   0xc   : > { %4113 = vmatpush3.bf16.msra.mxu1 (!%p261_p3), %v4790_v2  ;;  %4273 = vmatpush3.bf16.msra.mxu0 (!%p261_p3), %v4895_v3 }
   0xd   : > { %4150 = vmatprep.subr.bf16.mxu1 (!%p261_p3), %v4793_v5  ;;  %4310 = vmatprep.subr.bf16.mxu0 (!%p261_p3), %v4792_v4 }
   0xe   : > { %s5747_s18 = smov (!%p316_p4, %s4820_s18), 1 }
   0xf   : > { %s4762_s30 = smul.u32 344, %s5747_s18 }
  0x11   : > { %s4909_s12 = scalar_lea.vmem %s5736_s0, %s4762_s30 }
  0x12   : > { %v414_v6 = vld [vmem:[%s4909_s12 + $0x1] sm:$0xff]  ;;  %v415_v7 = vld [vmem:[%s4909_s12 + $0x9] sm:$0xff]  ;;  %v1636_v8 = vld [vmem:[%s4909_s12 + $0x13] sm:$0xff] }
  0x13   : > { %v450_v9 = vpack.c.bf16 %v415_v7, %v414_v6  ;;  %v1637_v10 = vld [vmem:[%s4909_s12 + $0x1b] sm:$0xff]  ;;  %v416_v11 = vld [vmem:[%s4909_s12 + $0x11] sm:$0xff]  ;;  %v1638_v16 = vld [vmem:[%s4909_s12 + $0x23] sm:$0xff] }
  0x14   : > { %v417_v12 = vld [vmem:[%s4909_s12 + $0x19] sm:$0xff]  ;;  %v1672_v14 = vpack.c.bf16 %v1637_v10, %v1636_v8  ;;  %v1639_v17 = vld [vmem:[%s4909_s12 + $0x2b] sm:$0xff]  ;;  %v418_v18 = vld [vmem:[%s4909_s12 + $0x21] sm:$0xff] }
  0x15   : > { %v451_v15 = vpack.c.bf16 %v417_v12, %v416_v11  ;;  %4114 = vmatprep.mubr.msk.bf16.mxu1 %vm485_vm0, %v450_v9  ;;  %v1673_v19 = vpack.c.bf16 %v1639_v17, %v1638_v16  ;;  %v419_v20 = vld [vmem:[%s4909_s12 + $0x29] sm:$0xff]  ;;  %v1640_v21 = vld [vmem:[%s4909_s12 + $0x33] sm:$0xff]  ;;  %v1641_v22 = vld [vmem:[%s4909_s12 + $0x3b] sm:$0xff] }
  0x16   : > { %4274 = vmatprep.mubr.msk.bf16.mxu0 %vm485_vm0, %v1672_v14  ;;  %v452_v23 = vpack.c.bf16 %v419_v20, %v418_v18  ;;  %v1674_v24 = vpack.c.bf16 %v1641_v22, %v1640_v21  ;;  %v420_v25 = vld [vmem:[%s4909_s12 + $0x31] sm:$0xff]  ;;  %v421_v26 = vld [vmem:[%s4909_s12 + $0x39] sm:$0xff]  ;;  %v1642_v27 = vld [vmem:[%s4909_s12 + $0x43] sm:$0xff] }
  0x17   : > { %4115 = vmatmul.mubr.msk.bf16.vlgmr.msra.gmra.mrb[0].mxu1 %vm485_vm0, %v451_v15  ;;  %4275 = vmatmul.mubr.msk.bf16.vlgmr.msra.gmra.mrb[0].mxu0 %vm485_vm0, %v1673_v19  ;;  %v1643_v28 = vld [vmem:[%s4909_s12 + $0x4b] sm:$0xff]  ;;  %v422_v29 = vld [vmem:[%s4909_s12 + $0x41] sm:$0xff]  ;;  %v1644_v31 = vld [vmem:[%s4909_s12 + $0x53] sm:$0xff]  ;;  %v453_v33 = vpack.c.bf16 %v421_v26, %v420_v25 }
  0x18   : > { %4151 = vmatpush3.bf16.msra.mxu1 %v4793_v5  ;;  %4311 = vmatpush3.bf16.msra.mxu0 %v4792_v4  ;;  %v423_v30 = vld [vmem:[%s4909_s12 + $0x49] sm:$0xff]  ;;  %v1645_v32 = vld [vmem:[%s4909_s12 + $0x5b] sm:$0xff]  ;;  %v1675_v34 = vpack.c.bf16 %v1643_v28, %v1642_v27  ;;  %v424_v37 = vld [vmem:[%s4909_s12 + $0x51] sm:$0xff] }
  0x19   : > { %4118 = vmatprep.mubr.msk.bf16.mxu1 %vm485_vm0, %v452_v23  ;;  %4278 = vmatprep.mubr.msk.bf16.mxu0 %vm485_vm0, %v1674_v24  ;;  %v454_v35 = vpack.c.bf16 %v423_v30, %v422_v29  ;;  %v1676_v36 = vpack.c.bf16 %v1645_v32, %v1644_v31  ;;  %v425_v38 = vld [vmem:[%s4909_s12 + $0x59] sm:$0xff]  ;;  %v1646_v39 = vld [vmem:[%s4909_s12 + $0x63] sm:$0xff]  ;;  %v1647_v40 = vld [vmem:[%s4909_s12 + $0x6b] sm:$0xff] }
  0x1a   : > { %4312 = vmatprep.subr.bf16.mxu0 %v4794_v13  ;;  %v426_v41 = vld [vmem:[%s4909_s12 + $0x61] sm:$0xff]  ;;  %v427_v42 = vld [vmem:[%s4909_s12 + $0x69] sm:$0xff]  ;;  %v1648_v43 = vld [vmem:[%s4909_s12 + $0x73] sm:$0xff]  ;;  %v455_v45 = vpack.c.bf16 %v425_v38, %v424_v37  ;;  %v1677_v47 = vpack.c.bf16 %v1647_v40, %v1646_v39  ;;  %4152 = vmatprep.subr.bf16.mxu1 %v4796_v49 }
  0x1b   : > { %v1649_v44 = vld [vmem:[%s4909_s12 + $0x7b] sm:$0xff]  ;;  %v456_v48 = vpack.c.bf16 %v427_v42, %v426_v41  ;;  %v428_v51 = vld [vmem:[%s4909_s12 + $0x71] sm:$0xff]  ;;  %v1650_v53 = vld [vmem:[%s4909_s12 + $0x83] sm:$0xff] }
  0x1c   : > { %4313 = vmatpush3.bf16.msra.mxu0 %v4794_v13  ;;  %v1678_v50 = vpack.c.bf16 %v1649_v44, %v1648_v43  ;;  %v429_v52 = vld [vmem:[%s4909_s12 + $0x79] sm:$0xff]  ;;  %v1651_v54 = vld [vmem:[%s4909_s12 + $0x8b] sm:$0xff]  ;;  %v430_v55 = vld [vmem:[%s4909_s12 + $0x81] sm:$0xff]  ;;  %4153 = vmatpush3.bf16.msra.mxu1 %v4796_v49 }
  0x1d   : > { %4350 = vmatprep.subr.bf16.mxu0 %v4956_v46  ;;  %v431_v56 = vld [vmem:[%s4909_s12 + $0x89] sm:$0xff]  ;;  %v1652_v57 = vld [vmem:[%s4909_s12 + $0x93] sm:$0xff]  ;;  %v1653_v58 = vld [vmem:[%s4909_s12 + $0x9b] sm:$0xff]  ;;  %v457_v59 = vpack.c.bf16 %v429_v52, %v428_v51  ;;  %v1679_v60 = vpack.c.bf16 %v1651_v54, %v1650_v53 }
  0x1e   : > { %v458_v61 = vpack.c.bf16 %v431_v56, %v430_v55  ;;  %v1680_v62 = vpack.c.bf16 %v1653_v58, %v1652_v57  ;;  %v432_v63 = vld [vmem:[%s4909_s12 + $0x91] sm:$0xff]  ;;  %v433_v0 = vld [vmem:[%s4909_s12 + $0x99] sm:$0xff]  ;;  %v1654_v2 = vld [vmem:[%s4909_s12 + $0xa3] sm:$0xff] }
  0x1f   : > { %4119 = vmatmul.mubr.msk.bf16.gmra.mrb[4].mxu1 %vm485_vm0, %v453_v33  ;;  %4279 = vmatmul.mubr.msk.bf16.gmra.mrb[4].mxu0 %vm485_vm0, %v1675_v34  ;;  %v1655_v4 = vld [vmem:[%s4909_s12 + $0xab] sm:$0xff]  ;;  %v434_v5 = vld [vmem:[%s4909_s12 + $0xa1] sm:$0xff]  ;;  %v1974_v7 = vld [vmem:[%s4909_s12 + $0x14] sm:$0xff]  ;;  %v459_v9 = vpack.c.bf16 %v433_v0, %v432_v63 }
  0x20   : > { %4122 = vmatprep.mubr.msk.bf16.mxu1 %vm485_vm0, %v454_v35  ;;  %4282 = vmatprep.mubr.msk.bf16.mxu0 %vm485_vm0, %v1676_v36  ;;  %v435_v6 = vld [vmem:[%s4909_s12 + $0xa9] sm:$0xff]  ;;  %v1975_v8 = vld [vmem:[%s4909_s12 + $0x1c] sm:$0xff]  ;;  %v1681_v11 = vpack.c.bf16 %v1655_v4, %v1654_v2  ;;  %v436_v14 = vld [vmem:[%s4909_s12 + $0xb1] sm:$0xff] }
  0x21   : > { %v4989_v10 = vld [vmem:[%s5737_s1 + $0x20] sm:$0xff]   ;;  %v460_v12 = vpack.c.bf16 %v435_v6, %v434_v5  ;;  %v2010_v13 = vpack.c.bf16 %v1975_v8, %v1974_v7  ;;  %v1977_v17 = vld [vmem:[%s4909_s12 + $0x2c] sm:$0xff]  ;;  %v1978_v20 = vld [vmem:[%s4909_s12 + $0x34] sm:$0xff] }
  0x22   : > { %4190 = vmatprep.subr.bf16.mxu1 %v4989_v10  ;;  %v437_v15 = vld [vmem:[%s4909_s12 + $0xb9] sm:$0xff]  ;;  %v1976_v16 = vld [vmem:[%s4909_s12 + $0x24] sm:$0xff]  ;;  %v440_v27 = vld [vmem:[%s4909_s12 + $0xd1] sm:$0xff] }
  0x23   : > { %v438_v18 = vld [vmem:[%s4909_s12 + $0xc1] sm:$0xff]  ;;  %v439_v19 = vld [vmem:[%s4909_s12 + $0xc9] sm:$0xff]  ;;  %v461_v22 = vpack.c.bf16 %v437_v15, %v436_v14  ;;  %v5004_v23 = vpack.c.bf16 %v1977_v17, %v1976_v16  ;;  %v441_v28 = vld [vmem:[%s4909_s12 + $0xd9] sm:$0xff] }
  0x24   : > { %v1979_v21 = vld [vmem:[%s4909_s12 + $0x3c] sm:$0xff]  ;;  %v462_v24 = vpack.c.bf16 %v439_v19, %v438_v18  ;;  %v4797_v26 = vld [vmem:[%s5737_s1 + $0x68] sm:$0xff]   ;;  %v1982_v33 = vld [vmem:[%s4909_s12 + $0x54] sm:$0xff]  ;;  %v463_v36 = vpack.c.bf16 %v441_v28, %v440_v27 }
  0x25   : > { %v5006_v25 = vpack.c.bf16 %v1979_v21, %v1978_v20  ;;  %v1980_v29 = vld [vmem:[%s4909_s12 + $0x44] sm:$0xff]  ;;  %v1981_v30 = vld [vmem:[%s4909_s12 + $0x4c] sm:$0xff]  ;;  %v1983_v34 = vld [vmem:[%s4909_s12 + $0x5c] sm:$0xff] }
  0x26   : > { %v442_v31 = vld [vmem:[%s4909_s12 + $0xe1] sm:$0xff]  ;;  %v443_v32 = vld [vmem:[%s4909_s12 + $0xe9] sm:$0xff]  ;;  %v5031_v37 = vpack.c.bf16 %v1981_v30, %v1980_v29  ;;  %v5033_v39 = vpack.c.bf16 %v1983_v34, %v1982_v33  ;;  %v444_v40 = vld [vmem:[%s4909_s12 + $0xf1] sm:$0xff] }
  0x27   : > { %4123 = vmatmul.mubr.msk.bf16.gmra.mrb[8].mxu1 %vm485_vm0, %v455_v45  ;;  %4283 = vmatmul.mubr.msk.bf16.gmra.mrb[8].mxu0 %vm485_vm0, %v1677_v47  ;;  %v5029_v35 = vld [vmem:[%s5737_s1 + $0x70] sm:$0xff]   ;;  %v464_v38 = vpack.c.bf16 %v443_v32, %v442_v31  ;;  %v445_v41 = vld [vmem:[%s4909_s12 + $0xf9] sm:$0xff]  ;;  %v1984_v42 = vld [vmem:[%s4909_s12 + $0x64] sm:$0xff] }
  0x28   : > { %4126 = vmatprep.mubr.msk.bf16.mxu1 %vm485_vm0, %v456_v48  ;;  %4286 = vmatprep.mubr.msk.bf16.mxu0 %vm485_vm0, %v1678_v50  ;;  %v1985_v43 = vld [vmem:[%s4909_s12 + $0x6c] sm:$0xff]  ;;  %v446_v44 = vld [vmem:[%s4909_s12 + $0x101] sm:$0xff]  ;;  %v465_v48 = vpack.c.bf16 %v445_v41, %v444_v40  ;;  %v449_v53 = vld [vmem:[%s4909_s12 + $0x119] sm:$0xff] }
  0x29   : > { %v447_v45 = vld [vmem:[%s4909_s12 + $0x109] sm:$0xff]  ;;  %v1987_v47 = vld [vmem:[%s4909_s12 + $0x7c] sm:$0xff]  ;;  %v5050_v49 = vpack.c.bf16 %v1985_v43, %v1984_v42  ;;  %v448_v52 = vld [vmem:[%s4909_s12 + $0x111] sm:$0xff] }
  0x2a   : > { %v466_v50 = vpack.c.bf16 %v447_v45, %v446_v44  ;;  %v1988_v54 = vld [vmem:[%s4909_s12 + $0x84] sm:$0xff]  ;;  %v1989_v55 = vld [vmem:[%s4909_s12 + $0x8c] sm:$0xff]  ;;  %v1990_v58 = vld [vmem:[%s4909_s12 + $0x94] sm:$0xff] }
  0x2b   : > { %v356_v56 = vld [vmem:[%s4909_s12] sm:$0xff]  ;;  %v357_v57 = vld [vmem:[%s4909_s12 + $0x8] sm:$0xff]  ;;  %v358_v0 = vld [vmem:[%s4909_s12 + $0x10] sm:$0xff] }
  0x2c   : > { %v359_v2 = vld [vmem:[%s4909_s12 + $0x18] sm:$0xff]  ;;  %v1992_v4 = vld [vmem:[%s4909_s12 + $0xa4] sm:$0xff]  ;;  %v1993_v5 = vld [vmem:[%s4909_s12 + $0xac] sm:$0xff] }
  0x2d   : > { %v360_v6 = vld [vmem:[%s4909_s12 + $0x20] sm:$0xff]  ;;  %v361_v7 = vld [vmem:[%s4909_s12 + $0x28] sm:$0xff]  ;;  %v1994_v8 = vld [vmem:[%s4909_s12 + $0xb4] sm:$0xff] }
  0x2e   : > { %v4800_v15 = vld [vmem:[%s5737_s1 + $0x28] sm:$0xff]   ;;  %v362_v16 = vld [vmem:[%s4909_s12 + $0x30] sm:$0xff]  ;;  %v363_v17 = vld [vmem:[%s4909_s12 + $0x38] sm:$0xff] }
  0x2f   : > { %4127 = vmatmul.mubr.msk.bf16.gmra.mrb[12].mxu1 %vm485_vm0, %v457_v59  ;;  %4287 = vmatmul.mubr.msk.bf16.gmra.mrb[12].mxu0 %vm485_vm0, %v1679_v60  ;;  %v1991_v59 = vld [vmem:[%s4909_s12 + $0x9c] sm:$0xff]  ;;  %v467_v60 = vpack.c.bf16 %v449_v53, %v448_v52  ;;  %v1996_v18 = vld [vmem:[%s4909_s12 + $0xc4] sm:$0xff]  ;;  %v1997_v19 = vld [vmem:[%s4909_s12 + $0xcc] sm:$0xff]  ;;  %v395_v27 = vpack.c.bf16 %v363_v17, %v362_v16 }
  0x30   : > { %4130 = vmatprep.mubr.msk.bf16.mxu1 %vm485_vm0, %v458_v61  ;;  %4290 = vmatprep.mubr.msk.bf16.mxu0 %vm485_vm0, %v1680_v62  ;;  %v5068_v61 = vpack.c.bf16 %v1989_v55, %v1988_v54  ;;  %v392_v62 = vpack.c.bf16 %v357_v57, %v356_v56  ;;  %v5070_v63 = vpack.c.bf16 %v1991_v59, %v1990_v58  ;;  %v364_v20 = vld [vmem:[%s4909_s12 + $0x40] sm:$0xff]  ;;  %v365_v21 = vld [vmem:[%s4909_s12 + $0x48] sm:$0xff]  ;;  %v366_v30 = vld [vmem:[%s4909_s12 + $0x50] sm:$0xff] }
  0x31   : > { %v5113_v28 = vpack.c.bf16 %v1997_v19, %v1996_v18  ;;  %v367_v31 = vld [vmem:[%s4909_s12 + $0x58] sm:$0xff]  ;;  %v2000_v32 = vld [vmem:[%s4909_s12 + $0xe4] sm:$0xff]  ;;  %v2001_v33 = vld [vmem:[%s4909_s12 + $0xec] sm:$0xff] }
  0x32   : > { %v368_v34 = vld [vmem:[%s4909_s12 + $0x60] sm:$0xff]  ;;  %v397_v41 = vpack.c.bf16 %v367_v31, %v366_v30  ;;  %v5132_v42 = vpack.c.bf16 %v2001_v33, %v2000_v32  ;;  %v370_v45 = vld [vmem:[%s4909_s12 + $0x70] sm:$0xff]  ;;  %v373_v52 = vld [vmem:[%s4909_s12 + $0x88] sm:$0xff] }
  0x33   : > { %v2003_v40 = vld [vmem:[%s4909_s12 + $0xfc] sm:$0xff]  ;;  %v2006_v53 = vld [vmem:[%s4909_s12 + $0x114] sm:$0xff]  ;;  %v961_v32 = vld [vmem:[%s4909_s12 + $0xa] sm:$0xff] }
  0x34   : > { %v2007_v54 = vld [vmem:[%s4909_s12 + $0x11c] sm:$0xff]  ;;  %v374_v59 = vld [vmem:[%s4909_s12 + $0x90] sm:$0xff] }
  0x35   : > { %v5152_v58 = vpack.c.bf16 %v2007_v54, %v2006_v53  ;;  %v4801_v17 = vld [vmem:[%s5737_s1 + $0x78] sm:$0xff]   ;;  %v382_v18 = vld [vmem:[%s4909_s12 + $0xd0] sm:$0xff]  ;;  %v976_v54 = vld [vmem:[%s4909_s12 + $0x82] sm:$0xff] }
  0x36   : > { %v383_v19 = vld [vmem:[%s4909_s12 + $0xd8] sm:$0xff] }
  0x37   : > { %4131 = vmatmul.mubr.msk.bf16.gmra.mrb[16].mxu1 %vm485_vm0, %v459_v9  ;;  %4291 = vmatmul.mubr.msk.bf16.gmra.mrb[16].mxu0 %vm485_vm0, %v1681_v11  ;;  %v1995_v9 = vld [vmem:[%s4909_s12 + $0xbc] sm:$0xff]  ;;  %v393_v11 = vpack.c.bf16 %v359_v2, %v358_v0  ;;  %v2009_v0 = vld [vmem:[%s4909_s12 + $0x12c] sm:$0xff] }
  0x38   : > { %4134 = vmatprep.mubr.msk.bf16.mxu1 %vm485_vm0, %v460_v12  ;;  %4314 = vmatprep.mubr.msk.bf16.mxu0 %vm485_vm0, %v2010_v13  ;;  %v5086_v12 = vpack.c.bf16 %v1993_v5, %v1992_v4  ;;  %v394_v13 = vpack.c.bf16 %v361_v7, %v360_v6  ;;  %v5088_v14 = vpack.c.bf16 %v1995_v9, %v1994_v8  ;;  %v376_v2 = vld [vmem:[%s4909_s12 + $0xa0] sm:$0xff]  ;;  %v377_v4 = vld [vmem:[%s4909_s12 + $0xa8] sm:$0xff]  ;;  %v378_v8 = vld [vmem:[%s4909_s12 + $0xb0] sm:$0xff] }
  0x39   : > { %v402_v7 = vpack.c.bf16 %v377_v4, %v376_v2  ;;  %v379_v9 = vld [vmem:[%s4909_s12 + $0xb8] sm:$0xff]  ;;  %v981_v2 = vld [vmem:[%s4909_s12 + $0xaa] sm:$0xff] }
  0x3a   : > { %v391_v31 = vld [vmem:[%s4909_s12 + $0x118] sm:$0xff]  ;;  %v2650_v4 = vld [vmem:[%s4909_s12 + $0x25] sm:$0xff] }
  0x3f   : > { %4135 = vmatmul.mubr.msk.bf16.gmra.mrb[20].mxu1 %vm485_vm0, %v461_v22  ;;  %4315 = vmatmul.mubr.msk.bf16.vlgmr.msra.gmra.mrb[0].mxu0 %vm485_vm0, %v5004_v23  ;;  %v1998_v22 = vld [vmem:[%s4909_s12 + $0xd4] sm:$0xff] }
  0x40   : > { %4138 = vmatprep.mubr.msk.bf16.mxu1 %vm485_vm0, %v462_v24  ;;  %4351 = vmatpush3.bf16.msra.mxu0 %v4956_v46  ;;  %v1986_v46 = vld [vmem:[%s4909_s12 + $0x74] sm:$0xff]  ;;  %v1999_v24 = vld [vmem:[%s4909_s12 + $0xdc] sm:$0xff] }
  0x41   : > { %4318 = vmatprep.mubr.msk.bf16.mxu0 %vm485_vm0, %v5006_v25  ;;  %4352 = vmatprep.subr.bf16.mxu0 %v4797_v26  ;;  %v5052_v51 = vpack.c.bf16 %v1987_v47, %v1986_v46  ;;  %v5115_v29 = vpack.c.bf16 %v1999_v24, %v1998_v22  ;;  %v371_v46 = vld [vmem:[%s4909_s12 + $0x78] sm:$0xff]  ;;  %v2004_v47 = vld [vmem:[%s4909_s12 + $0x104] sm:$0xff] }
  0x42   : > { %v399_v55 = vpack.c.bf16 %v371_v46, %v370_v45  ;;  %v388_v24 = vld [vmem:[%s4909_s12 + $0x100] sm:$0xff]  ;;  %v969_v46 = vld [vmem:[%s4909_s12 + $0x4a] sm:$0xff] }
  0x43   : > { %v968_v45 = vld [vmem:[%s4909_s12 + $0x42] sm:$0xff] }
  0x44   : > { %4353 = vmatpush3.bf16.msra.mxu0 %v4797_v26  ;;  %v5111_v26 = vld [vmem:[%s5737_s1 + $0x30] sm:$0xff]  }
  0x45   : > { %4390 = vmatprep.subr.bf16.mxu0 %v5029_v35 }
  0x47   : > { %4139 = vmatmul.mubr.msk.bf16.gmra.mrb[24].mxu1 %vm485_vm0, %v463_v36  ;;  %4319 = vmatmul.mubr.msk.bf16.gmra.mrb[4].mxu0 %vm485_vm0, %v5031_v37  ;;  %v369_v36 = vld [vmem:[%s4909_s12 + $0x68] sm:$0xff] }
  0x48   : > { %4142 = vmatprep.mubr.msk.bf16.mxu1 %vm485_vm0, %v464_v38  ;;  %4322 = vmatprep.mubr.msk.bf16.mxu0 %vm485_vm0, %v5033_v39  ;;  %v2002_v38 = vld [vmem:[%s4909_s12 + $0xf4] sm:$0xff]  ;;  %v398_v43 = vpack.c.bf16 %v369_v36, %v368_v34 }
  0x49   : > { %v5134_v44 = vpack.c.bf16 %v2003_v40, %v2002_v38  ;;  %v963_v36 = vld [vmem:[%s4909_s12 + $0x1a] sm:$0xff]  ;;  %v965_v38 = vld [vmem:[%s4909_s12 + $0x2a] sm:$0xff] }
  0x4f   : > { %4143 = vmatmul.mubr.msk.bf16.gmra.mrb[28].mxu1 %vm485_vm0, %v465_v48  ;;  %4323 = vmatmul.mubr.msk.bf16.gmra.mrb[8].mxu0 %vm485_vm0, %v5050_v49  ;;  %v2005_v48 = vld [vmem:[%s4909_s12 + $0x10c] sm:$0xff] }
  0x50   : > { %4146 = vmatprep.mubr.msk.bf16.mxu1 %vm485_vm0, %v466_v50  ;;  %4326 = vmatprep.mubr.msk.bf16.mxu0 %vm485_vm0, %v5052_v51  ;;  %v372_v50 = vld [vmem:[%s4909_s12 + $0x80] sm:$0xff]  ;;  %v5150_v56 = vpack.c.bf16 %v2005_v48, %v2004_v47 }
  0x51   : > { %v400_v57 = vpack.c.bf16 %v373_v52, %v372_v50  ;;  %v972_v48 = vld [vmem:[%s4909_s12 + $0x62] sm:$0xff]  ;;  %v973_v50 = vld [vmem:[%s4909_s12 + $0x6a] sm:$0xff] }
  0x52   : > { %v5267_v53 = vpack.c.bf16 %v973_v50, %v972_v48  ;;  %v994_v50 = vld [vmem:[%s4909_s12 + $0x112] sm:$0xff] }
  0x57   : > { %4147 = vmatmul.mubr.msk.bf16.gmra.mrb[32].mxu1 %vm485_vm0, %v467_v60  ;;  %4327 = vmatmul.mubr.msk.bf16.gmra.mrb[12].mxu0 %vm485_vm0, %v5068_v61  ;;  %v375_v60 = vld [vmem:[%s4909_s12 + $0x98] sm:$0xff] }
  0x58   : > { %4154 = vmatprep.mubr.msk.bf16.mxu1 %vm485_vm0, %v392_v62  ;;  %4330 = vmatprep.mubr.msk.bf16.mxu0 %vm485_vm0, %v5070_v63  ;;  %v2008_v62 = vld [vmem:[%s4909_s12 + $0x124] sm:$0xff]  ;;  %v401_v5 = vpack.c.bf16 %v375_v60, %v374_v59  ;;  %v979_v60 = vld [vmem:[%s4909_s12 + $0x9a] sm:$0xff] }
  0x59   : > { %v5166_v6 = vpack.c.bf16 %v2009_v0, %v2008_v62  ;;  %v2347_v62 = vld [vmem:[%s4909_s12 + $0x13c] sm:$0xff] }
  0x5a   : > { %v980_v0 = vld [vmem:[%s4909_s12 + $0xa2] sm:$0xff] }
  0x5f   : > { %4155 = vmatmul.mubr.msk.bf16.vlgmr.msra.gmra.mrb[0].mxu1 %vm485_vm0, %v393_v11  ;;  %4331 = vmatmul.mubr.msk.bf16.gmra.mrb[16].mxu0 %vm485_vm0, %v5086_v12  ;;  %v380_v11 = vld [vmem:[%s4909_s12 + $0xc0] sm:$0xff] }
  0x60   : > { %4158 = vmatprep.mubr.msk.bf16.mxu1 %vm485_vm0, %v394_v13  ;;  %4334 = vmatprep.mubr.msk.bf16.mxu0 %vm485_vm0, %v5088_v14  ;;  %v381_v13 = vld [vmem:[%s4909_s12 + $0xc8] sm:$0xff] }
  0x61   : > { %4191 = vmatpush3.bf16.msra.mxu1 %v4989_v10  ;;  %v396_v10 = vpack.c.bf16 %v365_v21, %v364_v20  ;;  %v404_v16 = vpack.c.bf16 %v381_v13, %v380_v11  ;;  %v385_v20 = vld [vmem:[%s4909_s12 + $0xe8] sm:$0xff]  ;;  %v405_v21 = vpack.c.bf16 %v383_v19, %v382_v18  ;;  %v983_v11 = vld [vmem:[%s4909_s12 + $0xba] sm:$0xff] }
  0x62   : > { %4192 = vmatprep.subr.bf16.mxu1 %v4800_v15  ;;  %v2652_v13 = vld [vmem:[%s4909_s12 + $0x35] sm:$0xff]  ;;  %v2654_v18 = vld [vmem:[%s4909_s12 + $0x45] sm:$0xff]  ;;  %v2655_v19 = vld [vmem:[%s4909_s12 + $0x4d] sm:$0xff] }
  0x65   : > { %4193 = vmatpush3.bf16.msra.mxu1 %v4800_v15  ;;  %v403_v15 = vpack.c.bf16 %v379_v9, %v378_v8  ;;  %v5303_v8 = vpack.c.bf16 %v981_v2, %v980_v0  ;;  %v2668_v0 = vld [vmem:[%s4909_s12 + $0xb5] sm:$0xff]  ;;  %v2669_v2 = vld [vmem:[%s4909_s12 + $0xbd] sm:$0xff] }
  0x66   : > { %4230 = vmatprep.subr.bf16.mxu1 %v5111_v26 }
  0x67   : > { %4159 = vmatmul.mubr.msk.bf16.gmra.mrb[4].mxu1 %vm485_vm0, %v395_v27  ;;  %4335 = vmatmul.mubr.msk.bf16.gmra.mrb[20].mxu0 %vm485_vm0, %v5113_v28  ;;  %v389_v27 = vld [vmem:[%s4909_s12 + $0x108] sm:$0xff] }
  0x68   : > { %4162 = vmatprep.mubr.msk.bf16.mxu1 %vm485_vm0, %v396_v10  ;;  %4338 = vmatprep.mubr.msk.bf16.mxu0 %vm485_vm0, %v5115_v29  ;;  %v408_v30 = vpack.c.bf16 %v389_v27, %v388_v24  ;;  %v987_v24 = vld [vmem:[%s4909_s12 + $0xda] sm:$0xff] }
  0x69   : > { %v2656_v27 = vld [vmem:[%s4909_s12 + $0x55] sm:$0xff] }
  0x6f   : > { %4163 = vmatmul.mubr.msk.bf16.gmra.mrb[8].mxu1 %vm485_vm0, %v397_v41  ;;  %4339 = vmatmul.mubr.msk.bf16.gmra.mrb[24].mxu0 %vm485_vm0, %v5132_v42 }
  0x70   : > { %4166 = vmatprep.mubr.msk.bf16.mxu1 %vm485_vm0, %v398_v43  ;;  %4342 = vmatprep.mubr.msk.bf16.mxu0 %vm485_vm0, %v5134_v44  ;;  %v4804_v43 = vld [vmem:[%s5737_s1 + $0x38] sm:$0xff]  }
  0x77   : > { %4167 = vmatmul.mubr.msk.bf16.gmra.mrb[12].mxu1 %vm485_vm0, %v399_v55  ;;  %4343 = vmatmul.mubr.msk.bf16.gmra.mrb[28].mxu0 %vm485_vm0, %v5150_v56  ;;  %v977_v55 = vld [vmem:[%s4909_s12 + $0x8a] sm:$0xff] }
  0x78   : > { %4170 = vmatprep.mubr.msk.bf16.mxu1 %vm485_vm0, %v400_v57  ;;  %4346 = vmatprep.mubr.msk.bf16.mxu0 %vm485_vm0, %v5152_v58  ;;  %v5283_v59 = vpack.c.bf16 %v977_v55, %v976_v54  ;;  %v2665_v54 = vld [vmem:[%s4909_s12 + $0x9d] sm:$0xff]  ;;  %v2666_v55 = vld [vmem:[%s4909_s12 + $0xa5] sm:$0xff] }
  0x7f   : > { %4171 = vmatmul.mubr.msk.bf16.gmra.mrb[16].mxu1 %vm485_vm0, %v401_v5  ;;  %4347 = vmatmul.mubr.msk.bf16.gmra.mrb[32].mxu0 %vm485_vm0, %v5166_v6 }
  0x80   : > { %4174 = vmatprep.mubr.msk.bf16.mxu1 %vm485_vm0, %v402_v7  ;;  %4354 = vmatprep.mubr.msk.bf16.mxu0 %vm485_vm0, %v5004_v23  ;;  %v384_v23 = vld [vmem:[%s4909_s12 + $0xe0] sm:$0xff] }
  0x81   : > { %v406_v22 = vpack.c.bf16 %v385_v20, %v384_v23 }
  0x87   : > { %4175 = vmatmul.mubr.msk.bf16.gmra.mrb[20].mxu1 %vm485_vm0, %v403_v15  ;;  %4355 = vmatmul.mubr.msk.bf16.vlgmr.msra.gmra.mrb[0].mxu0 %vm485_vm0, %v5006_v25  ;;  %v5195_v25 = vld [vmem:[%s5737_s1 + $0x80] sm:$0xff]  }
  0x88   : > { %4178 = vmatprep.mubr.msk.bf16.mxu1 %vm485_vm0, %v404_v16  ;;  %4391 = vmatpush3.bf16.msra.mxu0 %v5029_v35  ;;  %v386_v35 = vld [vmem:[%s4909_s12 + $0xf0] sm:$0xff]  ;;  %v2653_v15 = vld [vmem:[%s4909_s12 + $0x3d] sm:$0xff] }
  0x89   : > { %4358 = vmatprep.mubr.msk.bf16.mxu0 %vm485_vm0, %v5031_v37  ;;  %4392 = vmatprep.subr.bf16.mxu0 %v4801_v17  ;;  %v387_v37 = vld [vmem:[%s4909_s12 + $0xf8] sm:$0xff]  ;;  %v984_v16 = vld [vmem:[%s4909_s12 + $0xc2] sm:$0xff]  ;;  %v2687_v20 = vpack.c.bf16 %v2653_v15, %v2652_v13  ;;  %v2675_v13 = vld [vmem:[%s4909_s12 + $0xed] sm:$0xff] }
  0x8a   : > { %v407_v10 = vpack.c.bf16 %v387_v37, %v386_v35  ;;  %v4805_v35 = vld [vmem:[%s5737_s1 + $0x88] sm:$0xff]   ;;  %v986_v37 = vld [vmem:[%s4909_s12 + $0xd2] sm:$0xff] }
  0x8c   : > { %4393 = vmatpush3.bf16.msra.mxu0 %v4801_v17  ;;  %v985_v17 = vld [vmem:[%s4909_s12 + $0xca] sm:$0xff] }
  0x8d   : > { %4430 = vmatprep.subr.bf16.mxu0 %v5195_v25 }
  0x8f   : > { %4179 = vmatmul.mubr.msk.bf16.gmra.mrb[24].mxu1 %vm485_vm0, %v405_v21  ;;  %4359 = vmatmul.mubr.msk.bf16.gmra.mrb[4].mxu0 %vm485_vm0, %v5033_v39  ;;  %v390_v39 = vld [vmem:[%s4909_s12 + $0x110] sm:$0xff]  ;;  %v5321_v21 = vpack.c.bf16 %v985_v17, %v984_v16  ;;  %v2678_v16 = vld [vmem:[%s4909_s12 + $0x105] sm:$0xff] }
  0x90   : > { %4182 = vmatprep.mubr.msk.bf16.mxu1 %vm485_vm0, %v406_v22  ;;  %4362 = vmatprep.mubr.msk.bf16.mxu0 %vm485_vm0, %v5050_v49  ;;  %v960_v49 = vld [vmem:[%s4909_s12 + $0x2] sm:$0xff]  ;;  %v409_v33 = vpack.c.bf16 %v391_v31, %v390_v39  ;;  %v2688_v22 = vpack.c.bf16 %v2655_v19, %v2654_v18  ;;  %v989_v39 = vld [vmem:[%s4909_s12 + $0xea] sm:$0xff] }
  0x91   : > { %v996_v34 = vpack.c.bf16 %v961_v32, %v960_v49  ;;  %v2658_v31 = vld [vmem:[%s4909_s12 + $0x65] sm:$0xff]  ;;  %v2659_v49 = vld [vmem:[%s4909_s12 + $0x6d] sm:$0xff]  ;;  %v5341_v32 = vpack.c.bf16 %v987_v24, %v986_v37 }
  0x92   : > { %v2679_v17 = vld [vmem:[%s4909_s12 + $0x10d] sm:$0xff]  ;;  %v2682_v19 = vld [vmem:[%s4909_s12 + $0x125] sm:$0xff] }
  0x93   : > { %v2988_v37 = vld [vmem:[%s4909_s12 + $0x26] sm:$0xff]  ;;  %v2989_v24 = vld [vmem:[%s4909_s12 + $0x2e] sm:$0xff] }
  0x97   : > { %4183 = vmatmul.mubr.msk.bf16.gmra.mrb[28].mxu1 %vm485_vm0, %v407_v10  ;;  %4363 = vmatmul.mubr.msk.bf16.gmra.mrb[8].mxu0 %vm485_vm0, %v5052_v51  ;;  %v962_v51 = vld [vmem:[%s4909_s12 + $0x12] sm:$0xff]  ;;  %v2657_v10 = vld [vmem:[%s4909_s12 + $0x5d] sm:$0xff] }
  0x98   : > { %4186 = vmatprep.mubr.msk.bf16.mxu1 %vm485_vm0, %v408_v30  ;;  %4366 = vmatprep.mubr.msk.bf16.mxu0 %vm485_vm0, %v5068_v61  ;;  %v964_v61 = vld [vmem:[%s4909_s12 + $0x22] sm:$0xff]  ;;  %v5228_v40 = vpack.c.bf16 %v963_v36, %v962_v51  ;;  %v990_v51 = vld [vmem:[%s4909_s12 + $0xf2] sm:$0xff]  ;;  %v991_v36 = vld [vmem:[%s4909_s12 + $0xfa] sm:$0xff] }
  0x99   : > { %v5230_v41 = vpack.c.bf16 %v965_v38, %v964_v61  ;;  %v988_v30 = vld [vmem:[%s4909_s12 + $0xe2] sm:$0xff]  ;;  %v2660_v61 = vld [vmem:[%s4909_s12 + $0x75] sm:$0xff] }
  0x9a   : > { %v2661_v38 = vld [vmem:[%s4909_s12 + $0x7d] sm:$0xff] }
  0x9f   : > { %4187 = vmatmul.mubr.msk.bf16.gmra.mrb[32].mxu1 %vm485_vm0, %v409_v33  ;;  %4367 = vmatmul.mubr.msk.bf16.gmra.mrb[12].mxu0 %vm485_vm0, %v5070_v63  ;;  %v966_v63 = vld [vmem:[%s4909_s12 + $0x32] sm:$0xff]  ;;  %v2689_v33 = vpack.c.bf16 %v2657_v10, %v2656_v27  ;;  %v3024_v10 = vpack.c.bf16 %v2989_v24, %v2988_v37  ;;  %v3016_v37 = vld [vmem:[%s4909_s12 + $0x106] sm:$0xff] }
  0xa0   : > { %4194 = vmatprep.mubr.msk.bf16.mxu1 %vm485_vm0, %v996_v34  ;;  %4370 = vmatprep.mubr.msk.bf16.mxu0 %vm485_vm0, %v5086_v12  ;;  %v967_v12 = vld [vmem:[%s4909_s12 + $0x3a] sm:$0xff]  ;;  %v2690_v34 = vpack.c.bf16 %v2659_v49, %v2658_v31  ;;  %v3017_v24 = vld [vmem:[%s4909_s12 + $0x10e] sm:$0xff] }
  0xa1   : > { %v5248_v47 = vpack.c.bf16 %v967_v12, %v966_v63  ;;  %v993_v63 = vld [vmem:[%s4909_s12 + $0x10a] sm:$0xff] }
  0xa2   : > { %v2662_v12 = vld [vmem:[%s4909_s12 + $0x85] sm:$0xff] }
  0xa7   : > { %4195 = vmatmul.mubr.msk.bf16.vlgmr.msra.gmra.mrb[0].mxu1 %vm485_vm0, %v5228_v40  ;;  %4371 = vmatmul.mubr.msk.bf16.gmra.mrb[16].mxu0 %vm485_vm0, %v5088_v14  ;;  %v5250_v14 = vpack.c.bf16 %v969_v46, %v968_v45  ;;  %v2663_v45 = vld [vmem:[%s4909_s12 + $0x8d] sm:$0xff]  ;;  %v5359_v46 = vpack.c.bf16 %v991_v36, %v990_v51 }
  0xa8   : > { %4198 = vmatprep.mubr.msk.bf16.mxu1 %vm485_vm0, %v5230_v41  ;;  %4374 = vmatprep.mubr.msk.bf16.mxu0 %vm485_vm0, %v5113_v28  ;;  %v971_v28 = vld [vmem:[%s4909_s12 + $0x5a] sm:$0xff]  ;;  %v2692_v48 = vpack.c.bf16 %v2663_v45, %v2662_v12  ;;  %v1333_v12 = vld [vmem:[%s4909_s12 + $0x12a] sm:$0xff] }
  0xa9   : > { %4231 = vmatpush3.bf16.msra.mxu1 %v5111_v26  ;;  %v970_v26 = vld [vmem:[%s4909_s12 + $0x52] sm:$0xff] }
  0xaa   : > { %4232 = vmatprep.subr.bf16.mxu1 %v4804_v43  ;;  %v5265_v52 = vpack.c.bf16 %v971_v28, %v970_v26  ;;  %v2691_v26 = vpack.c.bf16 %v2661_v38, %v2660_v61  ;;  %v3000_v61 = vld [vmem:[%s4909_s12 + $0x86] sm:$0xff]  ;;  %v3001_v38 = vld [vmem:[%s4909_s12 + $0x8e] sm:$0xff]  ;;  %v3002_v45 = vld [vmem:[%s4909_s12 + $0x96] sm:$0xff] }
  0xad   : > { %4233 = vmatpush3.bf16.msra.mxu1 %v4804_v43  ;;  %v992_v43 = vld [vmem:[%s4909_s12 + $0x102] sm:$0xff] }
  0xae   : > { %4470 = vmatprep.subr.bf16.mxu1 %v4884_v1  ;;  %v5361_v28 = vpack.c.bf16 %v993_v63, %v992_v43  ;;  %v3030_v63 = vpack.c.bf16 %v3001_v38, %v3000_v61 }
  0xaf   : > { %4199 = vmatmul.mubr.msk.bf16.gmra.mrb[4].mxu1 %vm485_vm0, %v5248_v47  ;;  %4375 = vmatmul.mubr.msk.bf16.gmra.mrb[20].mxu0 %vm485_vm0, %v5115_v29  ;;  %v974_v29 = vld [vmem:[%s4909_s12 + $0x72] sm:$0xff] }
  0xb0   : > { %4202 = vmatprep.mubr.msk.bf16.mxu1 %vm485_vm0, %v5250_v14  ;;  %4378 = vmatprep.mubr.msk.bf16.mxu0 %vm485_vm0, %v5132_v42  ;;  %v975_v42 = vld [vmem:[%s4909_s12 + $0x7a] sm:$0xff] }
  0xb1   : > { %v5281_v57 = vpack.c.bf16 %v975_v42, %v974_v29  ;;  %v995_v29 = vld [vmem:[%s4909_s12 + $0x11a] sm:$0xff] }
  0xb2   : > { %v2664_v42 = vld [vmem:[%s4909_s12 + $0x95] sm:$0xff] }
  0xb7   : > { %4203 = vmatmul.mubr.msk.bf16.gmra.mrb[8].mxu1 %vm485_vm0, %v5265_v52  ;;  %4379 = vmatmul.mubr.msk.bf16.gmra.mrb[24].mxu0 %vm485_vm0, %v5134_v44  ;;  %v978_v44 = vld [vmem:[%s4909_s12 + $0x92] sm:$0xff] }
  0xb8   : > { %4206 = vmatprep.mubr.msk.bf16.mxu1 %vm485_vm0, %v5267_v53  ;;  %4382 = vmatprep.mubr.msk.bf16.mxu0 %vm485_vm0, %v5150_v56  ;;  %v2346_v56 = vld [vmem:[%s4909_s12 + $0x134] sm:$0xff]  ;;  %v5301_v5 = vpack.c.bf16 %v979_v60, %v978_v44  ;;  %v5375_v60 = vpack.c.bf16 %v995_v29, %v994_v50 }
  0xb9   : > { %v2365_v7 = vpack.c.bf16 %v2347_v62, %v2346_v56  ;;  %v2667_v44 = vld [vmem:[%s4909_s12 + $0xad] sm:$0xff]  ;;  %v2693_v56 = vpack.c.bf16 %v2665_v54, %v2664_v42 }
  0xba   : > { %v2694_v62 = vpack.c.bf16 %v2667_v44, %v2666_v55  ;;  %v3005_v50 = vld [vmem:[%s4909_s12 + $0xae] sm:$0xff]  ;;  %v1658_v44 = vld [vmem:[%s4909_s12 + $0xc3] sm:$0xff] }
  0xbf   : > { %4207 = vmatmul.mubr.msk.bf16.gmra.mrb[12].mxu1 %vm485_vm0, %v5281_v57  ;;  %4383 = vmatmul.mubr.msk.bf16.gmra.mrb[28].mxu0 %vm485_vm0, %v5152_v58  ;;  %v2651_v58 = vld [vmem:[%s4909_s12 + $0x2d] sm:$0xff] }
  0xc0   : > { %4210 = vmatprep.mubr.msk.bf16.mxu1 %vm485_vm0, %v5283_v59  ;;  %4386 = vmatprep.mubr.msk.bf16.mxu0 %vm485_vm0, %v5166_v6  ;;  %v2686_v9 = vpack.c.bf16 %v2651_v58, %v2650_v4  ;;  %v982_v6 = vld [vmem:[%s4909_s12 + $0xb2] sm:$0xff]  ;;  %v2670_v4 = vld [vmem:[%s4909_s12 + $0xc5] sm:$0xff] }
  0xc1   : > { %v5319_v23 = vpack.c.bf16 %v983_v11, %v982_v6  ;;  %v2671_v58 = vld [vmem:[%s4909_s12 + $0xcd] sm:$0xff]  ;;  %v2673_v6 = vld [vmem:[%s4909_s12 + $0xdd] sm:$0xff]  ;;  %v2674_v11 = vld [vmem:[%s4909_s12 + $0xe5] sm:$0xff] }
  0xc2   : > { %v2698_v15 = vpack.c.bf16 %v2675_v13, %v2674_v11  ;;  %v1662_v11 = vld [vmem:[%s4909_s12 + $0xe3] sm:$0xff]  ;;  %v1663_v13 = vld [vmem:[%s4909_s12 + $0xeb] sm:$0xff] }
  0xc7   : > { %4211 = vmatmul.mubr.msk.bf16.gmra.mrb[16].mxu1 %vm485_vm0, %v5301_v5  ;;  %4387 = vmatmul.mubr.msk.bf16.gmra.mrb[32].mxu0 %vm485_vm0, %v2365_v7  ;;  %v2695_v7 = vpack.c.bf16 %v2669_v2, %v2668_v0  ;;  %v1660_v0 = vld [vmem:[%s4909_s12 + $0xd3] sm:$0xff]  ;;  %v1661_v2 = vld [vmem:[%s4909_s12 + $0xdb] sm:$0xff] }
  0xc8   : > { %4214 = vmatprep.mubr.msk.bf16.mxu1 %vm485_vm0, %v5303_v8  ;;  %4394 = vmatprep.mubr.msk.bf16.mxu0 %vm485_vm0, %v2686_v9  ;;  %v2696_v9 = vpack.c.bf16 %v2671_v58, %v2670_v4  ;;  %v3008_v4 = vld [vmem:[%s4909_s12 + $0xc6] sm:$0xff]  ;;  %v3009_v58 = vld [vmem:[%s4909_s12 + $0xce] sm:$0xff] }
  0xcf   : > { %4215 = vmatmul.mubr.msk.bf16.gmra.mrb[20].mxu1 %vm485_vm0, %v5319_v23  ;;  %4395 = vmatmul.mubr.msk.bf16.vlgmr.msra.gmra.mrb[0].mxu0 %vm485_vm0, %v2687_v20  ;;  %v2683_v20 = vld [vmem:[%s4909_s12 + $0x12d] sm:$0xff] }
  0xd0   : > { %4218 = vmatprep.mubr.msk.bf16.mxu1 %vm485_vm0, %v5321_v21  ;;  %4431 = vmatpush3.bf16.msra.mxu0 %v5195_v25  ;;  %v5343_v25 = vpack.c.bf16 %v989_v39, %v988_v30  ;;  %v2992_v30 = vld [vmem:[%s4909_s12 + $0x46] sm:$0xff]  ;;  %v2993_v39 = vld [vmem:[%s4909_s12 + $0x4e] sm:$0xff] }
  0xd1   : > { %4398 = vmatprep.mubr.msk.bf16.mxu0 %vm485_vm0, %v2688_v22  ;;  %4432 = vmatprep.subr.bf16.mxu0 %v4805_v35  ;;  %v3026_v49 = vpack.c.bf16 %v2993_v39, %v2992_v30  ;;  %v1670_v30 = vld [vmem:[%s4909_s12 + $0x123] sm:$0xff]  ;;  %v1671_v39 = vld [vmem:[%s4909_s12 + $0x12b] sm:$0xff] }
  0xd4   : > { %4433 = vmatpush3.bf16.msra.mxu0 %v4805_v35  ;;  %v2702_v35 = vpack.c.bf16 %v2683_v20, %v2682_v19  ;;  %v1666_v19 = vld [vmem:[%s4909_s12 + $0x103] sm:$0xff]  ;;  %v1667_v20 = vld [vmem:[%s4909_s12 + $0x10b] sm:$0xff] }
  0xd7   : > { %4219 = vmatmul.mubr.msk.bf16.gmra.mrb[24].mxu1 %vm485_vm0, %v5341_v32  ;;  %4399 = vmatmul.mubr.msk.bf16.gmra.mrb[4].mxu0 %vm485_vm0, %v2689_v33  ;;  %v2996_v33 = vld [vmem:[%s4909_s12 + $0x66] sm:$0xff] }
  0xd8   : > { %4222 = vmatprep.mubr.msk.bf16.mxu1 %vm485_vm0, %v5343_v25  ;;  %4402 = vmatprep.mubr.msk.bf16.mxu0 %vm485_vm0, %v2690_v34  ;;  %v2997_v34 = vld [vmem:[%s4909_s12 + $0x6e] sm:$0xff] }
  0xd9   : > { %v3028_v36 = vpack.c.bf16 %v2997_v34, %v2996_v33  ;;  %v1689_v33 = vpack.c.bf16 %v1671_v39, %v1670_v30 }
  0xdf   : > { %4223 = vmatmul.mubr.msk.bf16.gmra.mrb[28].mxu1 %vm485_vm0, %v5359_v46  ;;  %4403 = vmatmul.mubr.msk.bf16.gmra.mrb[8].mxu0 %vm485_vm0, %v2691_v26  ;;  %v1656_v26 = vld [vmem:[%s4909_s12 + $0xb3] sm:$0xff] }
  0xe0   : > { %4226 = vmatprep.mubr.msk.bf16.mxu1 %vm485_vm0, %v5361_v28  ;;  %4406 = vmatprep.mubr.msk.bf16.mxu0 %vm485_vm0, %v2692_v48  ;;  %v1657_v48 = vld [vmem:[%s4909_s12 + $0xbb] sm:$0xff] }
  0xe1   : > { %v1682_v54 = vpack.c.bf16 %v1657_v48, %v1656_v26 }
  0xe7   : > { %4227 = vmatmul.mubr.msk.bf16.gmra.mrb[32].mxu1 %vm485_vm0, %v5375_v60  ;;  %4407 = vmatmul.mubr.msk.bf16.gmra.mrb[12].mxu0 %vm485_vm0, %v2693_v56  ;;  %v3006_v56 = vld [vmem:[%s4909_s12 + $0xb6] sm:$0xff] }
  0xe8   : > { %4234 = vmatprep.mubr.msk.bf16.mxu1 %vm485_vm0, %v5228_v40  ;;  %4410 = vmatprep.mubr.msk.bf16.mxu0 %vm485_vm0, %v2694_v62  ;;  %v2672_v40 = vld [vmem:[%s4909_s12 + $0xd5] sm:$0xff]  ;;  %v3007_v62 = vld [vmem:[%s4909_s12 + $0xbe] sm:$0xff] }
  0xef   : > { %4235 = vmatmul.mubr.msk.bf16.vlgmr.msra.gmra.mrb[0].mxu1 %vm485_vm0, %v5230_v41  ;;  %4411 = vmatmul.mubr.msk.bf16.gmra.mrb[16].mxu0 %vm485_vm0, %v2695_v7  ;;  %v2697_v41 = vpack.c.bf16 %v2673_v6, %v2672_v40  ;;  %v1684_v40 = vpack.c.bf16 %v1661_v2, %v1660_v0  ;;  %v3034_v6 = vpack.c.bf16 %v3009_v58, %v3008_v4  ;;  %v5554_v2 = vld [vmem:[%s5738_s2] ss:$0 sm:$0xff] }
  0xf0   : > { %4238 = vmatprep.mubr.msk.bf16.mxu1 %vm485_vm0, %v5248_v47  ;;  %4414 = vmatprep.mubr.msk.bf16.mxu0 %vm485_vm0, %v2696_v9  ;;  %v2677_v47 = vld [vmem:[%s4909_s12 + $0xfd] sm:$0xff]  ;;  %v3033_v9 = vpack.c.bf16 %v3007_v62, %v3006_v56 }
  0xf1   : > { %4472 = vmatpush3.bf16.msra.mxu1 %v4884_v1  ;;  %v2676_v1 = vld [vmem:[%s4909_s12 + $0xf5] sm:$0xff] }
  0xf2   : > { %4471 = vmatprep.subr.bf16.mxu1 %v4895_v3  ;;  %v2699_v18 = vpack.c.bf16 %v2677_v47, %v2676_v1  ;;  %v1664_v1 = vld [vmem:[%s4909_s12 + $0xf3] sm:$0xff]  ;;  %v1665_v47 = vld [vmem:[%s4909_s12 + $0xfb] sm:$0xff] }
  0xf5   : > { %4473 = vmatpush3.bf16.msra.mxu1 %v4895_v3  ;;  %v2700_v3 = vpack.c.bf16 %v2679_v17, %v2678_v16  ;;  %v3012_v16 = vld [vmem:[%s4909_s12 + $0xe6] sm:$0xff]  ;;  %v3013_v17 = vld [vmem:[%s4909_s12 + $0xee] sm:$0xff] }
  0xf7   : > { %4239 = vmatmul.mubr.msk.bf16.gmra.mrb[4].mxu1 %vm485_vm0, %v5250_v14  ;;  %4415 = vmatmul.mubr.msk.bf16.gmra.mrb[20].mxu0 %vm485_vm0, %v2697_v41  ;;  %v2680_v14 = vld [vmem:[%s4909_s12 + $0x115] sm:$0xff] }
  0xf8   : > { %4242 = vmatprep.mubr.msk.bf16.mxu1 %vm485_vm0, %v5265_v52  ;;  %4418 = vmatprep.mubr.msk.bf16.mxu0 %vm485_vm0, %v2698_v15  ;;  %v2681_v52 = vld [vmem:[%s4909_s12 + $0x11d] sm:$0xff] }
  0xf9   : > { %v2701_v22 = vpack.c.bf16 %v2681_v52, %v2680_v14  ;;  %v3010_v41 = vld [vmem:[%s4909_s12 + $0xd6] sm:$0xff]  ;;  %v3011_v15 = vld [vmem:[%s4909_s12 + $0xde] sm:$0xff]  ;;  %v1686_v14 = vpack.c.bf16 %v1665_v47, %v1664_v1  ;;  %v3036_v52 = vpack.c.bf16 %v3013_v17, %v3012_v16 }
  0xff   : > { %4243 = vmatmul.mubr.msk.bf16.gmra.mrb[8].mxu1 %vm485_vm0, %v5267_v53  ;;  %4419 = vmatmul.mubr.msk.bf16.gmra.mrb[24].mxu0 %vm485_vm0, %v2699_v18  ;;  %v2684_v53 = vld [vmem:[%s4909_s12 + $0x135] sm:$0xff]  ;;  %v1685_v18 = vpack.c.bf16 %v1663_v13, %v1662_v11 }
 0x100   : > { %4246 = vmatprep.mubr.msk.bf16.mxu1 %vm485_vm0, %v5281_v57  ;;  %4422 = vmatprep.mubr.msk.bf16.mxu0 %vm485_vm0, %v2700_v3  ;;  %v2685_v57 = vld [vmem:[%s4909_s12 + $0x13d] sm:$0xff]  ;;  %v3035_v3 = vpack.c.bf16 %v3011_v15, %v3010_v41 }
 0x101   : > { %v2703_v27 = vpack.c.bf16 %v2685_v57, %v2684_v53  ;;  %v1668_v53 = vld [vmem:[%s4909_s12 + $0x113] sm:$0xff]  ;;  %v1669_v57 = vld [vmem:[%s4909_s12 + $0x11b] sm:$0xff] }
 0x107   : > { %4247 = vmatmul.mubr.msk.bf16.gmra.mrb[12].mxu1 %vm485_vm0, %v5283_v59  ;;  %4423 = vmatmul.mubr.msk.bf16.gmra.mrb[28].mxu0 %vm485_vm0, %v2701_v22  ;;  %v2990_v59 = vld [vmem:[%s4909_s12 + $0x36] sm:$0xff] }
 0x108   : > { %4250 = vmatprep.mubr.msk.bf16.mxu1 %vm485_vm0, %v5301_v5  ;;  %4426 = vmatprep.mubr.msk.bf16.mxu0 %vm485_vm0, %v2702_v35  ;;  %v2991_v5 = vld [vmem:[%s4909_s12 + $0x3e] sm:$0xff]  ;;  %v3014_v22 = vld [vmem:[%s4909_s12 + $0xf6] sm:$0xff] }
 0x109   : > { %v3025_v31 = vpack.c.bf16 %v2991_v5, %v2990_v59  ;;  %v3015_v35 = vld [vmem:[%s4909_s12 + $0xfe] sm:$0xff]  ;;  %v1688_v59 = vpack.c.bf16 %v1669_v57, %v1668_v53  ;;  %v3038_v5 = vpack.c.bf16 %v3017_v24, %v3016_v37 }
 0x10f   : > { %4251 = vmatmul.mubr.msk.bf16.gmra.mrb[16].mxu1 %vm485_vm0, %v5303_v8  ;;  %4427 = vmatmul.mubr.msk.bf16.gmra.mrb[32].mxu0 %vm485_vm0, %v2703_v27  ;;  %v2994_v8 = vld [vmem:[%s4909_s12 + $0x56] sm:$0xff]  ;;  %v1687_v27 = vpack.c.bf16 %v1667_v20, %v1666_v19 }
 0x110   : > { %4254 = vmatprep.mubr.msk.bf16.mxu1 %vm485_vm0, %v5319_v23  ;;  %4434 = vmatprep.mubr.msk.bf16.mxu0 %vm485_vm0, %v3024_v10  ;;  %v2995_v23 = vld [vmem:[%s4909_s12 + $0x5e] sm:$0xff]  ;;  %v3037_v10 = vpack.c.bf16 %v3015_v35, %v3014_v22 }
 0x111   : > { %v3027_v51 = vpack.c.bf16 %v2995_v23, %v2994_v8  ;;  %v3020_v8 = vld [vmem:[%s4909_s12 + $0x126] sm:$0xff]  ;;  %v3021_v23 = vld [vmem:[%s4909_s12 + $0x12e] sm:$0xff] }
 0x117   : > { %4255 = vmatmul.mubr.msk.bf16.gmra.mrb[20].mxu1 %vm485_vm0, %v5321_v21  ;;  %4435 = vmatmul.mubr.msk.bf16.vlgmr.msra.gmra.mrb[0].mxu0 %vm485_vm0, %v3025_v31  ;;  %v2998_v21 = vld [vmem:[%s4909_s12 + $0x76] sm:$0xff] }
 0x118   : > { %4258 = vmatprep.mubr.msk.bf16.mxu1 %vm485_vm0, %v5341_v32  ;;  %4438 = vmatprep.mubr.msk.bf16.mxu0 %vm485_vm0, %v3026_v49  ;;  %v2999_v32 = vld [vmem:[%s4909_s12 + $0x7e] sm:$0xff]  ;;  %v3018_v31 = vld [vmem:[%s4909_s12 + $0x116] sm:$0xff] }
 0x119   : > { %v3029_v43 = vpack.c.bf16 %v2999_v32, %v2998_v21  ;;  %v3019_v49 = vld [vmem:[%s4909_s12 + $0x11e] sm:$0xff] }
 0x11a   : > { %v3039_v34 = vpack.c.bf16 %v3019_v49, %v3018_v31  ;;  %v3023_v21 = vld [vmem:[%s4909_s12 + $0x13e] sm:$0xff] }
 0x11f   : > { %4259 = vmatmul.mubr.msk.bf16.gmra.mrb[24].mxu1 %vm485_vm0, %v5343_v25  ;;  %4439 = vmatmul.mubr.msk.bf16.gmra.mrb[4].mxu0 %vm485_vm0, %v3027_v51  ;;  %v1332_v25 = vld [vmem:[%s4909_s12 + $0x122] sm:$0xff]  ;;  %v3040_v51 = vpack.c.bf16 %v3021_v23, %v3020_v8 }
 0x120   : > { %4262 = vmatprep.mubr.msk.bf16.mxu1 %vm485_vm0, %v5359_v46  ;;  %4442 = vmatprep.mubr.msk.bf16.mxu0 %vm485_vm0, %v3028_v36  ;;  %v3003_v46 = vld [vmem:[%s4909_s12 + $0x9e] sm:$0xff]  ;;  %v1351_v29 = vpack.c.bf16 %v1333_v12, %v1332_v25  ;;  %v3022_v36 = vld [vmem:[%s4909_s12 + $0x136] sm:$0xff] }
 0x121   : > { %v3031_v42 = vpack.c.bf16 %v3003_v46, %v3002_v45  ;;  %v3041_v32 = vpack.c.bf16 %v3023_v21, %v3022_v36 }
 0x127   : > { %4263 = vmatmul.mubr.msk.bf16.gmra.mrb[28].mxu1 %vm485_vm0, %v5361_v28  ;;  %4443 = vmatmul.mubr.msk.bf16.gmra.mrb[8].mxu0 %vm485_vm0, %v3029_v43  ;;  %v3004_v28 = vld [vmem:[%s4909_s12 + $0xa6] sm:$0xff] }
 0x128   : > { %4266 = vmatprep.mubr.msk.bf16.mxu1 %vm485_vm0, %v5375_v60  ;;  %4446 = vmatprep.mubr.msk.bf16.mxu0 %vm485_vm0, %v3030_v63  ;;  %v3032_v55 = vpack.c.bf16 %v3005_v50, %v3004_v28  ;;  %v1659_v60 = vld [vmem:[%s4909_s12 + $0xcb] sm:$0xff]  ;;  %s4763_s12 = smul.u32 288, %s5747_s18 }
 0x129   : > { %v1683_v7 = vpack.c.bf16 %v1659_v60, %v1658_v44 }
 0x12a   : > { %s5559_s25 = scalar_lea.vmem %s5740_s4, %s4763_s12  ;;  %s5580_s29 = scalar_lea.vmem %s5741_s5, %s4763_s12 }
 0x12b   : > { %v3414_v41 = vld [vmem:[%s5559_s25 + $0x10] sm:$0xff]  ;;  %v3412_v16 = vld [vmem:[%s5559_s25] sm:$0xff]  ;;  %v3413_v20 = vld [vmem:[%s5559_s25 + $0x8] sm:$0xff] }
 0x12c   : > { %v3416_v21 = vld [vmem:[%s5559_s25 + $0x20] sm:$0xff] }
 0x12f   : > { %4267 = vmatmul.mubr.msk.bf16.gmra.mrb[32].mxu1 %vm485_vm0, %v1351_v29  ;;  %4447 = vmatmul.mubr.msk.bf16.gmra.mrb[12].mxu0 %vm485_vm0, %v3031_v42 }
 0x130   : > { %4294 = vmatprep.mubr.msk.bf16.mxu1 %vm485_vm0, %v1682_v54  ;;  %4450 = vmatprep.mubr.msk.bf16.mxu0 %vm485_vm0, %v3032_v55 }
 0x137   : > { %4295 = vmatmul.mubr.msk.bf16.vlgmr.msra.gmra.mrb[20].mxu1 %vm485_vm0, %v1683_v7  ;;  %4451 = vmatmul.mubr.msk.bf16.gmra.mrb[16].mxu0 %vm485_vm0, %v3033_v9  ;;  %v5564_v7 = vld [vmem:[%s5739_s3] ss:$0 sm:$0xff] }
 0x138   : > { %4298 = vmatprep.mubr.msk.bf16.mxu1 %vm485_vm0, %v1684_v40  ;;  %4454 = vmatprep.mubr.msk.bf16.mxu0 %vm485_vm0, %v3034_v6 }
 0x13f   : > { %4299 = vmatmul.mubr.msk.bf16.gmra.mrb[24].mxu1 %vm485_vm0, %v1685_v18  ;;  %4455 = vmatmul.mubr.msk.bf16.gmra.mrb[20].mxu0 %vm485_vm0, %v3035_v3  ;;  %v3415_v3 = vld [vmem:[%s5559_s25 + $0x18] sm:$0xff] }
 0x140   : > { %4302 = vmatprep.mubr.msk.bf16.mxu1 %vm485_vm0, %v1686_v14  ;;  %4458 = vmatprep.mubr.msk.bf16.mxu0 %vm485_vm0, %v3036_v52 }
 0x147   : > { %4303 = vmatmul.mubr.msk.bf16.gmra.mrb[28].mxu1 %vm485_vm0, %v1687_v27  ;;  %4459 = vmatmul.mubr.msk.bf16.gmra.mrb[24].mxu0 %vm485_vm0, %v3037_v10 }
 0x148   : > { %4306 = vmatprep.mubr.msk.bf16.mxu1 %vm485_vm0, %v1688_v59  ;;  %4462 = vmatprep.mubr.msk.bf16.mxu0 %vm485_vm0, %v3038_v5 }
 0x14f   : > { %4307 = vmatmul.mubr.msk.bf16.gmra.mrb[32].mxu1 %vm485_vm0, %v1689_v33  ;;  %4463 = vmatmul.mubr.msk.bf16.gmra.mrb[28].mxu0 %vm485_vm0, %v3039_v34  ;;  %v3418_v33 = vld [vmem:[%s5559_s25 + $0x30] sm:$0xff] }
 0x150   : > { %4466 = vmatprep.mubr.msk.bf16.mxu0 %vm485_vm0, %v3040_v51 }
 0x157   : > { %4467 = vmatmul.mubr.msk.bf16.gmra.mrb[32].mxu0 %vm485_vm0, %v3041_v32 }
 0x1c2   : > { %v4236_v61 = vpop.f32.mrb[0].mxu1 }
 0x1c3   : > { %v1457_v38 = vpop.f32.mrb[1].mxu1 }
 0x1c4   : > { %v4237_v43 = vpop.f32.mrb[2].mxu1 }
 0x1c5   : > { %v1460_v63 = vpop.f32.mrb[3].mxu1 }
 0x1ca   : > { %v4240_v25 = vpop.f32.mrb[4].mxu1 }
 0x1cb   : > { %v1473_v12 = vpop.f32.mrb[5].mxu1 }
 0x1cc   : > { %v4241_v45 = vpop.f32.mrb[6].mxu1 }
 0x1cd   : > { %v1476_v46 = vpop.f32.mrb[7].mxu1 }
 0x1d2   : > { %v5526_v26 = vpop.f32.mrb[8].mxu1 }
 0x1d3   : > { %v5528_v48 = vpop.f32.mrb[9].mxu1 }
 0x1d4   : > { %v5530_v28 = vpop.f32.mrb[10].mxu1 }
 0x1d5   : > { %v5532_v50 = vpop.f32.mrb[11].mxu1 }
 0x1da   : > { %v5534_v29 = vpop.f32.mrb[12].mxu1 }
 0x1db   : > { %v5536_v42 = vpop.f32.mrb[13].mxu1 }
 0x1dc   : > { %v5538_v54 = vpop.f32.mrb[14].mxu1 }
 0x1dd   : > { %v5540_v55 = vpop.f32.mrb[15].mxu1 }
 0x1e2   : > { %v5542_v44 = vpop.f32.mrb[16].mxu1 }
 0x1e3   : > { %v5544_v60 = vpop.f32.mrb[17].mxu1 }
 0x1e4   : > { %v5546_v56 = vpop.f32.mrb[18].mxu1 }
 0x1e5   : > { %v5548_v62 = vpop.f32.mrb[19].mxu1 }
 0x1ea   : > { %v4436_v0 = vpop.f32.mrb[0].mxu0 }
 0x1eb   : > { %v4474_v4 = vadd.f32 %v4436_v0, %v4236_v61  ;;  %v3147_v58 = vpop.f32.mrb[1].mxu0 }
 0x1ec   : > { %v4475_v9 = vadd.f32 %v3147_v58, %v1457_v38  ;;  %v4437_v40 = vpop.f32.mrb[2].mxu0  ;;  %v3419_v38 = vld [vmem:[%s5559_s25 + $0x38] sm:$0xff] }
 0x1ed   : > { %v3335_v6 = vmul.f32 %v4474_v4, %v5554_v2  ;;  %v4476_v11 = vadd.f32 %v4437_v40, %v4237_v43  ;;  %v3150_v13 = vpop.f32.mrb[3].mxu0 }
 0x1ee   : > { %v3333_v15 = vmul.f32 %v4475_v9, %v5554_v2  ;;  %v4477_v1 = vadd.f32 %v3150_v13, %v1460_v63 }
 0x1ef   : > { %v3378_v47 = vadd.f32 %v5564_v7, %v3335_v6  ;;  %v3336_v17 = vmul.f32 %v4476_v11, %v5554_v2 }
 0x1f0   : > { %v3376_v18 = vadd.f32 %v5564_v7, %v3333_v15  ;;  %v3334_v14 = vmul.f32 %v4477_v1, %v5554_v2 }
 0x1f1   : > { %v3450_v52 = vadd.f32 %v3414_v41, %v3378_v47  ;;  %v3379_v19 = vadd.f32 %v5564_v7, %v3336_v17  ;;  %v3422_v17 = vld [vmem:[%s5559_s25 + $0x50] sm:$0xff] }
 0x1f2   : > { %v3448_v22 = vadd.f32 %v3412_v16, %v3376_v18  ;;  %v3377_v35 = vadd.f32 %v5564_v7, %v3334_v14  ;;  %v4440_v53 = vpop.f32.mrb[4].mxu0  ;;  %v3420_v14 = vld [vmem:[%s5559_s25 + $0x40] sm:$0xff] }
 0x1f3   : > { %v3486_v57 = vmax.f32 %v3450_v52, 0.0  ;;  %v3451_v37 = vadd.f32 %v3415_v3, %v3379_v19  ;;  %v4478_v24 = vadd.f32 %v4440_v53, %v4240_v25  ;;  %v3163_v27 = vpop.f32.mrb[5].mxu0  ;;  %v3421_v53 = vld [vmem:[%s5559_s25 + $0x48] sm:$0xff] }
 0x1f4   : > { %v3484_v10 = vmax.f32 %v3448_v22, 0.0  ;;  %v3449_v59 = vadd.f32 %v3413_v20, %v3377_v35  ;;  %v4479_v5 = vadd.f32 %v3163_v27, %v1473_v12  ;;  %v4441_v30 = vpop.f32.mrb[6].mxu0  ;;  %v3417_v12 = vld [vmem:[%s5559_s25 + $0x28] sm:$0xff]  ;;  %v3423_v20 = vld [vmem:[%s5559_s25 + $0x58] sm:$0xff] }
 0x1f5   : > { %3522 = vst [vmem:[%s5580_s29 + $0x10] sm:$0xff] %v3486_v57  ;;  %v3487_v39 = vmax.f32 %v3451_v37, 0.0  ;;  %v3339_v31 = vmul.f32 %v4478_v24, %v5554_v2  ;;  %v4480_v49 = vadd.f32 %v4441_v30, %v4241_v45  ;;  %v3166_v8 = vpop.f32.mrb[7].mxu0 }
 0x1f6   : > { %3520 = vst [vmem:[%s5580_s29] sm:$0xff] %v3484_v10  ;;  %v3485_v23 = vmax.f32 %v3449_v59, 0.0  ;;  %v3337_v34 = vmul.f32 %v4479_v5, %v5554_v2  ;;  %v4481_v51 = vadd.f32 %v3166_v8, %v1476_v46 }
 0x1f7   : > { %3523 = vst [vmem:[%s5580_s29 + $0x18] sm:$0xff] %v3487_v39  ;;  %v3382_v36 = vadd.f32 %v5564_v7, %v3339_v31  ;;  %v3340_v32 = vmul.f32 %v4480_v49, %v5554_v2 }
 0x1f8   : > { %3521 = vst [vmem:[%s5580_s29 + $0x8] sm:$0xff] %v3485_v23  ;;  %v3380_v61 = vadd.f32 %v5564_v7, %v3337_v34  ;;  %v3338_v43 = vmul.f32 %v4481_v51, %v5554_v2  ;;  %v3426_v34 = vld [vmem:[%s5559_s25 + $0x70] sm:$0xff] }
 0x1f9   : > { %v3454_v63 = vadd.f32 %v3418_v33, %v3382_v36  ;;  %v3383_v25 = vadd.f32 %v5564_v7, %v3340_v32 }
 0x1fa   : > { %v3452_v45 = vadd.f32 %v3416_v21, %v3380_v61  ;;  %v3381_v46 = vadd.f32 %v5564_v7, %v3338_v43  ;;  %v4444_v0 = vpop.f32.mrb[8].mxu0  ;;  %v3424_v21 = vld [vmem:[%s5559_s25 + $0x60] sm:$0xff] }
 0x1fb   : > { %v3490_v4 = vmax.f32 %v3454_v63, 0.0  ;;  %v3455_v58 = vadd.f32 %v3419_v38, %v3383_v25  ;;  %v4482_v9 = vadd.f32 %v4444_v0, %v5526_v26  ;;  %v3179_v40 = vpop.f32.mrb[9].mxu0  ;;  %v3427_v38 = vld [vmem:[%s5559_s25 + $0x78] sm:$0xff]  ;;  %v3425_v25 = vld [vmem:[%s5559_s25 + $0x68] sm:$0xff] }
 0x1fc   : > { %v3488_v6 = vmax.f32 %v3452_v45, 0.0  ;;  %v3453_v11 = vadd.f32 %v3417_v12, %v3381_v46  ;;  %v4483_v13 = vadd.f32 %v3179_v40, %v5528_v48  ;;  %v4445_v41 = vpop.f32.mrb[10].mxu0 }
 0x1fd   : > { %3526 = vst [vmem:[%s5580_s29 + $0x30] sm:$0xff] %v3490_v4  ;;  %v3491_v15 = vmax.f32 %v3455_v58, 0.0  ;;  %v3343_v1 = vmul.f32 %v4482_v9, %v5554_v2  ;;  %v4484_v47 = vadd.f32 %v4445_v41, %v5530_v28  ;;  %v3182_v16 = vpop.f32.mrb[11].mxu0 }
 0x1fe   : > { %3524 = vst [vmem:[%s5580_s29 + $0x20] sm:$0xff] %v3488_v6  ;;  %v3489_v26 = vmax.f32 %v3453_v11, 0.0  ;;  %v3341_v18 = vmul.f32 %v4483_v13, %v5554_v2  ;;  %v4485_v3 = vadd.f32 %v3182_v16, %v5532_v50 }
 0x1ff   : > { %3527 = vst [vmem:[%s5580_s29 + $0x38] sm:$0xff] %v3491_v15  ;;  %v3386_v48 = vadd.f32 %v5564_v7, %v3343_v1  ;;  %v3344_v52 = vmul.f32 %v4484_v47, %v5554_v2 }
 0x200   : > { %3525 = vst [vmem:[%s5580_s29 + $0x28] sm:$0xff] %v3489_v26  ;;  %v3384_v19 = vadd.f32 %v5564_v7, %v3341_v18  ;;  %v3342_v28 = vmul.f32 %v4485_v3, %v5554_v2  ;;  %v3430_v18 = vld [vmem:[%s5559_s25 + $0x90] sm:$0xff] }
 0x201   : > { %v3458_v22 = vadd.f32 %v3422_v17, %v3386_v48  ;;  %v3387_v35 = vadd.f32 %v5564_v7, %v3344_v52 }
 0x202   : > { %v3456_v57 = vadd.f32 %v3420_v14, %v3384_v19  ;;  %v3385_v50 = vadd.f32 %v5564_v7, %v3342_v28  ;;  %v4448_v37 = vpop.f32.mrb[12].mxu0  ;;  %v3428_v14 = vld [vmem:[%s5559_s25 + $0x80] sm:$0xff] }
 0x203   : > { %v3494_v24 = vmax.f32 %v3458_v22, 0.0  ;;  %v3459_v27 = vadd.f32 %v3423_v20, %v3387_v35  ;;  %v4486_v10 = vadd.f32 %v4448_v37, %v5534_v29  ;;  %v3195_v59 = vpop.f32.mrb[13].mxu0  ;;  %v3431_v20 = vld [vmem:[%s5559_s25 + $0x98] sm:$0xff]  ;;  %v3429_v35 = vld [vmem:[%s5559_s25 + $0x88] sm:$0xff] }
 0x204   : > { %v3492_v5 = vmax.f32 %v3456_v57, 0.0  ;;  %v3457_v30 = vadd.f32 %v3421_v53, %v3385_v50  ;;  %v4487_v39 = vadd.f32 %v3195_v59, %v5536_v42  ;;  %v4449_v31 = vpop.f32.mrb[14].mxu0 }
 0x205   : > { %3530 = vst [vmem:[%s5580_s29 + $0x50] sm:$0xff] %v3494_v24  ;;  %v3495_v49 = vmax.f32 %v3459_v27, 0.0  ;;  %v3347_v8 = vmul.f32 %v4486_v10, %v5554_v2  ;;  %v4488_v23 = vadd.f32 %v4449_v31, %v5538_v54  ;;  %v3198_v33 = vpop.f32.mrb[15].mxu0 }
 0x206   : > { %3528 = vst [vmem:[%s5580_s29 + $0x40] sm:$0xff] %v3492_v5  ;;  %v3493_v29 = vmax.f32 %v3457_v30, 0.0  ;;  %v3345_v51 = vmul.f32 %v4487_v39, %v5554_v2  ;;  %v4489_v36 = vadd.f32 %v3198_v33, %v5540_v55 }
 0x207   : > { %3531 = vst [vmem:[%s5580_s29 + $0x58] sm:$0xff] %v3495_v49  ;;  %v3390_v42 = vadd.f32 %v5564_v7, %v3347_v8  ;;  %v3348_v32 = vmul.f32 %v4488_v23, %v5554_v2 }
 0x208   : > { %3529 = vst [vmem:[%s5580_s29 + $0x48] sm:$0xff] %v3493_v29  ;;  %v3388_v61 = vadd.f32 %v5564_v7, %v3345_v51  ;;  %v3346_v54 = vmul.f32 %v4489_v36, %v5554_v2  ;;  %v3434_v36 = vld [vmem:[%s5559_s25 + $0xb0] sm:$0xff] }
 0x209   : > { %v3462_v43 = vadd.f32 %v3426_v34, %v3390_v42  ;;  %v3391_v63 = vadd.f32 %v5564_v7, %v3348_v32 }
 0x20a   : > { %v4296_v12 = vpop.f32.mrb[20].mxu1  ;;  %v3460_v45 = vadd.f32 %v3424_v21, %v3388_v61  ;;  %v3389_v55 = vadd.f32 %v5564_v7, %v3346_v54  ;;  %v4452_v46 = vpop.f32.mrb[16].mxu0  ;;  %v3432_v61 = vld [vmem:[%s5559_s25 + $0xa0] sm:$0xff] }
 0x20b   : > { %v1875_v0 = vpop.f32.mrb[21].mxu1  ;;  %v3498_v4 = vmax.f32 %v3462_v43, 0.0  ;;  %v3463_v58 = vadd.f32 %v3427_v38, %v3391_v63  ;;  %v4490_v9 = vadd.f32 %v4452_v46, %v5542_v44  ;;  %v3211_v40 = vpop.f32.mrb[17].mxu0  ;;  %v3435_v43 = vld [vmem:[%s5559_s25 + $0xb8] sm:$0xff] }
 0x20c   : > { %v4297_v6 = vpop.f32.mrb[22].mxu1  ;;  %v3496_v11 = vmax.f32 %v3460_v45, 0.0  ;;  %v3461_v13 = vadd.f32 %v3425_v25, %v3389_v55  ;;  %v4491_v41 = vadd.f32 %v3211_v40, %v5544_v60  ;;  %v4453_v15 = vpop.f32.mrb[18].mxu0  ;;  %v3433_v45 = vld [vmem:[%s5559_s25 + $0xa8] sm:$0xff] }
 0x20d   : > { %v1878_v1 = vpop.f32.mrb[23].mxu1  ;;  %3534 = vst [vmem:[%s5580_s29 + $0x70] sm:$0xff] %v3498_v4  ;;  %v3499_v47 = vmax.f32 %v3463_v58, 0.0  ;;  %v3351_v16 = vmul.f32 %v4490_v9, %v5554_v2  ;;  %v4492_v26 = vadd.f32 %v4453_v15, %v5546_v56  ;;  %v3214_v17 = vpop.f32.mrb[19].mxu0 }
 0x20e   : > { %3532 = vst [vmem:[%s5580_s29 + $0x60] sm:$0xff] %v3496_v11  ;;  %v3497_v44 = vmax.f32 %v3461_v13, 0.0  ;;  %v3349_v3 = vmul.f32 %v4491_v41, %v5554_v2  ;;  %v4493_v48 = vadd.f32 %v3214_v17, %v5548_v62 }
 0x20f   : > { %3535 = vst [vmem:[%s5580_s29 + $0x78] sm:$0xff] %v3499_v47  ;;  %v3394_v60 = vadd.f32 %v5564_v7, %v3351_v16  ;;  %v3352_v52 = vmul.f32 %v4492_v26, %v5554_v2 }
 0x210   : > { %3533 = vst [vmem:[%s5580_s29 + $0x68] sm:$0xff] %v3497_v44  ;;  %v3392_v19 = vadd.f32 %v5564_v7, %v3349_v3  ;;  %v3350_v56 = vmul.f32 %v4493_v48, %v5554_v2  ;;  %v3438_v48 = vld [vmem:[%s5559_s25 + $0xd0] sm:$0xff] }
 0x211   : > { %v3466_v28 = vadd.f32 %v3430_v18, %v3394_v60  ;;  %v3395_v22 = vadd.f32 %v5564_v7, %v3352_v52 }
 0x212   : > { %v4300_v53 = vpop.f32.mrb[24].mxu1  ;;  %v3464_v57 = vadd.f32 %v3428_v14, %v3392_v19  ;;  %v3393_v62 = vadd.f32 %v5564_v7, %v3350_v56  ;;  %v4456_v50 = vpop.f32.mrb[20].mxu0  ;;  %v3436_v19 = vld [vmem:[%s5559_s25 + $0xc0] sm:$0xff] }
 0x213   : > { %v1891_v37 = vpop.f32.mrb[25].mxu1  ;;  %v3502_v24 = vmax.f32 %v3466_v28, 0.0  ;;  %v3467_v27 = vadd.f32 %v3431_v20, %v3395_v22  ;;  %v4494_v10 = vadd.f32 %v4456_v50, %v4296_v12  ;;  %v3227_v59 = vpop.f32.mrb[21].mxu0  ;;  %v3439_v28 = vld [vmem:[%s5559_s25 + $0xd8] sm:$0xff] }
 0x214   : > { %v4301_v5 = vpop.f32.mrb[26].mxu1  ;;  %v3500_v30 = vmax.f32 %v3464_v57, 0.0  ;;  %v3465_v39 = vadd.f32 %v3429_v35, %v3393_v62  ;;  %v4495_v31 = vadd.f32 %v3227_v59, %v1875_v0  ;;  %v4457_v49 = vpop.f32.mrb[22].mxu0  ;;  %v3437_v57 = vld [vmem:[%s5559_s25 + $0xc8] sm:$0xff] }
 0x215   : > { %v1894_v8 = vpop.f32.mrb[27].mxu1  ;;  %3538 = vst [vmem:[%s5580_s29 + $0x90] sm:$0xff] %v3502_v24  ;;  %v3503_v23 = vmax.f32 %v3467_v27, 0.0  ;;  %v3355_v33 = vmul.f32 %v4494_v10, %v5554_v2  ;;  %v4496_v29 = vadd.f32 %v4457_v49, %v4297_v6  ;;  %v3230_v34 = vpop.f32.mrb[23].mxu0 }
 0x216   : > { %3536 = vst [vmem:[%s5580_s29 + $0x80] sm:$0xff] %v3500_v30  ;;  %v3501_v51 = vmax.f32 %v3465_v39, 0.0  ;;  %v3353_v42 = vmul.f32 %v4495_v31, %v5554_v2  ;;  %v4497_v21 = vadd.f32 %v3230_v34, %v1878_v1 }
 0x217   : > { %3539 = vst [vmem:[%s5580_s29 + $0x98] sm:$0xff] %v3503_v23  ;;  %v3398_v32 = vadd.f32 %v5564_v7, %v3355_v33  ;;  %v3356_v38 = vmul.f32 %v4496_v29, %v5554_v2 }
 0x218   : > { %3537 = vst [vmem:[%s5580_s29 + $0x88] sm:$0xff] %v3501_v51  ;;  %v3396_v54 = vadd.f32 %v5564_v7, %v3353_v42  ;;  %v3354_v63 = vmul.f32 %v4497_v21, %v5554_v2  ;;  %v3442_v21 = vld [vmem:[%s5559_s25 + $0xf0] sm:$0xff] }
 0x219   : > { %v3470_v25 = vadd.f32 %v3434_v36, %v3398_v32  ;;  %v3399_v12 = vadd.f32 %v5564_v7, %v3356_v38 }
 0x21a   : > { %v4304_v55 = vpop.f32.mrb[28].mxu1  ;;  %v3468_v46 = vadd.f32 %v3432_v61, %v3396_v54  ;;  %v3397_v0 = vadd.f32 %v5564_v7, %v3354_v63  ;;  %v4460_v4 = vpop.f32.mrb[24].mxu0  ;;  %v3440_v54 = vld [vmem:[%s5559_s25 + $0xe0] sm:$0xff] }
 0x21b   : > { %v1907_v58 = vpop.f32.mrb[29].mxu1  ;;  %v3506_v9 = vmax.f32 %v3470_v25, 0.0  ;;  %v3471_v40 = vadd.f32 %v3435_v43, %v3399_v12  ;;  %v4498_v6 = vadd.f32 %v4460_v4, %v4300_v53  ;;  %v3243_v11 = vpop.f32.mrb[25].mxu0  ;;  %v3443_v25 = vld [vmem:[%s5559_s25 + $0xf8] sm:$0xff] }
 0x21c   : > { %v4305_v13 = vpop.f32.mrb[30].mxu1  ;;  %v3504_v41 = vmax.f32 %v3468_v46, 0.0  ;;  %v3469_v15 = vadd.f32 %v3433_v45, %v3397_v0  ;;  %v4499_v1 = vadd.f32 %v3243_v11, %v1891_v37  ;;  %v4461_v47 = vpop.f32.mrb[26].mxu0  ;;  %v3441_v46 = vld [vmem:[%s5559_s25 + $0xe8] sm:$0xff] }
 0x21d   : > { %v1910_v16 = vpop.f32.mrb[31].mxu1  ;;  %3542 = vst [vmem:[%s5580_s29 + $0xb0] sm:$0xff] %v3506_v9  ;;  %v3507_v26 = vmax.f32 %v3471_v40, 0.0  ;;  %v3359_v17 = vmul.f32 %v4498_v6, %v5554_v2  ;;  %v4500_v44 = vadd.f32 %v4461_v47, %v4301_v5  ;;  %v3246_v18 = vpop.f32.mrb[27].mxu0 }
 0x21e   : > { %3540 = vst [vmem:[%s5580_s29 + $0xa0] sm:$0xff] %v3504_v41  ;;  %v3505_v3 = vmax.f32 %v3469_v15, 0.0  ;;  %v3357_v60 = vmul.f32 %v4499_v1, %v5554_v2  ;;  %v4501_v14 = vadd.f32 %v3246_v18, %v1894_v8  ;;  %v3446_v18 = vld [vmem:[%s5559_s25 + $0x110] sm:$0xff] }
 0x21f   : > { %3543 = vst [vmem:[%s5580_s29 + $0xb8] sm:$0xff] %v3507_v26  ;;  %v3402_v52 = vadd.f32 %v5564_v7, %v3359_v17  ;;  %v3360_v20 = vmul.f32 %v4500_v44, %v5554_v2 }
 0x220   : > { %3541 = vst [vmem:[%s5580_s29 + $0xa8] sm:$0xff] %v3505_v3  ;;  %v3400_v56 = vadd.f32 %v5564_v7, %v3357_v60  ;;  %v3358_v22 = vmul.f32 %v4501_v14, %v5554_v2  ;;  %v3444_v14 = vld [vmem:[%s5559_s25 + $0x100] sm:$0xff] }
 0x221   : > { %v3474_v35 = vadd.f32 %v3438_v48, %v3402_v52  ;;  %v3403_v53 = vadd.f32 %v5564_v7, %v3360_v20  ;;  %v3447_v20 = vld [vmem:[%s5559_s25 + $0x118] sm:$0xff] }
 0x222   : > { %v4308_v62 = vpop.f32.mrb[32].mxu1  ;;  %v3472_v50 = vadd.f32 %v3436_v19, %v3400_v56  ;;  %v3401_v37 = vadd.f32 %v5564_v7, %v3358_v22  ;;  %v4464_v24 = vpop.f32.mrb[28].mxu0 }
 0x223   : > { %v1923_v27 = vpop.f32.mrb[33].mxu1  ;;  %v3510_v10 = vmax.f32 %v3474_v35, 0.0  ;;  %v3475_v59 = vadd.f32 %v3439_v28, %v3403_v53  ;;  %v4502_v5 = vadd.f32 %v4464_v24, %v4304_v55  ;;  %v3259_v30 = vpop.f32.mrb[29].mxu0  ;;  %v3445_v35 = vld [vmem:[%s5559_s25 + $0x108] sm:$0xff] }
 0x224   : > { %v4309_v39 = vpop.f32.mrb[34].mxu1  ;;  %v3508_v31 = vmax.f32 %v3472_v50, 0.0  ;;  %v3473_v49 = vadd.f32 %v3437_v57, %v3401_v37  ;;  %v4503_v8 = vadd.f32 %v3259_v30, %v1907_v58  ;;  %v4465_v23 = vpop.f32.mrb[30].mxu0 }
 0x225   : > { %v1926_v33 = vpop.f32.mrb[35].mxu1  ;;  %3546 = vst [vmem:[%s5580_s29 + $0xd0] sm:$0xff] %v3510_v10  ;;  %v3511_v29 = vmax.f32 %v3475_v59, 0.0  ;;  %v3363_v34 = vmul.f32 %v4502_v5, %v5554_v2  ;;  %v4504_v51 = vadd.f32 %v4465_v23, %v4305_v13  ;;  %v3262_v36 = vpop.f32.mrb[31].mxu0 }
 0x226   : > { %3544 = vst [vmem:[%s5580_s29 + $0xc0] sm:$0xff] %v3508_v31  ;;  %v3509_v42 = vmax.f32 %v3473_v49, 0.0  ;;  %v3361_v32 = vmul.f32 %v4503_v8, %v5554_v2  ;;  %v4505_v61 = vadd.f32 %v3262_v36, %v1910_v16 }
 0x227   : > { %3547 = vst [vmem:[%s5580_s29 + $0xd8] sm:$0xff] %v3511_v29  ;;  %v3406_v38 = vadd.f32 %v5564_v7, %v3363_v34  ;;  %v3364_v43 = vmul.f32 %v4504_v51, %v5554_v2 }
 0x228   : > { %3545 = vst [vmem:[%s5580_s29 + $0xc8] sm:$0xff] %v3509_v42  ;;  %v3404_v63 = vadd.f32 %v5564_v7, %v3361_v32  ;;  %v3362_v12 = vmul.f32 %v4505_v61, %v5554_v2 }
 0x229   : > { %v3478_v45 = vadd.f32 %v3442_v21, %v3406_v38  ;;  %v3407_v55 = vadd.f32 %v5564_v7, %v3364_v43 }
 0x22a   : > { %v3476_v0 = vadd.f32 %v3440_v54, %v3404_v63  ;;  %v3405_v4 = vadd.f32 %v5564_v7, %v3362_v12  ;;  %v4468_v58 = vpop.f32.mrb[32].mxu0 }
 0x22b   : > { %v3514_v9 = vmax.f32 %v3478_v45, 0.0  ;;  %v3479_v40 = vadd.f32 %v3443_v25, %v3407_v55  ;;  %v4506_v6 = vadd.f32 %v4468_v58, %v4308_v62  ;;  %v3275_v11 = vpop.f32.mrb[33].mxu0 }
 0x22c   : > { %v3512_v13 = vmax.f32 %v3476_v0, 0.0  ;;  %v3477_v41 = vadd.f32 %v3441_v46, %v3405_v4  ;;  %v4507_v15 = vadd.f32 %v3275_v11, %v1923_v27  ;;  %v4469_v1 = vpop.f32.mrb[34].mxu0 }
 0x22d   : > { %3550 = vst [vmem:[%s5580_s29 + $0xf0] sm:$0xff] %v3514_v9  ;;  %v3515_v47 = vmax.f32 %v3479_v40, 0.0  ;;  %v3367_v16 = vmul.f32 %v4506_v6, %v5554_v2  ;;  %v4508_v26 = vadd.f32 %v4469_v1, %v4309_v39  ;;  %v3278_v17 = vpop.f32.mrb[35].mxu0 }
 0x22e   : > { %3548 = vst [vmem:[%s5580_s29 + $0xe0] sm:$0xff] %v3512_v13  ;;  %v3513_v44 = vmax.f32 %v3477_v41, 0.0  ;;  %v3365_v3 = vmul.f32 %v4507_v15, %v5554_v2  ;;  %v4509_v48 = vadd.f32 %v3278_v17, %v1926_v33 }
 0x22f   : > { %3551 = vst [vmem:[%s5580_s29 + $0xf8] sm:$0xff] %v3515_v47  ;;  %v3410_v60 = vadd.f32 %v5564_v7, %v3367_v16  ;;  %v3368_v52 = vmul.f32 %v4508_v26, %v5554_v2 }
 0x230   : > { %3549 = vst [vmem:[%s5580_s29 + $0xe8] sm:$0xff] %v3513_v44  ;;  %v3408_v19 = vadd.f32 %v5564_v7, %v3365_v3  ;;  %v3366_v56 = vmul.f32 %v4509_v48, %v5554_v2 }
 0x231   : > { %v3482_v28 = vadd.f32 %v3446_v18, %v3410_v60  ;;  %v3411_v22 = vadd.f32 %v5564_v7, %v3368_v52 }
 0x232   : > { %v3480_v53 = vadd.f32 %v3444_v14, %v3408_v19  ;;  %v3409_v57 = vadd.f32 %v5564_v7, %v3366_v56 }
 0x233   : > { %v3518_v62 = vmax.f32 %v3482_v28, 0.0  ;;  %v3483_v50 = vadd.f32 %v3447_v20, %v3411_v22 }
 0x234   : > { %v3516_v37 = vmax.f32 %v3480_v53, 0.0  ;;  %v3481_v24 = vadd.f32 %v3445_v35, %v3409_v57 }
 0x235   : > { %3554 = vst [vmem:[%s5580_s29 + $0x110] sm:$0xff] %v3518_v62  ;;  %v3519_v27 = vmax.f32 %v3483_v50, 0.0 }
 0x236   : > { %3552 = vst [vmem:[%s5580_s29 + $0x100] sm:$0xff] %v3516_v37  ;;  %v3517_v10 = vmax.f32 %v3481_v24, 0.0 }
 0x237   : > { %3555 = vst [vmem:[%s5580_s29 + $0x118] sm:$0xff] %v3519_v27 }
 0x238   : > { %3553 = vst [vmem:[%s5580_s29 + $0x108] sm:$0xff] %v3517_v10 }
 0x239 PF: > { %s15_s20 = sadd.s32 1, %s4828_s20   ;;  %s5742_s18 = smov %s4824_s19 }
 0x23a   : > { %p12_p5 = scmp.ge.s32.totalorder %s15_s20, 4   ;;  %s5743_s19 = smov %s5745_s21 }
 0x23c   :  { %14 = sbr.rel (!%p12_p5) target bundleno = 2 (0x2), region = 90 }

</bundles_post_ra>
